<compile_context>
chip_gen: v5e
topology: v5e:2x2
jax: 0.10.0
libtpu: 0.0.40
codegen_flags: <defaults>
</compile_context>

<pallas_src>
import functools
import math

import jax
import jax.numpy as jnp
from jax import lax
from jax.experimental import pallas as pl
from jax.experimental.pallas import tpu as pltpu


# ------------------------------ Fused kernel ---------------------------------

def _new_gelu(x):
    c = math.sqrt(2.0 / math.pi)
    return 0.5 * x * (1.0 + jnp.tanh(c * (x + 0.044715 * x * x * x)))


def _layer_norm(x, g, b, eps):
    mean = jnp.mean(x, axis=-1, keepdims=True)
    var = jnp.mean((x - mean) ** 2, axis=-1, keepdims=True)
    return (x - mean) * lax.rsqrt(var + eps) * g + b


def _vit_fused_kernel(
        patches_ref, pw_ref, emb_add_ref,
        ln1g_ref, ln1b_ref, wqkv_ref, bqkv_ref, wo_ref, bo_ref,
        ln2g_ref, ln2b_ref, w1_ref, b1_ref, w2_ref, b2_ref,
        clfw_ref, clfb_ref,
        out_ref,
        emb_scr, attn_scr,
        *, B, T, D, H, nh, hs, L, eps):
    del H
    Np = T - 1
    scale = 1.0 / math.sqrt(hs)

    # ---------------- Embeddings (patch proj + CLS + positional) ----------------
    # patches_ref: (B*Np, F); pw_ref: (F, D); emb_add_ref: (T, D)
    proj = jnp.dot(patches_ref[...], pw_ref[...],
                   preferred_element_type=jnp.float32)                  # (B*Np, D)
    emb_add = emb_add_ref[...]                                          # (T, D)
    for b in range(B):
        # CLS row written directly (cls_token + pos[0]); no zero-padded matmul row.
        emb_scr[b * T:b * T + 1, :] = emb_add[0:1, :]
        emb_scr[b * T + 1:(b + 1) * T, :] = (
            proj[b * Np:(b + 1) * Np, :] + emb_add[1:, :])
    h = emb_scr[...]                                                    # (B*T, D)

    # ---------------- Encoder (static unroll over layers) ----------------
    for l in range(L):
        # ---- attention sub-block: LN1 + fused QKV + per-head attn + out-proj + residual
        ln1 = _layer_norm(h, ln1g_ref[l], ln1b_ref[l], eps)             # (B*T, D)
        qkv = (jnp.dot(ln1, wqkv_ref[l], preferred_element_type=jnp.float32)
               + bqkv_ref[l])                                           # (B*T, 3D)
        for b in range(B):
            qkv_b = qkv[b * T:(b + 1) * T, :]                           # (T, 3D)
            for i in range(nh):
                q = qkv_b[:, i * hs:(i + 1) * hs]                       # (T, hs)
                k = qkv_b[:, D + i * hs:D + (i + 1) * hs]               # (T, hs)
                v = qkv_b[:, 2 * D + i * hs:2 * D + (i + 1) * hs]       # (T, hs)
                # Transposed scores: sT[tk, tq] = k[tk]·q[tq] * scale.
                sT = lax.dot_general(
                    k, q, (((1,), (1,)), ((), ())),
                    preferred_element_type=jnp.float32) * scale         # (Tk, Tq)
                # Reference softmax over the QUERY axis -> lane-axis reduction here.
                m = jnp.max(sT, axis=-1, keepdims=True)
                e = jnp.exp(sT - m)
                pT = e / jnp.sum(e, axis=-1, keepdims=True)             # (Tk, Tq)
                # out[tq, d] = sum_tk pT[tk, tq] * v[tk, d]  (contract dim 0 of pT).
                o = lax.dot_general(
                    pT, v, (((0,), (0,)), ((), ())),
                    preferred_element_type=jnp.float32)                 # (Tq, hs)
                # Write the head output straight into the slab (no concat relayouts).
                attn_scr[b * T:(b + 1) * T, i * hs:(i + 1) * hs] = o
        attn = attn_scr[...]                                            # (B*T, D)
        h = h + (jnp.dot(attn, wo_ref[l], preferred_element_type=jnp.float32)
                 + bo_ref[l])

        # ---- MLP sub-block: LN2 + W1 + NewGELU + W2 + residual
        ln2 = _layer_norm(h, ln2g_ref[l], ln2b_ref[l], eps)
        hid = (jnp.dot(ln2, w1_ref[l], preferred_element_type=jnp.float32)
               + b1_ref[l])
        hid = _new_gelu(hid)
        h = h + (jnp.dot(hid, w2_ref[l], preferred_element_type=jnp.float32)
                 + b2_ref[l])

    # ---------------- Classification head on the CLS tokens ----------------
    cls_rows = jnp.concatenate([h[b * T:b * T + 1, :] for b in range(B)], axis=0)
    out_ref[...] = (jnp.dot(cls_rows, clfw_ref[...],
                            preferred_element_type=jnp.float32) + clfb_ref[...])


def vit_fused_pallas(fp, patches_flat, *, B, T, D, H, nh, hs, L, NC, eps=1e-5):
    """Single pallas_call for the whole ViT forward. patches_flat: (B*(T-1), F)."""
    kern = functools.partial(_vit_fused_kernel, B=B, T=T, D=D, H=H, nh=nh, hs=hs,
                             L=L, eps=float(eps))
    vmem = pl.BlockSpec(memory_space=pltpu.MemorySpace.VMEM)
    return pl.pallas_call(
        kern,
        out_shape=jax.ShapeDtypeStruct((B, NC), jnp.float32),
        in_specs=[vmem] * 17,
        out_specs=vmem,
        scratch_shapes=[
            pltpu.VMEM((B * T, D), jnp.float32),   # embedding slab
            pltpu.VMEM((B * T, D), jnp.float32),   # per-layer attention slab
        ],
    )(patches_flat, fp['patch_w'], fp['emb_add'],
      fp['ln1_g'], fp['ln1_b'], fp['wqkv'], fp['bqkv'], fp['wo'], fp['bo'],
      fp['ln2_g'], fp['ln2_b'], fp['w1'], fp['b1'], fp['w2'], fp['b2'],
      fp['clf_w'], fp['clf_b'])


# ------------------------------ Model (glue) ---------------------------------

CONFIG = dict(
    image_size=16,
    img_size=16,
    patch_size=4,
    num_channels=3,
    vector_dim=32,
    hidden_size=64,
    num_attention_heads=4,
    num_hidden_layers=2,
    num_classes=10,
    qkv_bias=True,
    droput_prob=0.0,
    hidden_dropout_prob=0.0,
    attention_probs_dropout_prob=0.0,
    initializer_range=0.02,
    use_lora=True,
    lora_rank=4,
    lora_alpha=16,
)


def init_params(key, cfg):
    """Raw parameters mirroring the PyTorch module structure."""
    std = cfg['initializer_range']
    D = cfg['vector_dim']
    H = cfg['hidden_size']
    C = cfg['num_channels']
    P = cfg['patch_size']
    nh = cfg['num_attention_heads']
    hs = D // nh
    r = cfg['lora_rank']
    nc = cfg['num_classes']
    num_patches = (cfg['image_size'] // P) ** 2

    keys = iter(jax.random.split(key, 512))
    nrm = lambda shape, s=std: s * jax.random.normal(next(keys), shape, jnp.float32)

    params = {
        'patch_w': nrm((C * P * P, D)),           # Conv2d weight as (in_feats, out)
        'patch_b': jnp.zeros((D,), jnp.float32),
        'cls_token': nrm((1, 1, D)),
        'pos_enc': nrm((1, num_patches + 1, D)),
        'layers': [],
        'clf_w': nrm((D, nc)),
        'clf_b': jnp.zeros((nc,), jnp.float32),
        'clf_lora_a': nrm((D, r), 0.1),
        'clf_lora_b': nrm((r, nc), 0.1),
    }

    for _ in range(cfg['num_hidden_layers']):
        heads = []
        for _ in range(nh):
            heads.append({
                'wq': nrm((D, hs)), 'bq': jnp.zeros((hs,), jnp.float32),
                'wk': nrm((D, hs)), 'bk': jnp.zeros((hs,), jnp.float32),
                'wv': nrm((D, hs)), 'bv': jnp.zeros((hs,), jnp.float32),
                'lora_q_a': nrm((D, r), 0.1), 'lora_q_b': nrm((r, hs), 0.1),
                'lora_v_a': nrm((D, r), 0.1), 'lora_v_b': nrm((r, hs), 0.1),
            })
        params['layers'].append({
            'ln1_g': jnp.ones((D,), jnp.float32), 'ln1_b': jnp.zeros((D,), jnp.float32),
            'heads': heads,
            'wo': nrm((nh * hs, D)), 'bo': jnp.zeros((D,), jnp.float32),
            'ln2_g': jnp.ones((D,), jnp.float32), 'ln2_b': jnp.zeros((D,), jnp.float32),
            'w1': nrm((D, H)), 'b1': jnp.zeros((H,), jnp.float32),
            'lora1_a': nrm((D, r), 0.1), 'lora1_b': nrm((r, H), 0.1),
            'w2': nrm((H, D)), 'b2': jnp.zeros((D,), jnp.float32),
            'lora2_a': nrm((H, r), 0.1), 'lora2_b': nrm((r, D), 0.1),
        })
    return params


def fold_params(params, cfg):
    """Fold LoRA into base weights, stack heads -> one QKV matrix, stack layers -> L dim."""
    scaling = cfg['lora_alpha'] / cfg['lora_rank']
    D = cfg['vector_dim']
    H = cfg['hidden_size']
    nc = cfg['num_classes']

    cls_pos0 = params['cls_token'][0] + params['pos_enc'][0, :1, :]          # (1, D)
    patch_add = params['patch_b'][None, :] + params['pos_enc'][0, 1:, :]     # (Np, D)

    ln1_g, ln1_b, wqkv_l, bqkv_l, wo_l, bo_l = [], [], [], [], [], []
    ln2_g, ln2_b, w1_l, b1_l, w2_l, b2_l = [], [], [], [], [], []

    for lp in params['layers']:
        wq = jnp.concatenate(
            [hp['wq'] + scaling * (hp['lora_q_a'] @ hp['lora_q_b']) for hp in lp['heads']],
            axis=1)
        wk = jnp.concatenate([hp['wk'] for hp in lp['heads']], axis=1)
        wv = jnp.concatenate(
            [hp['wv'] + scaling * (hp['lora_v_a'] @ hp['lora_v_b']) for hp in lp['heads']],
            axis=1)
        wqkv_l.append(jnp.concatenate([wq, wk, wv], axis=1))                 # (D, 3D)
        bqkv_l.append(jnp.concatenate(
            [jnp.concatenate([hp['bq'] for hp in lp['heads']]),
             jnp.concatenate([hp['bk'] for hp in lp['heads']]),
             jnp.concatenate([hp['bv'] for hp in lp['heads']])]).reshape(1, 3 * D))

        ln1_g.append(lp['ln1_g'].reshape(1, D)); ln1_b.append(lp['ln1_b'].reshape(1, D))
        wo_l.append(lp['wo']); bo_l.append(lp['bo'].reshape(1, D))
        ln2_g.append(lp['ln2_g'].reshape(1, D)); ln2_b.append(lp['ln2_b'].reshape(1, D))
        w1_l.append(lp['w1'] + scaling * (lp['lora1_a'] @ lp['lora1_b']))
        b1_l.append(lp['b1'].reshape(1, H))
        w2_l.append(lp['w2'] + scaling * (lp['lora2_a'] @ lp['lora2_b']))
        b2_l.append(lp['b2'].reshape(1, D))

    return {
        'patch_w': params['patch_w'],
        'emb_add': jnp.concatenate([cls_pos0, patch_add], axis=0),           # (T, D)
        'ln1_g': jnp.stack(ln1_g), 'ln1_b': jnp.stack(ln1_b),
        'wqkv': jnp.stack(wqkv_l), 'bqkv': jnp.stack(bqkv_l),
        'wo': jnp.stack(wo_l), 'bo': jnp.stack(bo_l),
        'ln2_g': jnp.stack(ln2_g), 'ln2_b': jnp.stack(ln2_b),
        'w1': jnp.stack(w1_l), 'b1': jnp.stack(b1_l),
        'w2': jnp.stack(w2_l), 'b2': jnp.stack(b2_l),
        'clf_w': params['clf_w'] + scaling * (params['clf_lora_a'] @ params['clf_lora_b']),
        'clf_b': params['clf_b'].reshape(1, nc),
    }


def extract_patches(x, patch_size):
    """NCHW -> (B, num_patches, C*p*p), matching Conv2d(stride=p) + flatten(2).transpose."""
    B, C, Hh, Ww = x.shape
    p = patch_size
    gh, gw = Hh // p, Ww // p
    x = x.reshape(B, C, gh, p, gw, p)
    x = jnp.transpose(x, (0, 2, 4, 1, 3, 5))        # (B, gh, gw, C, p, p)
    return x.reshape(B, gh * gw, C * p * p)


def vit_forward(fp, x, cfg):
    D = cfg['vector_dim']
    H = cfg['hidden_size']
    nh = cfg['num_attention_heads']
    hs = D // nh
    L = cfg['num_hidden_layers']
    NC = cfg['num_classes']
    Np = (cfg['image_size'] // cfg['patch_size']) ** 2
    T = Np + 1

    # Patch extraction (Conv2d-as-im2col data layout) stays in XLA — pure layout prep.
    patches = extract_patches(x.astype(jnp.float32), cfg['patch_size'])   # (B, Np, F)
    B = patches.shape[0]
    patches_flat = patches.reshape(B * Np, patches.shape[-1])             # (B*Np, F)

    # One fused pallas_call: embed + L encoder layers + CLS classification head.
    return vit_fused_pallas(fp, patches_flat, B=B, T=T, D=D, H=H, nh=nh, hs=hs,
                            L=L, NC=NC)


# ----------------------------------- Main -------------------------------------

if __name__ == "__main__":
    cfg = CONFIG
    key = jax.random.PRNGKey(0)
    pkey, xkey = jax.random.split(key)

    params = init_params(pkey, cfg)
    fparams = fold_params(params, cfg)        # one-time eval-mode weight prep

    x = jax.random.normal(
        xkey, (2, cfg['num_channels'], cfg['image_size'], cfg['image_size']),
        dtype=jnp.float32)                    # NCHW, like PyTorch

    fwd = jax.jit(functools.partial(vit_forward, cfg=cfg))
    logits = fwd(fparams, x)
    logits = jax.block_until_ready(logits)

    assert logits.shape == (2, cfg['num_classes'])
    assert bool(jnp.all(jnp.isfinite(logits)))
    print("KERNEL_OK")
</pallas_src>

<mosaic_0001>
module attributes {stable_mosaic.version = 11 : i64} {
  func.func @_vit_fused_kernel(%arg0: memref<32x48xf32, #tpu.memory_space<vmem>>, %arg1: memref<48x32xf32, #tpu.memory_space<vmem>>, %arg2: memref<17x32xf32, #tpu.memory_space<vmem>>, %arg3: memref<2x1x32xf32, #tpu.memory_space<vmem>>, %arg4: memref<2x1x32xf32, #tpu.memory_space<vmem>>, %arg5: memref<2x32x96xf32, #tpu.memory_space<vmem>>, %arg6: memref<2x1x96xf32, #tpu.memory_space<vmem>>, %arg7: memref<2x32x32xf32, #tpu.memory_space<vmem>>, %arg8: memref<2x1x32xf32, #tpu.memory_space<vmem>>, %arg9: memref<2x1x32xf32, #tpu.memory_space<vmem>>, %arg10: memref<2x1x32xf32, #tpu.memory_space<vmem>>, %arg11: memref<2x32x64xf32, #tpu.memory_space<vmem>>, %arg12: memref<2x1x64xf32, #tpu.memory_space<vmem>>, %arg13: memref<2x64x32xf32, #tpu.memory_space<vmem>>, %arg14: memref<2x1x32xf32, #tpu.memory_space<vmem>>, %arg15: memref<32x10xf32, #tpu.memory_space<vmem>>, %arg16: memref<1x10xf32, #tpu.memory_space<vmem>>, %arg17: memref<2x10xf32, #tpu.memory_space<vmem>>, %arg18: memref<34x32xf32, #tpu.memory_space<vmem>>, %arg19: memref<34x32xf32, #tpu.memory_space<vmem>>) attributes {dimension_semantics = [], scalar_prefetch = 0 : i64, scratch_operands = 2 : i64, tpu.core_type = #tpu.core_type<tc>} {
    %c0 = arith.constant 0 : index
    %c0_0 = arith.constant 0 : index
    %0 = vector.load %arg0[%c0, %c0_0] : memref<32x48xf32, #tpu.memory_space<vmem>>, vector<32x48xf32>
    %c0_1 = arith.constant 0 : index
    %c0_2 = arith.constant 0 : index
    %1 = vector.load %arg1[%c0_1, %c0_2] : memref<48x32xf32, #tpu.memory_space<vmem>>, vector<48x32xf32>
    %cst = arith.constant dense<0.000000e+00> : vector<32x32xf32>
    %2 = tpu.matmul %0, %1, %cst {dimension_numbers = #tpu.dot_dimension_numbers<[1], [0], [0], [1], [0, 0, 1, 1], [], []>} : vector<32x48xf32>, vector<48x32xf32>, vector<32x32xf32> -> vector<32x32xf32>
    %c0_3 = arith.constant 0 : index
    %c0_4 = arith.constant 0 : index
    %3 = vector.load %arg2[%c0_3, %c0_4] : memref<17x32xf32, #tpu.memory_space<vmem>>, vector<17x32xf32>
    %4 = vector.extract_strided_slice %3 {offsets = [0, 0], sizes = [1, 32], strides = [1, 1]} : vector<17x32xf32> to vector<1x32xf32>
    %c0_5 = arith.constant 0 : index
    %c0_6 = arith.constant 0 : index
    %5 = vector.load %arg18[%c0_5, %c0_6] : memref<34x32xf32, #tpu.memory_space<vmem>>, vector<1x32xf32>
    tpu.vector_store %arg18[%c0_5, %c0_6], %4 {strides = array<i32>} : memref<34x32xf32, #tpu.memory_space<vmem>>, vector<1x32xf32>,
    %6 = vector.extract_strided_slice %2 {offsets = [0, 0], sizes = [16, 32], strides = [1, 1]} : vector<32x32xf32> to vector<16x32xf32>
    %7 = vector.extract_strided_slice %3 {offsets = [1, 0], sizes = [16, 32], strides = [1, 1]} : vector<17x32xf32> to vector<16x32xf32>
    %8 = arith.addf %6, %7 : vector<16x32xf32>
    %c1 = arith.constant 1 : index
    %c0_7 = arith.constant 0 : index
    %9 = vector.load %arg18[%c1, %c0_7] : memref<34x32xf32, #tpu.memory_space<vmem>>, vector<16x32xf32>
    tpu.vector_store %arg18[%c1, %c0_7], %8 {strides = array<i32>} : memref<34x32xf32, #tpu.memory_space<vmem>>, vector<16x32xf32>,
    %10 = vector.extract_strided_slice %3 {offsets = [0, 0], sizes = [1, 32], strides = [1, 1]} : vector<17x32xf32> to vector<1x32xf32>
    %c17 = arith.constant 17 : index
    %c0_8 = arith.constant 0 : index
    %11 = vector.load %arg18[%c17, %c0_8] : memref<34x32xf32, #tpu.memory_space<vmem>>, vector<1x32xf32>
    tpu.vector_store %arg18[%c17, %c0_8], %10 {strides = array<i32>} : memref<34x32xf32, #tpu.memory_space<vmem>>, vector<1x32xf32>,
    %12 = vector.extract_strided_slice %2 {offsets = [16, 0], sizes = [16, 32], strides = [1, 1]} : vector<32x32xf32> to vector<16x32xf32>
    %13 = vector.extract_strided_slice %3 {offsets = [1, 0], sizes = [16, 32], strides = [1, 1]} : vector<17x32xf32> to vector<16x32xf32>
    %14 = arith.addf %12, %13 : vector<16x32xf32>
    %c18 = arith.constant 18 : index
    %c0_9 = arith.constant 0 : index
    %15 = vector.load %arg18[%c18, %c0_9] : memref<34x32xf32, #tpu.memory_space<vmem>>, vector<16x32xf32>
    tpu.vector_store %arg18[%c18, %c0_9], %14 {strides = array<i32>} : memref<34x32xf32, #tpu.memory_space<vmem>>, vector<16x32xf32>,
    %c0_10 = arith.constant 0 : index
    %c0_11 = arith.constant 0 : index
    %16 = vector.load %arg18[%c0_10, %c0_11] : memref<34x32xf32, #tpu.memory_space<vmem>>, vector<34x32xf32>
    %c0_12 = arith.constant 0 : index
    %c0_13 = arith.constant 0 : index
    %c0_14 = arith.constant 0 : index
    %17 = vector.load %arg3[%c0_12, %c0_13, %c0_14] : memref<2x1x32xf32, #tpu.memory_space<vmem>>, vector<1x1x32xf32>
    %18 = vector.shape_cast %17 : vector<1x1x32xf32> to vector<1x32xf32>
    %c0_15 = arith.constant 0 : index
    %c0_16 = arith.constant 0 : index
    %c0_17 = arith.constant 0 : index
    %19 = vector.load %arg4[%c0_15, %c0_16, %c0_17] : memref<2x1x32xf32, #tpu.memory_space<vmem>>, vector<1x1x32xf32>
    %20 = vector.shape_cast %19 : vector<1x1x32xf32> to vector<1x32xf32>
    %cst_18 = arith.constant dense<0.000000e+00> : vector<34xf32>
    %21 = vector.multi_reduction <add>, %16, %cst_18 [1] : vector<34x32xf32> to vector<34xf32>
    %22 = vector.shape_cast %21 : vector<34xf32> to vector<34x1xf32>
    %cst_19 = arith.constant 3.200000e+01 : f32
    %23 = vector.broadcast %cst_19 : f32 to vector<34x1xf32>
    %24 = arith.divf %22, %23 : vector<34x1xf32>
    %25 = vector.broadcast %24 : vector<34x1xf32> to vector<34x32xf32>
    %26 = arith.subf %16, %25 : vector<34x32xf32>
    %27 = arith.mulf %26, %26 : vector<34x32xf32>
    %cst_20 = arith.constant dense<0.000000e+00> : vector<34xf32>
    %28 = vector.multi_reduction <add>, %27, %cst_20 [1] : vector<34x32xf32> to vector<34xf32>
    %29 = vector.shape_cast %28 : vector<34xf32> to vector<34x1xf32>
    %cst_21 = arith.constant 3.200000e+01 : f32
    %30 = vector.broadcast %cst_21 : f32 to vector<34x1xf32>
    %31 = arith.divf %29, %30 : vector<34x1xf32>
    %32 = vector.broadcast %24 : vector<34x1xf32> to vector<34x32xf32>
    %33 = arith.subf %16, %32 : vector<34x32xf32>
    %cst_22 = arith.constant 9.99999974E-6 : f32
    %34 = vector.broadcast %cst_22 : f32 to vector<34x1xf32>
    %35 = arith.addf %31, %34 : vector<34x1xf32>
    %36 = math.rsqrt %35 : vector<34x1xf32>
    %37 = vector.broadcast %36 : vector<34x1xf32> to vector<34x32xf32>
    %38 = arith.mulf %33, %37 : vector<34x32xf32>
    %39 = vector.broadcast %18 : vector<1x32xf32> to vector<34x32xf32>
    %40 = arith.mulf %38, %39 : vector<34x32xf32>
    %41 = vector.broadcast %20 : vector<1x32xf32> to vector<34x32xf32>
    %42 = arith.addf %40, %41 : vector<34x32xf32>
    %c0_23 = arith.constant 0 : index
    %c0_24 = arith.constant 0 : index
    %c0_25 = arith.constant 0 : index
    %43 = vector.load %arg5[%c0_23, %c0_24, %c0_25] : memref<2x32x96xf32, #tpu.memory_space<vmem>>, vector<1x32x96xf32>
    %44 = vector.shape_cast %43 : vector<1x32x96xf32> to vector<32x96xf32>
    %cst_26 = arith.constant dense<0.000000e+00> : vector<34x96xf32>
    %45 = tpu.matmul %42, %44, %cst_26 {dimension_numbers = #tpu.dot_dimension_numbers<[1], [0], [0], [1], [0, 0, 1, 1], [], []>} : vector<34x32xf32>, vector<32x96xf32>, vector<34x96xf32> -> vector<34x96xf32>
    %c0_27 = arith.constant 0 : index
    %c0_28 = arith.constant 0 : index
    %c0_29 = arith.constant 0 : index
    %46 = vector.load %arg6[%c0_27, %c0_28, %c0_29] : memref<2x1x96xf32, #tpu.memory_space<vmem>>, vector<1x1x96xf32>
    %47 = vector.shape_cast %46 : vector<1x1x96xf32> to vector<1x96xf32>
    %48 = vector.broadcast %47 : vector<1x96xf32> to vector<34x96xf32>
    %49 = arith.addf %45, %48 : vector<34x96xf32>
    %50 = vector.extract_strided_slice %49 {offsets = [0, 0], sizes = [17, 96], strides = [1, 1]} : vector<34x96xf32> to vector<17x96xf32>
    %51 = vector.extract_strided_slice %50 {offsets = [0, 0], sizes = [17, 8], strides = [1, 1]} : vector<17x96xf32> to vector<17x8xf32>
    %52 = vector.extract_strided_slice %50 {offsets = [0, 32], sizes = [17, 8], strides = [1, 1]} : vector<17x96xf32> to vector<17x8xf32>
    %53 = vector.extract_strided_slice %50 {offsets = [0, 64], sizes = [17, 8], strides = [1, 1]} : vector<17x96xf32> to vector<17x8xf32>
    %cst_30 = arith.constant dense<0.000000e+00> : vector<17x17xf32>
    %54 = tpu.matmul %52, %51, %cst_30 {dimension_numbers = #tpu.dot_dimension_numbers<[1], [1], [0], [0], [0, 0, 1, 0], [], []>} : vector<17x8xf32>, vector<17x8xf32>, vector<17x17xf32> -> vector<17x17xf32>
    %cst_31 = arith.constant 0.353553385 : f32
    %55 = vector.broadcast %cst_31 : f32 to vector<17x17xf32>
    %56 = arith.mulf %54, %55 : vector<17x17xf32>
    %cst_32 = arith.constant dense<0xFF800000> : vector<17xf32>
    %57 = vector.multi_reduction <maximumf>, %56, %cst_32 [1] : vector<17x17xf32> to vector<17xf32>
    %58 = vector.shape_cast %57 : vector<17xf32> to vector<17x1xf32>
    %59 = vector.broadcast %58 : vector<17x1xf32> to vector<17x17xf32>
    %60 = arith.subf %56, %59 : vector<17x17xf32>
    %61 = math.exp %60 : vector<17x17xf32>
    %cst_33 = arith.constant dense<0.000000e+00> : vector<17xf32>
    %62 = vector.multi_reduction <add>, %61, %cst_33 [1] : vector<17x17xf32> to vector<17xf32>
    %63 = vector.shape_cast %62 : vector<17xf32> to vector<17x1xf32>
    %64 = vector.broadcast %63 : vector<17x1xf32> to vector<17x17xf32>
    %65 = arith.divf %61, %64 : vector<17x17xf32>
    %cst_34 = arith.constant dense<0.000000e+00> : vector<17x8xf32>
    %66 = tpu.matmul %65, %53, %cst_34 {dimension_numbers = #tpu.dot_dimension_numbers<[0], [0], [1], [1], [0, 1, 1, 1], [], []>} : vector<17x17xf32>, vector<17x8xf32>, vector<17x8xf32> -> vector<17x8xf32>
    %c0_35 = arith.constant 0 : index
    %c0_36 = arith.constant 0 : index
    %67 = vector.load %arg19[%c0_35, %c0_36] : memref<34x32xf32, #tpu.memory_space<vmem>>, vector<17x8xf32>
    tpu.vector_store %arg19[%c0_35, %c0_36], %66 {strides = array<i32>} : memref<34x32xf32, #tpu.memory_space<vmem>>, vector<17x8xf32>,
    %68 = vector.extract_strided_slice %50 {offsets = [0, 8], sizes = [17, 8], strides = [1, 1]} : vector<17x96xf32> to vector<17x8xf32>
    %69 = vector.extract_strided_slice %50 {offsets = [0, 40], sizes = [17, 8], strides = [1, 1]} : vector<17x96xf32> to vector<17x8xf32>
    %70 = vector.extract_strided_slice %50 {offsets = [0, 72], sizes = [17, 8], strides = [1, 1]} : vector<17x96xf32> to vector<17x8xf32>
    %cst_37 = arith.constant dense<0.000000e+00> : vector<17x17xf32>
    %71 = tpu.matmul %69, %68, %cst_37 {dimension_numbers = #tpu.dot_dimension_numbers<[1], [1], [0], [0], [0, 0, 1, 0], [], []>} : vector<17x8xf32>, vector<17x8xf32>, vector<17x17xf32> -> vector<17x17xf32>
    %cst_38 = arith.constant 0.353553385 : f32
    %72 = vector.broadcast %cst_38 : f32 to vector<17x17xf32>
    %73 = arith.mulf %71, %72 : vector<17x17xf32>
    %cst_39 = arith.constant dense<0xFF800000> : vector<17xf32>
    %74 = vector.multi_reduction <maximumf>, %73, %cst_39 [1] : vector<17x17xf32> to vector<17xf32>
    %75 = vector.shape_cast %74 : vector<17xf32> to vector<17x1xf32>
    %76 = vector.broadcast %75 : vector<17x1xf32> to vector<17x17xf32>
    %77 = arith.subf %73, %76 : vector<17x17xf32>
    %78 = math.exp %77 : vector<17x17xf32>
    %cst_40 = arith.constant dense<0.000000e+00> : vector<17xf32>
    %79 = vector.multi_reduction <add>, %78, %cst_40 [1] : vector<17x17xf32> to vector<17xf32>
    %80 = vector.shape_cast %79 : vector<17xf32> to vector<17x1xf32>
    %81 = vector.broadcast %80 : vector<17x1xf32> to vector<17x17xf32>
    %82 = arith.divf %78, %81 : vector<17x17xf32>
    %cst_41 = arith.constant dense<0.000000e+00> : vector<17x8xf32>
    %83 = tpu.matmul %82, %70, %cst_41 {dimension_numbers = #tpu.dot_dimension_numbers<[0], [0], [1], [1], [0, 1, 1, 1], [], []>} : vector<17x17xf32>, vector<17x8xf32>, vector<17x8xf32> -> vector<17x8xf32>
    %c0_42 = arith.constant 0 : index
    %c8 = arith.constant 8 : index
    %84 = vector.load %arg19[%c0_42, %c8] : memref<34x32xf32, #tpu.memory_space<vmem>>, vector<17x8xf32>
    tpu.vector_store %arg19[%c0_42, %c8], %83 {strides = array<i32>} : memref<34x32xf32, #tpu.memory_space<vmem>>, vector<17x8xf32>,
    %85 = vector.extract_strided_slice %50 {offsets = [0, 16], sizes = [17, 8], strides = [1, 1]} : vector<17x96xf32> to vector<17x8xf32>
    %86 = vector.extract_strided_slice %50 {offsets = [0, 48], sizes = [17, 8], strides = [1, 1]} : vector<17x96xf32> to vector<17x8xf32>
    %87 = vector.extract_strided_slice %50 {offsets = [0, 80], sizes = [17, 8], strides = [1, 1]} : vector<17x96xf32> to vector<17x8xf32>
    %cst_43 = arith.constant dense<0.000000e+00> : vector<17x17xf32>
    %88 = tpu.matmul %86, %85, %cst_43 {dimension_numbers = #tpu.dot_dimension_numbers<[1], [1], [0], [0], [0, 0, 1, 0], [], []>} : vector<17x8xf32>, vector<17x8xf32>, vector<17x17xf32> -> vector<17x17xf32>
    %cst_44 = arith.constant 0.353553385 : f32
    %89 = vector.broadcast %cst_44 : f32 to vector<17x17xf32>
    %90 = arith.mulf %88, %89 : vector<17x17xf32>
    %cst_45 = arith.constant dense<0xFF800000> : vector<17xf32>
    %91 = vector.multi_reduction <maximumf>, %90, %cst_45 [1] : vector<17x17xf32> to vector<17xf32>
    %92 = vector.shape_cast %91 : vector<17xf32> to vector<17x1xf32>
    %93 = vector.broadcast %92 : vector<17x1xf32> to vector<17x17xf32>
    %94 = arith.subf %90, %93 : vector<17x17xf32>
    %95 = math.exp %94 : vector<17x17xf32>
    %cst_46 = arith.constant dense<0.000000e+00> : vector<17xf32>
    %96 = vector.multi_reduction <add>, %95, %cst_46 [1] : vector<17x17xf32> to vector<17xf32>
    %97 = vector.shape_cast %96 : vector<17xf32> to vector<17x1xf32>
    %98 = vector.broadcast %97 : vector<17x1xf32> to vector<17x17xf32>
    %99 = arith.divf %95, %98 : vector<17x17xf32>
    %cst_47 = arith.constant dense<0.000000e+00> : vector<17x8xf32>
    %100 = tpu.matmul %99, %87, %cst_47 {dimension_numbers = #tpu.dot_dimension_numbers<[0], [0], [1], [1], [0, 1, 1, 1], [], []>} : vector<17x17xf32>, vector<17x8xf32>, vector<17x8xf32> -> vector<17x8xf32>
    %c0_48 = arith.constant 0 : index
    %c16 = arith.constant 16 : index
    %101 = vector.load %arg19[%c0_48, %c16] : memref<34x32xf32, #tpu.memory_space<vmem>>, vector<17x8xf32>
    tpu.vector_store %arg19[%c0_48, %c16], %100 {strides = array<i32>} : memref<34x32xf32, #tpu.memory_space<vmem>>, vector<17x8xf32>,
    %102 = vector.extract_strided_slice %50 {offsets = [0, 24], sizes = [17, 8], strides = [1, 1]} : vector<17x96xf32> to vector<17x8xf32>
    %103 = vector.extract_strided_slice %50 {offsets = [0, 56], sizes = [17, 8], strides = [1, 1]} : vector<17x96xf32> to vector<17x8xf32>
    %104 = vector.extract_strided_slice %50 {offsets = [0, 88], sizes = [17, 8], strides = [1, 1]} : vector<17x96xf32> to vector<17x8xf32>
    %cst_49 = arith.constant dense<0.000000e+00> : vector<17x17xf32>
    %105 = tpu.matmul %103, %102, %cst_49 {dimension_numbers = #tpu.dot_dimension_numbers<[1], [1], [0], [0], [0, 0, 1, 0], [], []>} : vector<17x8xf32>, vector<17x8xf32>, vector<17x17xf32> -> vector<17x17xf32>
    %cst_50 = arith.constant 0.353553385 : f32
    %106 = vector.broadcast %cst_50 : f32 to vector<17x17xf32>
    %107 = arith.mulf %105, %106 : vector<17x17xf32>
    %cst_51 = arith.constant dense<0xFF800000> : vector<17xf32>
    %108 = vector.multi_reduction <maximumf>, %107, %cst_51 [1] : vector<17x17xf32> to vector<17xf32>
    %109 = vector.shape_cast %108 : vector<17xf32> to vector<17x1xf32>
    %110 = vector.broadcast %109 : vector<17x1xf32> to vector<17x17xf32>
    %111 = arith.subf %107, %110 : vector<17x17xf32>
    %112 = math.exp %111 : vector<17x17xf32>
    %cst_52 = arith.constant dense<0.000000e+00> : vector<17xf32>
    %113 = vector.multi_reduction <add>, %112, %cst_52 [1] : vector<17x17xf32> to vector<17xf32>
    %114 = vector.shape_cast %113 : vector<17xf32> to vector<17x1xf32>
    %115 = vector.broadcast %114 : vector<17x1xf32> to vector<17x17xf32>
    %116 = arith.divf %112, %115 : vector<17x17xf32>
    %cst_53 = arith.constant dense<0.000000e+00> : vector<17x8xf32>
    %117 = tpu.matmul %116, %104, %cst_53 {dimension_numbers = #tpu.dot_dimension_numbers<[0], [0], [1], [1], [0, 1, 1, 1], [], []>} : vector<17x17xf32>, vector<17x8xf32>, vector<17x8xf32> -> vector<17x8xf32>
    %c0_54 = arith.constant 0 : index
    %c24 = arith.constant 24 : index
    %118 = vector.load %arg19[%c0_54, %c24] : memref<34x32xf32, #tpu.memory_space<vmem>>, vector<17x8xf32>
    tpu.vector_store %arg19[%c0_54, %c24], %117 {strides = array<i32>} : memref<34x32xf32, #tpu.memory_space<vmem>>, vector<17x8xf32>,
    %119 = vector.extract_strided_slice %49 {offsets = [17, 0], sizes = [17, 96], strides = [1, 1]} : vector<34x96xf32> to vector<17x96xf32>
    %120 = vector.extract_strided_slice %119 {offsets = [0, 0], sizes = [17, 8], strides = [1, 1]} : vector<17x96xf32> to vector<17x8xf32>
    %121 = vector.extract_strided_slice %119 {offsets = [0, 32], sizes = [17, 8], strides = [1, 1]} : vector<17x96xf32> to vector<17x8xf32>
    %122 = vector.extract_strided_slice %119 {offsets = [0, 64], sizes = [17, 8], strides = [1, 1]} : vector<17x96xf32> to vector<17x8xf32>
    %cst_55 = arith.constant dense<0.000000e+00> : vector<17x17xf32>
    %123 = tpu.matmul %121, %120, %cst_55 {dimension_numbers = #tpu.dot_dimension_numbers<[1], [1], [0], [0], [0, 0, 1, 0], [], []>} : vector<17x8xf32>, vector<17x8xf32>, vector<17x17xf32> -> vector<17x17xf32>
    %cst_56 = arith.constant 0.353553385 : f32
    %124 = vector.broadcast %cst_56 : f32 to vector<17x17xf32>
    %125 = arith.mulf %123, %124 : vector<17x17xf32>
    %cst_57 = arith.constant dense<0xFF800000> : vector<17xf32>
    %126 = vector.multi_reduction <maximumf>, %125, %cst_57 [1] : vector<17x17xf32> to vector<17xf32>
    %127 = vector.shape_cast %126 : vector<17xf32> to vector<17x1xf32>
    %128 = vector.broadcast %127 : vector<17x1xf32> to vector<17x17xf32>
    %129 = arith.subf %125, %128 : vector<17x17xf32>
    %130 = math.exp %129 : vector<17x17xf32>
    %cst_58 = arith.constant dense<0.000000e+00> : vector<17xf32>
    %131 = vector.multi_reduction <add>, %130, %cst_58 [1] : vector<17x17xf32> to vector<17xf32>
    %132 = vector.shape_cast %131 : vector<17xf32> to vector<17x1xf32>
    %133 = vector.broadcast %132 : vector<17x1xf32> to vector<17x17xf32>
    %134 = arith.divf %130, %133 : vector<17x17xf32>
    %cst_59 = arith.constant dense<0.000000e+00> : vector<17x8xf32>
    %135 = tpu.matmul %134, %122, %cst_59 {dimension_numbers = #tpu.dot_dimension_numbers<[0], [0], [1], [1], [0, 1, 1, 1], [], []>} : vector<17x17xf32>, vector<17x8xf32>, vector<17x8xf32> -> vector<17x8xf32>
    %c17_60 = arith.constant 17 : index
    %c0_61 = arith.constant 0 : index
    %136 = vector.load %arg19[%c17_60, %c0_61] : memref<34x32xf32, #tpu.memory_space<vmem>>, vector<17x8xf32>
    tpu.vector_store %arg19[%c17_60, %c0_61], %135 {strides = array<i32>} : memref<34x32xf32, #tpu.memory_space<vmem>>, vector<17x8xf32>,
    %137 = vector.extract_strided_slice %119 {offsets = [0, 8], sizes = [17, 8], strides = [1, 1]} : vector<17x96xf32> to vector<17x8xf32>
    %138 = vector.extract_strided_slice %119 {offsets = [0, 40], sizes = [17, 8], strides = [1, 1]} : vector<17x96xf32> to vector<17x8xf32>
    %139 = vector.extract_strided_slice %119 {offsets = [0, 72], sizes = [17, 8], strides = [1, 1]} : vector<17x96xf32> to vector<17x8xf32>
    %cst_62 = arith.constant dense<0.000000e+00> : vector<17x17xf32>
    %140 = tpu.matmul %138, %137, %cst_62 {dimension_numbers = #tpu.dot_dimension_numbers<[1], [1], [0], [0], [0, 0, 1, 0], [], []>} : vector<17x8xf32>, vector<17x8xf32>, vector<17x17xf32> -> vector<17x17xf32>
    %cst_63 = arith.constant 0.353553385 : f32
    %141 = vector.broadcast %cst_63 : f32 to vector<17x17xf32>
    %142 = arith.mulf %140, %141 : vector<17x17xf32>
    %cst_64 = arith.constant dense<0xFF800000> : vector<17xf32>
    %143 = vector.multi_reduction <maximumf>, %142, %cst_64 [1] : vector<17x17xf32> to vector<17xf32>
    %144 = vector.shape_cast %143 : vector<17xf32> to vector<17x1xf32>
    %145 = vector.broadcast %144 : vector<17x1xf32> to vector<17x17xf32>
    %146 = arith.subf %142, %145 : vector<17x17xf32>
    %147 = math.exp %146 : vector<17x17xf32>
    %cst_65 = arith.constant dense<0.000000e+00> : vector<17xf32>
    %148 = vector.multi_reduction <add>, %147, %cst_65 [1] : vector<17x17xf32> to vector<17xf32>
    %149 = vector.shape_cast %148 : vector<17xf32> to vector<17x1xf32>
    %150 = vector.broadcast %149 : vector<17x1xf32> to vector<17x17xf32>
    %151 = arith.divf %147, %150 : vector<17x17xf32>
    %cst_66 = arith.constant dense<0.000000e+00> : vector<17x8xf32>
    %152 = tpu.matmul %151, %139, %cst_66 {dimension_numbers = #tpu.dot_dimension_numbers<[0], [0], [1], [1], [0, 1, 1, 1], [], []>} : vector<17x17xf32>, vector<17x8xf32>, vector<17x8xf32> -> vector<17x8xf32>
    %c17_67 = arith.constant 17 : index
    %c8_68 = arith.constant 8 : index
    %153 = vector.load %arg19[%c17_67, %c8_68] : memref<34x32xf32, #tpu.memory_space<vmem>>, vector<17x8xf32>
    tpu.vector_store %arg19[%c17_67, %c8_68], %152 {strides = array<i32>} : memref<34x32xf32, #tpu.memory_space<vmem>>, vector<17x8xf32>,
    %154 = vector.extract_strided_slice %119 {offsets = [0, 16], sizes = [17, 8], strides = [1, 1]} : vector<17x96xf32> to vector<17x8xf32>
    %155 = vector.extract_strided_slice %119 {offsets = [0, 48], sizes = [17, 8], strides = [1, 1]} : vector<17x96xf32> to vector<17x8xf32>
    %156 = vector.extract_strided_slice %119 {offsets = [0, 80], sizes = [17, 8], strides = [1, 1]} : vector<17x96xf32> to vector<17x8xf32>
    %cst_69 = arith.constant dense<0.000000e+00> : vector<17x17xf32>
    %157 = tpu.matmul %155, %154, %cst_69 {dimension_numbers = #tpu.dot_dimension_numbers<[1], [1], [0], [0], [0, 0, 1, 0], [], []>} : vector<17x8xf32>, vector<17x8xf32>, vector<17x17xf32> -> vector<17x17xf32>
    %cst_70 = arith.constant 0.353553385 : f32
    %158 = vector.broadcast %cst_70 : f32 to vector<17x17xf32>
    %159 = arith.mulf %157, %158 : vector<17x17xf32>
    %cst_71 = arith.constant dense<0xFF800000> : vector<17xf32>
    %160 = vector.multi_reduction <maximumf>, %159, %cst_71 [1] : vector<17x17xf32> to vector<17xf32>
    %161 = vector.shape_cast %160 : vector<17xf32> to vector<17x1xf32>
    %162 = vector.broadcast %161 : vector<17x1xf32> to vector<17x17xf32>
    %163 = arith.subf %159, %162 : vector<17x17xf32>
    %164 = math.exp %163 : vector<17x17xf32>
    %cst_72 = arith.constant dense<0.000000e+00> : vector<17xf32>
    %165 = vector.multi_reduction <add>, %164, %cst_72 [1] : vector<17x17xf32> to vector<17xf32>
    %166 = vector.shape_cast %165 : vector<17xf32> to vector<17x1xf32>
    %167 = vector.broadcast %166 : vector<17x1xf32> to vector<17x17xf32>
    %168 = arith.divf %164, %167 : vector<17x17xf32>
    %cst_73 = arith.constant dense<0.000000e+00> : vector<17x8xf32>
    %169 = tpu.matmul %168, %156, %cst_73 {dimension_numbers = #tpu.dot_dimension_numbers<[0], [0], [1], [1], [0, 1, 1, 1], [], []>} : vector<17x17xf32>, vector<17x8xf32>, vector<17x8xf32> -> vector<17x8xf32>
    %c17_74 = arith.constant 17 : index
    %c16_75 = arith.constant 16 : index
    %170 = vector.load %arg19[%c17_74, %c16_75] : memref<34x32xf32, #tpu.memory_space<vmem>>, vector<17x8xf32>
    tpu.vector_store %arg19[%c17_74, %c16_75], %169 {strides = array<i32>} : memref<34x32xf32, #tpu.memory_space<vmem>>, vector<17x8xf32>,
    %171 = vector.extract_strided_slice %119 {offsets = [0, 24], sizes = [17, 8], strides = [1, 1]} : vector<17x96xf32> to vector<17x8xf32>
    %172 = vector.extract_strided_slice %119 {offsets = [0, 56], sizes = [17, 8], strides = [1, 1]} : vector<17x96xf32> to vector<17x8xf32>
    %173 = vector.extract_strided_slice %119 {offsets = [0, 88], sizes = [17, 8], strides = [1, 1]} : vector<17x96xf32> to vector<17x8xf32>
    %cst_76 = arith.constant dense<0.000000e+00> : vector<17x17xf32>
    %174 = tpu.matmul %172, %171, %cst_76 {dimension_numbers = #tpu.dot_dimension_numbers<[1], [1], [0], [0], [0, 0, 1, 0], [], []>} : vector<17x8xf32>, vector<17x8xf32>, vector<17x17xf32> -> vector<17x17xf32>
    %cst_77 = arith.constant 0.353553385 : f32
    %175 = vector.broadcast %cst_77 : f32 to vector<17x17xf32>
    %176 = arith.mulf %174, %175 : vector<17x17xf32>
    %cst_78 = arith.constant dense<0xFF800000> : vector<17xf32>
    %177 = vector.multi_reduction <maximumf>, %176, %cst_78 [1] : vector<17x17xf32> to vector<17xf32>
    %178 = vector.shape_cast %177 : vector<17xf32> to vector<17x1xf32>
    %179 = vector.broadcast %178 : vector<17x1xf32> to vector<17x17xf32>
    %180 = arith.subf %176, %179 : vector<17x17xf32>
    %181 = math.exp %180 : vector<17x17xf32>
    %cst_79 = arith.constant dense<0.000000e+00> : vector<17xf32>
    %182 = vector.multi_reduction <add>, %181, %cst_79 [1] : vector<17x17xf32> to vector<17xf32>
    %183 = vector.shape_cast %182 : vector<17xf32> to vector<17x1xf32>
    %184 = vector.broadcast %183 : vector<17x1xf32> to vector<17x17xf32>
    %185 = arith.divf %181, %184 : vector<17x17xf32>
    %cst_80 = arith.constant dense<0.000000e+00> : vector<17x8xf32>
    %186 = tpu.matmul %185, %173, %cst_80 {dimension_numbers = #tpu.dot_dimension_numbers<[0], [0], [1], [1], [0, 1, 1, 1], [], []>} : vector<17x17xf32>, vector<17x8xf32>, vector<17x8xf32> -> vector<17x8xf32>
    %c17_81 = arith.constant 17 : index
    %c24_82 = arith.constant 24 : index
    %187 = vector.load %arg19[%c17_81, %c24_82] : memref<34x32xf32, #tpu.memory_space<vmem>>, vector<17x8xf32>
    tpu.vector_store %arg19[%c17_81, %c24_82], %186 {strides = array<i32>} : memref<34x32xf32, #tpu.memory_space<vmem>>, vector<17x8xf32>,
    %c0_83 = arith.constant 0 : index
    %c0_84 = arith.constant 0 : index
    %188 = vector.load %arg19[%c0_83, %c0_84] : memref<34x32xf32, #tpu.memory_space<vmem>>, vector<34x32xf32>
    %c0_85 = arith.constant 0 : index
    %c0_86 = arith.constant 0 : index
    %c0_87 = arith.constant 0 : index
    %189 = vector.load %arg7[%c0_85, %c0_86, %c0_87] : memref<2x32x32xf32, #tpu.memory_space<vmem>>, vector<1x32x32xf32>
    %190 = vector.shape_cast %189 : vector<1x32x32xf32> to vector<32x32xf32>
    %cst_88 = arith.constant dense<0.000000e+00> : vector<34x32xf32>
    %191 = tpu.matmul %188, %190, %cst_88 {dimension_numbers = #tpu.dot_dimension_numbers<[1], [0], [0], [1], [0, 0, 1, 1], [], []>} : vector<34x32xf32>, vector<32x32xf32>, vector<34x32xf32> -> vector<34x32xf32>
    %c0_89 = arith.constant 0 : index
    %c0_90 = arith.constant 0 : index
    %c0_91 = arith.constant 0 : index
    %192 = vector.load %arg8[%c0_89, %c0_90, %c0_91] : memref<2x1x32xf32, #tpu.memory_space<vmem>>, vector<1x1x32xf32>
    %193 = vector.shape_cast %192 : vector<1x1x32xf32> to vector<1x32xf32>
    %194 = vector.broadcast %193 : vector<1x32xf32> to vector<34x32xf32>
    %195 = arith.addf %191, %194 : vector<34x32xf32>
    %196 = arith.addf %16, %195 : vector<34x32xf32>
    %c0_92 = arith.constant 0 : index
    %c0_93 = arith.constant 0 : index
    %c0_94 = arith.constant 0 : index
    %197 = vector.load %arg9[%c0_92, %c0_93, %c0_94] : memref<2x1x32xf32, #tpu.memory_space<vmem>>, vector<1x1x32xf32>
    %198 = vector.shape_cast %197 : vector<1x1x32xf32> to vector<1x32xf32>
    %c0_95 = arith.constant 0 : index
    %c0_96 = arith.constant 0 : index
    %c0_97 = arith.constant 0 : index
    %199 = vector.load %arg10[%c0_95, %c0_96, %c0_97] : memref<2x1x32xf32, #tpu.memory_space<vmem>>, vector<1x1x32xf32>
    %200 = vector.shape_cast %199 : vector<1x1x32xf32> to vector<1x32xf32>
    %cst_98 = arith.constant dense<0.000000e+00> : vector<34xf32>
    %201 = vector.multi_reduction <add>, %196, %cst_98 [1] : vector<34x32xf32> to vector<34xf32>
    %202 = vector.shape_cast %201 : vector<34xf32> to vector<34x1xf32>
    %cst_99 = arith.constant 3.200000e+01 : f32
    %203 = vector.broadcast %cst_99 : f32 to vector<34x1xf32>
    %204 = arith.divf %202, %203 : vector<34x1xf32>
    %205 = vector.broadcast %204 : vector<34x1xf32> to vector<34x32xf32>
    %206 = arith.subf %196, %205 : vector<34x32xf32>
    %207 = arith.mulf %206, %206 : vector<34x32xf32>
    %cst_100 = arith.constant dense<0.000000e+00> : vector<34xf32>
    %208 = vector.multi_reduction <add>, %207, %cst_100 [1] : vector<34x32xf32> to vector<34xf32>
    %209 = vector.shape_cast %208 : vector<34xf32> to vector<34x1xf32>
    %cst_101 = arith.constant 3.200000e+01 : f32
    %210 = vector.broadcast %cst_101 : f32 to vector<34x1xf32>
    %211 = arith.divf %209, %210 : vector<34x1xf32>
    %212 = vector.broadcast %204 : vector<34x1xf32> to vector<34x32xf32>
    %213 = arith.subf %196, %212 : vector<34x32xf32>
    %cst_102 = arith.constant 9.99999974E-6 : f32
    %214 = vector.broadcast %cst_102 : f32 to vector<34x1xf32>
    %215 = arith.addf %211, %214 : vector<34x1xf32>
    %216 = math.rsqrt %215 : vector<34x1xf32>
    %217 = vector.broadcast %216 : vector<34x1xf32> to vector<34x32xf32>
    %218 = arith.mulf %213, %217 : vector<34x32xf32>
    %219 = vector.broadcast %198 : vector<1x32xf32> to vector<34x32xf32>
    %220 = arith.mulf %218, %219 : vector<34x32xf32>
    %221 = vector.broadcast %200 : vector<1x32xf32> to vector<34x32xf32>
    %222 = arith.addf %220, %221 : vector<34x32xf32>
    %c0_103 = arith.constant 0 : index
    %c0_104 = arith.constant 0 : index
    %c0_105 = arith.constant 0 : index
    %223 = vector.load %arg11[%c0_103, %c0_104, %c0_105] : memref<2x32x64xf32, #tpu.memory_space<vmem>>, vector<1x32x64xf32>
    %224 = vector.shape_cast %223 : vector<1x32x64xf32> to vector<32x64xf32>
    %cst_106 = arith.constant dense<0.000000e+00> : vector<34x64xf32>
    %225 = tpu.matmul %222, %224, %cst_106 {dimension_numbers = #tpu.dot_dimension_numbers<[1], [0], [0], [1], [0, 0, 1, 1], [], []>} : vector<34x32xf32>, vector<32x64xf32>, vector<34x64xf32> -> vector<34x64xf32>
    %c0_107 = arith.constant 0 : index
    %c0_108 = arith.constant 0 : index
    %c0_109 = arith.constant 0 : index
    %226 = vector.load %arg12[%c0_107, %c0_108, %c0_109] : memref<2x1x64xf32, #tpu.memory_space<vmem>>, vector<1x1x64xf32>
    %227 = vector.shape_cast %226 : vector<1x1x64xf32> to vector<1x64xf32>
    %228 = vector.broadcast %227 : vector<1x64xf32> to vector<34x64xf32>
    %229 = arith.addf %225, %228 : vector<34x64xf32>
    %cst_110 = arith.constant 5.000000e-01 : f32
    %230 = vector.broadcast %cst_110 : f32 to vector<34x64xf32>
    %231 = arith.mulf %230, %229 : vector<34x64xf32>
    %cst_111 = arith.constant 4.471500e-02 : f32
    %232 = vector.broadcast %cst_111 : f32 to vector<34x64xf32>
    %233 = arith.mulf %232, %229 : vector<34x64xf32>
    %234 = arith.mulf %233, %229 : vector<34x64xf32>
    %235 = arith.mulf %234, %229 : vector<34x64xf32>
    %236 = arith.addf %229, %235 : vector<34x64xf32>
    %cst_112 = arith.constant 0.797884583 : f32
    %237 = vector.broadcast %cst_112 : f32 to vector<34x64xf32>
    %238 = arith.mulf %237, %236 : vector<34x64xf32>
    %239 = math.tanh %238 : vector<34x64xf32>
    %cst_113 = arith.constant 1.000000e+00 : f32
    %240 = vector.broadcast %cst_113 : f32 to vector<34x64xf32>
    %241 = arith.addf %240, %239 : vector<34x64xf32>
    %242 = arith.mulf %231, %241 : vector<34x64xf32>
    %c0_114 = arith.constant 0 : index
    %c0_115 = arith.constant 0 : index
    %c0_116 = arith.constant 0 : index
    %243 = vector.load %arg13[%c0_114, %c0_115, %c0_116] : memref<2x64x32xf32, #tpu.memory_space<vmem>>, vector<1x64x32xf32>
    %244 = vector.shape_cast %243 : vector<1x64x32xf32> to vector<64x32xf32>
    %cst_117 = arith.constant dense<0.000000e+00> : vector<34x32xf32>
    %245 = tpu.matmul %242, %244, %cst_117 {dimension_numbers = #tpu.dot_dimension_numbers<[1], [0], [0], [1], [0, 0, 1, 1], [], []>} : vector<34x64xf32>, vector<64x32xf32>, vector<34x32xf32> -> vector<34x32xf32>
    %c0_118 = arith.constant 0 : index
    %c0_119 = arith.constant 0 : index
    %c0_120 = arith.constant 0 : index
    %246 = vector.load %arg14[%c0_118, %c0_119, %c0_120] : memref<2x1x32xf32, #tpu.memory_space<vmem>>, vector<1x1x32xf32>
    %247 = vector.shape_cast %246 : vector<1x1x32xf32> to vector<1x32xf32>
    %248 = vector.broadcast %247 : vector<1x32xf32> to vector<34x32xf32>
    %249 = arith.addf %245, %248 : vector<34x32xf32>
    %250 = arith.addf %196, %249 : vector<34x32xf32>
    %c1_121 = arith.constant 1 : index
    %c0_122 = arith.constant 0 : index
    %c0_123 = arith.constant 0 : index
    %251 = vector.load %arg3[%c1_121, %c0_122, %c0_123] : memref<2x1x32xf32, #tpu.memory_space<vmem>>, vector<1x1x32xf32>
    %252 = vector.shape_cast %251 : vector<1x1x32xf32> to vector<1x32xf32>
    %c1_124 = arith.constant 1 : index
    %c0_125 = arith.constant 0 : index
    %c0_126 = arith.constant 0 : index
    %253 = vector.load %arg4[%c1_124, %c0_125, %c0_126] : memref<2x1x32xf32, #tpu.memory_space<vmem>>, vector<1x1x32xf32>
    %254 = vector.shape_cast %253 : vector<1x1x32xf32> to vector<1x32xf32>
    %cst_127 = arith.constant dense<0.000000e+00> : vector<34xf32>
    %255 = vector.multi_reduction <add>, %250, %cst_127 [1] : vector<34x32xf32> to vector<34xf32>
    %256 = vector.shape_cast %255 : vector<34xf32> to vector<34x1xf32>
    %cst_128 = arith.constant 3.200000e+01 : f32
    %257 = vector.broadcast %cst_128 : f32 to vector<34x1xf32>
    %258 = arith.divf %256, %257 : vector<34x1xf32>
    %259 = vector.broadcast %258 : vector<34x1xf32> to vector<34x32xf32>
    %260 = arith.subf %250, %259 : vector<34x32xf32>
    %261 = arith.mulf %260, %260 : vector<34x32xf32>
    %cst_129 = arith.constant dense<0.000000e+00> : vector<34xf32>
    %262 = vector.multi_reduction <add>, %261, %cst_129 [1] : vector<34x32xf32> to vector<34xf32>
    %263 = vector.shape_cast %262 : vector<34xf32> to vector<34x1xf32>
    %cst_130 = arith.constant 3.200000e+01 : f32
    %264 = vector.broadcast %cst_130 : f32 to vector<34x1xf32>
    %265 = arith.divf %263, %264 : vector<34x1xf32>
    %266 = vector.broadcast %258 : vector<34x1xf32> to vector<34x32xf32>
    %267 = arith.subf %250, %266 : vector<34x32xf32>
    %cst_131 = arith.constant 9.99999974E-6 : f32
    %268 = vector.broadcast %cst_131 : f32 to vector<34x1xf32>
    %269 = arith.addf %265, %268 : vector<34x1xf32>
    %270 = math.rsqrt %269 : vector<34x1xf32>
    %271 = vector.broadcast %270 : vector<34x1xf32> to vector<34x32xf32>
    %272 = arith.mulf %267, %271 : vector<34x32xf32>
    %273 = vector.broadcast %252 : vector<1x32xf32> to vector<34x32xf32>
    %274 = arith.mulf %272, %273 : vector<34x32xf32>
    %275 = vector.broadcast %254 : vector<1x32xf32> to vector<34x32xf32>
    %276 = arith.addf %274, %275 : vector<34x32xf32>
    %c1_132 = arith.constant 1 : index
    %c0_133 = arith.constant 0 : index
    %c0_134 = arith.constant 0 : index
    %277 = vector.load %arg5[%c1_132, %c0_133, %c0_134] : memref<2x32x96xf32, #tpu.memory_space<vmem>>, vector<1x32x96xf32>
    %278 = vector.shape_cast %277 : vector<1x32x96xf32> to vector<32x96xf32>
    %cst_135 = arith.constant dense<0.000000e+00> : vector<34x96xf32>
    %279 = tpu.matmul %276, %278, %cst_135 {dimension_numbers = #tpu.dot_dimension_numbers<[1], [0], [0], [1], [0, 0, 1, 1], [], []>} : vector<34x32xf32>, vector<32x96xf32>, vector<34x96xf32> -> vector<34x96xf32>
    %c1_136 = arith.constant 1 : index
    %c0_137 = arith.constant 0 : index
    %c0_138 = arith.constant 0 : index
    %280 = vector.load %arg6[%c1_136, %c0_137, %c0_138] : memref<2x1x96xf32, #tpu.memory_space<vmem>>, vector<1x1x96xf32>
    %281 = vector.shape_cast %280 : vector<1x1x96xf32> to vector<1x96xf32>
    %282 = vector.broadcast %281 : vector<1x96xf32> to vector<34x96xf32>
    %283 = arith.addf %279, %282 : vector<34x96xf32>
    %284 = vector.extract_strided_slice %283 {offsets = [0, 0], sizes = [17, 96], strides = [1, 1]} : vector<34x96xf32> to vector<17x96xf32>
    %285 = vector.extract_strided_slice %284 {offsets = [0, 0], sizes = [17, 8], strides = [1, 1]} : vector<17x96xf32> to vector<17x8xf32>
    %286 = vector.extract_strided_slice %284 {offsets = [0, 32], sizes = [17, 8], strides = [1, 1]} : vector<17x96xf32> to vector<17x8xf32>
    %287 = vector.extract_strided_slice %284 {offsets = [0, 64], sizes = [17, 8], strides = [1, 1]} : vector<17x96xf32> to vector<17x8xf32>
    %cst_139 = arith.constant dense<0.000000e+00> : vector<17x17xf32>
    %288 = tpu.matmul %286, %285, %cst_139 {dimension_numbers = #tpu.dot_dimension_numbers<[1], [1], [0], [0], [0, 0, 1, 0], [], []>} : vector<17x8xf32>, vector<17x8xf32>, vector<17x17xf32> -> vector<17x17xf32>
    %cst_140 = arith.constant 0.353553385 : f32
    %289 = vector.broadcast %cst_140 : f32 to vector<17x17xf32>
    %290 = arith.mulf %288, %289 : vector<17x17xf32>
    %cst_141 = arith.constant dense<0xFF800000> : vector<17xf32>
    %291 = vector.multi_reduction <maximumf>, %290, %cst_141 [1] : vector<17x17xf32> to vector<17xf32>
    %292 = vector.shape_cast %291 : vector<17xf32> to vector<17x1xf32>
    %293 = vector.broadcast %292 : vector<17x1xf32> to vector<17x17xf32>
    %294 = arith.subf %290, %293 : vector<17x17xf32>
    %295 = math.exp %294 : vector<17x17xf32>
    %cst_142 = arith.constant dense<0.000000e+00> : vector<17xf32>
    %296 = vector.multi_reduction <add>, %295, %cst_142 [1] : vector<17x17xf32> to vector<17xf32>
    %297 = vector.shape_cast %296 : vector<17xf32> to vector<17x1xf32>
    %298 = vector.broadcast %297 : vector<17x1xf32> to vector<17x17xf32>
    %299 = arith.divf %295, %298 : vector<17x17xf32>
    %cst_143 = arith.constant dense<0.000000e+00> : vector<17x8xf32>
    %300 = tpu.matmul %299, %287, %cst_143 {dimension_numbers = #tpu.dot_dimension_numbers<[0], [0], [1], [1], [0, 1, 1, 1], [], []>} : vector<17x17xf32>, vector<17x8xf32>, vector<17x8xf32> -> vector<17x8xf32>
    %c0_144 = arith.constant 0 : index
    %c0_145 = arith.constant 0 : index
    %301 = vector.load %arg19[%c0_144, %c0_145] : memref<34x32xf32, #tpu.memory_space<vmem>>, vector<17x8xf32>
    tpu.vector_store %arg19[%c0_144, %c0_145], %300 {strides = array<i32>} : memref<34x32xf32, #tpu.memory_space<vmem>>, vector<17x8xf32>,
    %302 = vector.extract_strided_slice %284 {offsets = [0, 8], sizes = [17, 8], strides = [1, 1]} : vector<17x96xf32> to vector<17x8xf32>
    %303 = vector.extract_strided_slice %284 {offsets = [0, 40], sizes = [17, 8], strides = [1, 1]} : vector<17x96xf32> to vector<17x8xf32>
    %304 = vector.extract_strided_slice %284 {offsets = [0, 72], sizes = [17, 8], strides = [1, 1]} : vector<17x96xf32> to vector<17x8xf32>
    %cst_146 = arith.constant dense<0.000000e+00> : vector<17x17xf32>
    %305 = tpu.matmul %303, %302, %cst_146 {dimension_numbers = #tpu.dot_dimension_numbers<[1], [1], [0], [0], [0, 0, 1, 0], [], []>} : vector<17x8xf32>, vector<17x8xf32>, vector<17x17xf32> -> vector<17x17xf32>
    %cst_147 = arith.constant 0.353553385 : f32
    %306 = vector.broadcast %cst_147 : f32 to vector<17x17xf32>
    %307 = arith.mulf %305, %306 : vector<17x17xf32>
    %cst_148 = arith.constant dense<0xFF800000> : vector<17xf32>
    %308 = vector.multi_reduction <maximumf>, %307, %cst_148 [1] : vector<17x17xf32> to vector<17xf32>
    %309 = vector.shape_cast %308 : vector<17xf32> to vector<17x1xf32>
    %310 = vector.broadcast %309 : vector<17x1xf32> to vector<17x17xf32>
    %311 = arith.subf %307, %310 : vector<17x17xf32>
    %312 = math.exp %311 : vector<17x17xf32>
    %cst_149 = arith.constant dense<0.000000e+00> : vector<17xf32>
    %313 = vector.multi_reduction <add>, %312, %cst_149 [1] : vector<17x17xf32> to vector<17xf32>
    %314 = vector.shape_cast %313 : vector<17xf32> to vector<17x1xf32>
    %315 = vector.broadcast %314 : vector<17x1xf32> to vector<17x17xf32>
    %316 = arith.divf %312, %315 : vector<17x17xf32>
    %cst_150 = arith.constant dense<0.000000e+00> : vector<17x8xf32>
    %317 = tpu.matmul %316, %304, %cst_150 {dimension_numbers = #tpu.dot_dimension_numbers<[0], [0], [1], [1], [0, 1, 1, 1], [], []>} : vector<17x17xf32>, vector<17x8xf32>, vector<17x8xf32> -> vector<17x8xf32>
    %c0_151 = arith.constant 0 : index
    %c8_152 = arith.constant 8 : index
    %318 = vector.load %arg19[%c0_151, %c8_152] : memref<34x32xf32, #tpu.memory_space<vmem>>, vector<17x8xf32>
    tpu.vector_store %arg19[%c0_151, %c8_152], %317 {strides = array<i32>} : memref<34x32xf32, #tpu.memory_space<vmem>>, vector<17x8xf32>,
    %319 = vector.extract_strided_slice %284 {offsets = [0, 16], sizes = [17, 8], strides = [1, 1]} : vector<17x96xf32> to vector<17x8xf32>
    %320 = vector.extract_strided_slice %284 {offsets = [0, 48], sizes = [17, 8], strides = [1, 1]} : vector<17x96xf32> to vector<17x8xf32>
    %321 = vector.extract_strided_slice %284 {offsets = [0, 80], sizes = [17, 8], strides = [1, 1]} : vector<17x96xf32> to vector<17x8xf32>
    %cst_153 = arith.constant dense<0.000000e+00> : vector<17x17xf32>
    %322 = tpu.matmul %320, %319, %cst_153 {dimension_numbers = #tpu.dot_dimension_numbers<[1], [1], [0], [0], [0, 0, 1, 0], [], []>} : vector<17x8xf32>, vector<17x8xf32>, vector<17x17xf32> -> vector<17x17xf32>
    %cst_154 = arith.constant 0.353553385 : f32
    %323 = vector.broadcast %cst_154 : f32 to vector<17x17xf32>
    %324 = arith.mulf %322, %323 : vector<17x17xf32>
    %cst_155 = arith.constant dense<0xFF800000> : vector<17xf32>
    %325 = vector.multi_reduction <maximumf>, %324, %cst_155 [1] : vector<17x17xf32> to vector<17xf32>
    %326 = vector.shape_cast %325 : vector<17xf32> to vector<17x1xf32>
    %327 = vector.broadcast %326 : vector<17x1xf32> to vector<17x17xf32>
    %328 = arith.subf %324, %327 : vector<17x17xf32>
    %329 = math.exp %328 : vector<17x17xf32>
    %cst_156 = arith.constant dense<0.000000e+00> : vector<17xf32>
    %330 = vector.multi_reduction <add>, %329, %cst_156 [1] : vector<17x17xf32> to vector<17xf32>
    %331 = vector.shape_cast %330 : vector<17xf32> to vector<17x1xf32>
    %332 = vector.broadcast %331 : vector<17x1xf32> to vector<17x17xf32>
    %333 = arith.divf %329, %332 : vector<17x17xf32>
    %cst_157 = arith.constant dense<0.000000e+00> : vector<17x8xf32>
    %334 = tpu.matmul %333, %321, %cst_157 {dimension_numbers = #tpu.dot_dimension_numbers<[0], [0], [1], [1], [0, 1, 1, 1], [], []>} : vector<17x17xf32>, vector<17x8xf32>, vector<17x8xf32> -> vector<17x8xf32>
    %c0_158 = arith.constant 0 : index
    %c16_159 = arith.constant 16 : index
    %335 = vector.load %arg19[%c0_158, %c16_159] : memref<34x32xf32, #tpu.memory_space<vmem>>, vector<17x8xf32>
    tpu.vector_store %arg19[%c0_158, %c16_159], %334 {strides = array<i32>} : memref<34x32xf32, #tpu.memory_space<vmem>>, vector<17x8xf32>,
    %336 = vector.extract_strided_slice %284 {offsets = [0, 24], sizes = [17, 8], strides = [1, 1]} : vector<17x96xf32> to vector<17x8xf32>
    %337 = vector.extract_strided_slice %284 {offsets = [0, 56], sizes = [17, 8], strides = [1, 1]} : vector<17x96xf32> to vector<17x8xf32>
    %338 = vector.extract_strided_slice %284 {offsets = [0, 88], sizes = [17, 8], strides = [1, 1]} : vector<17x96xf32> to vector<17x8xf32>
    %cst_160 = arith.constant dense<0.000000e+00> : vector<17x17xf32>
    %339 = tpu.matmul %337, %336, %cst_160 {dimension_numbers = #tpu.dot_dimension_numbers<[1], [1], [0], [0], [0, 0, 1, 0], [], []>} : vector<17x8xf32>, vector<17x8xf32>, vector<17x17xf32> -> vector<17x17xf32>
    %cst_161 = arith.constant 0.353553385 : f32
    %340 = vector.broadcast %cst_161 : f32 to vector<17x17xf32>
    %341 = arith.mulf %339, %340 : vector<17x17xf32>
    %cst_162 = arith.constant dense<0xFF800000> : vector<17xf32>
    %342 = vector.multi_reduction <maximumf>, %341, %cst_162 [1] : vector<17x17xf32> to vector<17xf32>
    %343 = vector.shape_cast %342 : vector<17xf32> to vector<17x1xf32>
    %344 = vector.broadcast %343 : vector<17x1xf32> to vector<17x17xf32>
    %345 = arith.subf %341, %344 : vector<17x17xf32>
    %346 = math.exp %345 : vector<17x17xf32>
    %cst_163 = arith.constant dense<0.000000e+00> : vector<17xf32>
    %347 = vector.multi_reduction <add>, %346, %cst_163 [1] : vector<17x17xf32> to vector<17xf32>
    %348 = vector.shape_cast %347 : vector<17xf32> to vector<17x1xf32>
    %349 = vector.broadcast %348 : vector<17x1xf32> to vector<17x17xf32>
    %350 = arith.divf %346, %349 : vector<17x17xf32>
    %cst_164 = arith.constant dense<0.000000e+00> : vector<17x8xf32>
    %351 = tpu.matmul %350, %338, %cst_164 {dimension_numbers = #tpu.dot_dimension_numbers<[0], [0], [1], [1], [0, 1, 1, 1], [], []>} : vector<17x17xf32>, vector<17x8xf32>, vector<17x8xf32> -> vector<17x8xf32>
    %c0_165 = arith.constant 0 : index
    %c24_166 = arith.constant 24 : index
    %352 = vector.load %arg19[%c0_165, %c24_166] : memref<34x32xf32, #tpu.memory_space<vmem>>, vector<17x8xf32>
    tpu.vector_store %arg19[%c0_165, %c24_166], %351 {strides = array<i32>} : memref<34x32xf32, #tpu.memory_space<vmem>>, vector<17x8xf32>,
    %353 = vector.extract_strided_slice %283 {offsets = [17, 0], sizes = [17, 96], strides = [1, 1]} : vector<34x96xf32> to vector<17x96xf32>
    %354 = vector.extract_strided_slice %353 {offsets = [0, 0], sizes = [17, 8], strides = [1, 1]} : vector<17x96xf32> to vector<17x8xf32>
    %355 = vector.extract_strided_slice %353 {offsets = [0, 32], sizes = [17, 8], strides = [1, 1]} : vector<17x96xf32> to vector<17x8xf32>
    %356 = vector.extract_strided_slice %353 {offsets = [0, 64], sizes = [17, 8], strides = [1, 1]} : vector<17x96xf32> to vector<17x8xf32>
    %cst_167 = arith.constant dense<0.000000e+00> : vector<17x17xf32>
    %357 = tpu.matmul %355, %354, %cst_167 {dimension_numbers = #tpu.dot_dimension_numbers<[1], [1], [0], [0], [0, 0, 1, 0], [], []>} : vector<17x8xf32>, vector<17x8xf32>, vector<17x17xf32> -> vector<17x17xf32>
    %cst_168 = arith.constant 0.353553385 : f32
    %358 = vector.broadcast %cst_168 : f32 to vector<17x17xf32>
    %359 = arith.mulf %357, %358 : vector<17x17xf32>
    %cst_169 = arith.constant dense<0xFF800000> : vector<17xf32>
    %360 = vector.multi_reduction <maximumf>, %359, %cst_169 [1] : vector<17x17xf32> to vector<17xf32>
    %361 = vector.shape_cast %360 : vector<17xf32> to vector<17x1xf32>
    %362 = vector.broadcast %361 : vector<17x1xf32> to vector<17x17xf32>
    %363 = arith.subf %359, %362 : vector<17x17xf32>
    %364 = math.exp %363 : vector<17x17xf32>
    %cst_170 = arith.constant dense<0.000000e+00> : vector<17xf32>
    %365 = vector.multi_reduction <add>, %364, %cst_170 [1] : vector<17x17xf32> to vector<17xf32>
    %366 = vector.shape_cast %365 : vector<17xf32> to vector<17x1xf32>
    %367 = vector.broadcast %366 : vector<17x1xf32> to vector<17x17xf32>
    %368 = arith.divf %364, %367 : vector<17x17xf32>
    %cst_171 = arith.constant dense<0.000000e+00> : vector<17x8xf32>
    %369 = tpu.matmul %368, %356, %cst_171 {dimension_numbers = #tpu.dot_dimension_numbers<[0], [0], [1], [1], [0, 1, 1, 1], [], []>} : vector<17x17xf32>, vector<17x8xf32>, vector<17x8xf32> -> vector<17x8xf32>
    %c17_172 = arith.constant 17 : index
    %c0_173 = arith.constant 0 : index
    %370 = vector.load %arg19[%c17_172, %c0_173] : memref<34x32xf32, #tpu.memory_space<vmem>>, vector<17x8xf32>
    tpu.vector_store %arg19[%c17_172, %c0_173], %369 {strides = array<i32>} : memref<34x32xf32, #tpu.memory_space<vmem>>, vector<17x8xf32>,
    %371 = vector.extract_strided_slice %353 {offsets = [0, 8], sizes = [17, 8], strides = [1, 1]} : vector<17x96xf32> to vector<17x8xf32>
    %372 = vector.extract_strided_slice %353 {offsets = [0, 40], sizes = [17, 8], strides = [1, 1]} : vector<17x96xf32> to vector<17x8xf32>
    %373 = vector.extract_strided_slice %353 {offsets = [0, 72], sizes = [17, 8], strides = [1, 1]} : vector<17x96xf32> to vector<17x8xf32>
    %cst_174 = arith.constant dense<0.000000e+00> : vector<17x17xf32>
    %374 = tpu.matmul %372, %371, %cst_174 {dimension_numbers = #tpu.dot_dimension_numbers<[1], [1], [0], [0], [0, 0, 1, 0], [], []>} : vector<17x8xf32>, vector<17x8xf32>, vector<17x17xf32> -> vector<17x17xf32>
    %cst_175 = arith.constant 0.353553385 : f32
    %375 = vector.broadcast %cst_175 : f32 to vector<17x17xf32>
    %376 = arith.mulf %374, %375 : vector<17x17xf32>
    %cst_176 = arith.constant dense<0xFF800000> : vector<17xf32>
    %377 = vector.multi_reduction <maximumf>, %376, %cst_176 [1] : vector<17x17xf32> to vector<17xf32>
    %378 = vector.shape_cast %377 : vector<17xf32> to vector<17x1xf32>
    %379 = vector.broadcast %378 : vector<17x1xf32> to vector<17x17xf32>
    %380 = arith.subf %376, %379 : vector<17x17xf32>
    %381 = math.exp %380 : vector<17x17xf32>
    %cst_177 = arith.constant dense<0.000000e+00> : vector<17xf32>
    %382 = vector.multi_reduction <add>, %381, %cst_177 [1] : vector<17x17xf32> to vector<17xf32>
    %383 = vector.shape_cast %382 : vector<17xf32> to vector<17x1xf32>
    %384 = vector.broadcast %383 : vector<17x1xf32> to vector<17x17xf32>
    %385 = arith.divf %381, %384 : vector<17x17xf32>
    %cst_178 = arith.constant dense<0.000000e+00> : vector<17x8xf32>
    %386 = tpu.matmul %385, %373, %cst_178 {dimension_numbers = #tpu.dot_dimension_numbers<[0], [0], [1], [1], [0, 1, 1, 1], [], []>} : vector<17x17xf32>, vector<17x8xf32>, vector<17x8xf32> -> vector<17x8xf32>
    %c17_179 = arith.constant 17 : index
    %c8_180 = arith.constant 8 : index
    %387 = vector.load %arg19[%c17_179, %c8_180] : memref<34x32xf32, #tpu.memory_space<vmem>>, vector<17x8xf32>
    tpu.vector_store %arg19[%c17_179, %c8_180], %386 {strides = array<i32>} : memref<34x32xf32, #tpu.memory_space<vmem>>, vector<17x8xf32>,
    %388 = vector.extract_strided_slice %353 {offsets = [0, 16], sizes = [17, 8], strides = [1, 1]} : vector<17x96xf32> to vector<17x8xf32>
    %389 = vector.extract_strided_slice %353 {offsets = [0, 48], sizes = [17, 8], strides = [1, 1]} : vector<17x96xf32> to vector<17x8xf32>
    %390 = vector.extract_strided_slice %353 {offsets = [0, 80], sizes = [17, 8], strides = [1, 1]} : vector<17x96xf32> to vector<17x8xf32>
    %cst_181 = arith.constant dense<0.000000e+00> : vector<17x17xf32>
    %391 = tpu.matmul %389, %388, %cst_181 {dimension_numbers = #tpu.dot_dimension_numbers<[1], [1], [0], [0], [0, 0, 1, 0], [], []>} : vector<17x8xf32>, vector<17x8xf32>, vector<17x17xf32> -> vector<17x17xf32>
    %cst_182 = arith.constant 0.353553385 : f32
    %392 = vector.broadcast %cst_182 : f32 to vector<17x17xf32>
    %393 = arith.mulf %391, %392 : vector<17x17xf32>
    %cst_183 = arith.constant dense<0xFF800000> : vector<17xf32>
    %394 = vector.multi_reduction <maximumf>, %393, %cst_183 [1] : vector<17x17xf32> to vector<17xf32>
    %395 = vector.shape_cast %394 : vector<17xf32> to vector<17x1xf32>
    %396 = vector.broadcast %395 : vector<17x1xf32> to vector<17x17xf32>
    %397 = arith.subf %393, %396 : vector<17x17xf32>
    %398 = math.exp %397 : vector<17x17xf32>
    %cst_184 = arith.constant dense<0.000000e+00> : vector<17xf32>
    %399 = vector.multi_reduction <add>, %398, %cst_184 [1] : vector<17x17xf32> to vector<17xf32>
    %400 = vector.shape_cast %399 : vector<17xf32> to vector<17x1xf32>
    %401 = vector.broadcast %400 : vector<17x1xf32> to vector<17x17xf32>
    %402 = arith.divf %398, %401 : vector<17x17xf32>
    %cst_185 = arith.constant dense<0.000000e+00> : vector<17x8xf32>
    %403 = tpu.matmul %402, %390, %cst_185 {dimension_numbers = #tpu.dot_dimension_numbers<[0], [0], [1], [1], [0, 1, 1, 1], [], []>} : vector<17x17xf32>, vector<17x8xf32>, vector<17x8xf32> -> vector<17x8xf32>
    %c17_186 = arith.constant 17 : index
    %c16_187 = arith.constant 16 : index
    %404 = vector.load %arg19[%c17_186, %c16_187] : memref<34x32xf32, #tpu.memory_space<vmem>>, vector<17x8xf32>
    tpu.vector_store %arg19[%c17_186, %c16_187], %403 {strides = array<i32>} : memref<34x32xf32, #tpu.memory_space<vmem>>, vector<17x8xf32>,
    %405 = vector.extract_strided_slice %353 {offsets = [0, 24], sizes = [17, 8], strides = [1, 1]} : vector<17x96xf32> to vector<17x8xf32>
    %406 = vector.extract_strided_slice %353 {offsets = [0, 56], sizes = [17, 8], strides = [1, 1]} : vector<17x96xf32> to vector<17x8xf32>
    %407 = vector.extract_strided_slice %353 {offsets = [0, 88], sizes = [17, 8], strides = [1, 1]} : vector<17x96xf32> to vector<17x8xf32>
    %cst_188 = arith.constant dense<0.000000e+00> : vector<17x17xf32>
    %408 = tpu.matmul %406, %405, %cst_188 {dimension_numbers = #tpu.dot_dimension_numbers<[1], [1], [0], [0], [0, 0, 1, 0], [], []>} : vector<17x8xf32>, vector<17x8xf32>, vector<17x17xf32> -> vector<17x17xf32>
    %cst_189 = arith.constant 0.353553385 : f32
    %409 = vector.broadcast %cst_189 : f32 to vector<17x17xf32>
    %410 = arith.mulf %408, %409 : vector<17x17xf32>
    %cst_190 = arith.constant dense<0xFF800000> : vector<17xf32>
    %411 = vector.multi_reduction <maximumf>, %410, %cst_190 [1] : vector<17x17xf32> to vector<17xf32>
    %412 = vector.shape_cast %411 : vector<17xf32> to vector<17x1xf32>
    %413 = vector.broadcast %412 : vector<17x1xf32> to vector<17x17xf32>
    %414 = arith.subf %410, %413 : vector<17x17xf32>
    %415 = math.exp %414 : vector<17x17xf32>
    %cst_191 = arith.constant dense<0.000000e+00> : vector<17xf32>
    %416 = vector.multi_reduction <add>, %415, %cst_191 [1] : vector<17x17xf32> to vector<17xf32>
    %417 = vector.shape_cast %416 : vector<17xf32> to vector<17x1xf32>
    %418 = vector.broadcast %417 : vector<17x1xf32> to vector<17x17xf32>
    %419 = arith.divf %415, %418 : vector<17x17xf32>
    %cst_192 = arith.constant dense<0.000000e+00> : vector<17x8xf32>
    %420 = tpu.matmul %419, %407, %cst_192 {dimension_numbers = #tpu.dot_dimension_numbers<[0], [0], [1], [1], [0, 1, 1, 1], [], []>} : vector<17x17xf32>, vector<17x8xf32>, vector<17x8xf32> -> vector<17x8xf32>
    %c17_193 = arith.constant 17 : index
    %c24_194 = arith.constant 24 : index
    %421 = vector.load %arg19[%c17_193, %c24_194] : memref<34x32xf32, #tpu.memory_space<vmem>>, vector<17x8xf32>
    tpu.vector_store %arg19[%c17_193, %c24_194], %420 {strides = array<i32>} : memref<34x32xf32, #tpu.memory_space<vmem>>, vector<17x8xf32>,
    %c0_195 = arith.constant 0 : index
    %c0_196 = arith.constant 0 : index
    %422 = vector.load %arg19[%c0_195, %c0_196] : memref<34x32xf32, #tpu.memory_space<vmem>>, vector<34x32xf32>
    %c1_197 = arith.constant 1 : index
    %c0_198 = arith.constant 0 : index
    %c0_199 = arith.constant 0 : index
    %423 = vector.load %arg7[%c1_197, %c0_198, %c0_199] : memref<2x32x32xf32, #tpu.memory_space<vmem>>, vector<1x32x32xf32>
    %424 = vector.shape_cast %423 : vector<1x32x32xf32> to vector<32x32xf32>
    %cst_200 = arith.constant dense<0.000000e+00> : vector<34x32xf32>
    %425 = tpu.matmul %422, %424, %cst_200 {dimension_numbers = #tpu.dot_dimension_numbers<[1], [0], [0], [1], [0, 0, 1, 1], [], []>} : vector<34x32xf32>, vector<32x32xf32>, vector<34x32xf32> -> vector<34x32xf32>
    %c1_201 = arith.constant 1 : index
    %c0_202 = arith.constant 0 : index
    %c0_203 = arith.constant 0 : index
    %426 = vector.load %arg8[%c1_201, %c0_202, %c0_203] : memref<2x1x32xf32, #tpu.memory_space<vmem>>, vector<1x1x32xf32>
    %427 = vector.shape_cast %426 : vector<1x1x32xf32> to vector<1x32xf32>
    %428 = vector.broadcast %427 : vector<1x32xf32> to vector<34x32xf32>
    %429 = arith.addf %425, %428 : vector<34x32xf32>
    %430 = arith.addf %250, %429 : vector<34x32xf32>
    %c1_204 = arith.constant 1 : index
    %c0_205 = arith.constant 0 : index
    %c0_206 = arith.constant 0 : index
    %431 = vector.load %arg9[%c1_204, %c0_205, %c0_206] : memref<2x1x32xf32, #tpu.memory_space<vmem>>, vector<1x1x32xf32>
    %432 = vector.shape_cast %431 : vector<1x1x32xf32> to vector<1x32xf32>
    %c1_207 = arith.constant 1 : index
    %c0_208 = arith.constant 0 : index
    %c0_209 = arith.constant 0 : index
    %433 = vector.load %arg10[%c1_207, %c0_208, %c0_209] : memref<2x1x32xf32, #tpu.memory_space<vmem>>, vector<1x1x32xf32>
    %434 = vector.shape_cast %433 : vector<1x1x32xf32> to vector<1x32xf32>
    %cst_210 = arith.constant dense<0.000000e+00> : vector<34xf32>
    %435 = vector.multi_reduction <add>, %430, %cst_210 [1] : vector<34x32xf32> to vector<34xf32>
    %436 = vector.shape_cast %435 : vector<34xf32> to vector<34x1xf32>
    %cst_211 = arith.constant 3.200000e+01 : f32
    %437 = vector.broadcast %cst_211 : f32 to vector<34x1xf32>
    %438 = arith.divf %436, %437 : vector<34x1xf32>
    %439 = vector.broadcast %438 : vector<34x1xf32> to vector<34x32xf32>
    %440 = arith.subf %430, %439 : vector<34x32xf32>
    %441 = arith.mulf %440, %440 : vector<34x32xf32>
    %cst_212 = arith.constant dense<0.000000e+00> : vector<34xf32>
    %442 = vector.multi_reduction <add>, %441, %cst_212 [1] : vector<34x32xf32> to vector<34xf32>
    %443 = vector.shape_cast %442 : vector<34xf32> to vector<34x1xf32>
    %cst_213 = arith.constant 3.200000e+01 : f32
    %444 = vector.broadcast %cst_213 : f32 to vector<34x1xf32>
    %445 = arith.divf %443, %444 : vector<34x1xf32>
    %446 = vector.broadcast %438 : vector<34x1xf32> to vector<34x32xf32>
    %447 = arith.subf %430, %446 : vector<34x32xf32>
    %cst_214 = arith.constant 9.99999974E-6 : f32
    %448 = vector.broadcast %cst_214 : f32 to vector<34x1xf32>
    %449 = arith.addf %445, %448 : vector<34x1xf32>
    %450 = math.rsqrt %449 : vector<34x1xf32>
    %451 = vector.broadcast %450 : vector<34x1xf32> to vector<34x32xf32>
    %452 = arith.mulf %447, %451 : vector<34x32xf32>
    %453 = vector.broadcast %432 : vector<1x32xf32> to vector<34x32xf32>
    %454 = arith.mulf %452, %453 : vector<34x32xf32>
    %455 = vector.broadcast %434 : vector<1x32xf32> to vector<34x32xf32>
    %456 = arith.addf %454, %455 : vector<34x32xf32>
    %c1_215 = arith.constant 1 : index
    %c0_216 = arith.constant 0 : index
    %c0_217 = arith.constant 0 : index
    %457 = vector.load %arg11[%c1_215, %c0_216, %c0_217] : memref<2x32x64xf32, #tpu.memory_space<vmem>>, vector<1x32x64xf32>
    %458 = vector.shape_cast %457 : vector<1x32x64xf32> to vector<32x64xf32>
    %cst_218 = arith.constant dense<0.000000e+00> : vector<34x64xf32>
    %459 = tpu.matmul %456, %458, %cst_218 {dimension_numbers = #tpu.dot_dimension_numbers<[1], [0], [0], [1], [0, 0, 1, 1], [], []>} : vector<34x32xf32>, vector<32x64xf32>, vector<34x64xf32> -> vector<34x64xf32>
    %c1_219 = arith.constant 1 : index
    %c0_220 = arith.constant 0 : index
    %c0_221 = arith.constant 0 : index
    %460 = vector.load %arg12[%c1_219, %c0_220, %c0_221] : memref<2x1x64xf32, #tpu.memory_space<vmem>>, vector<1x1x64xf32>
    %461 = vector.shape_cast %460 : vector<1x1x64xf32> to vector<1x64xf32>
    %462 = vector.broadcast %461 : vector<1x64xf32> to vector<34x64xf32>
    %463 = arith.addf %459, %462 : vector<34x64xf32>
    %cst_222 = arith.constant 5.000000e-01 : f32
    %464 = vector.broadcast %cst_222 : f32 to vector<34x64xf32>
    %465 = arith.mulf %464, %463 : vector<34x64xf32>
    %cst_223 = arith.constant 4.471500e-02 : f32
    %466 = vector.broadcast %cst_223 : f32 to vector<34x64xf32>
    %467 = arith.mulf %466, %463 : vector<34x64xf32>
    %468 = arith.mulf %467, %463 : vector<34x64xf32>
    %469 = arith.mulf %468, %463 : vector<34x64xf32>
    %470 = arith.addf %463, %469 : vector<34x64xf32>
    %cst_224 = arith.constant 0.797884583 : f32
    %471 = vector.broadcast %cst_224 : f32 to vector<34x64xf32>
    %472 = arith.mulf %471, %470 : vector<34x64xf32>
    %473 = math.tanh %472 : vector<34x64xf32>
    %cst_225 = arith.constant 1.000000e+00 : f32
    %474 = vector.broadcast %cst_225 : f32 to vector<34x64xf32>
    %475 = arith.addf %474, %473 : vector<34x64xf32>
    %476 = arith.mulf %465, %475 : vector<34x64xf32>
    %c1_226 = arith.constant 1 : index
    %c0_227 = arith.constant 0 : index
    %c0_228 = arith.constant 0 : index
    %477 = vector.load %arg13[%c1_226, %c0_227, %c0_228] : memref<2x64x32xf32, #tpu.memory_space<vmem>>, vector<1x64x32xf32>
    %478 = vector.shape_cast %477 : vector<1x64x32xf32> to vector<64x32xf32>
    %cst_229 = arith.constant dense<0.000000e+00> : vector<34x32xf32>
    %479 = tpu.matmul %476, %478, %cst_229 {dimension_numbers = #tpu.dot_dimension_numbers<[1], [0], [0], [1], [0, 0, 1, 1], [], []>} : vector<34x64xf32>, vector<64x32xf32>, vector<34x32xf32> -> vector<34x32xf32>
    %c1_230 = arith.constant 1 : index
    %c0_231 = arith.constant 0 : index
    %c0_232 = arith.constant 0 : index
    %480 = vector.load %arg14[%c1_230, %c0_231, %c0_232] : memref<2x1x32xf32, #tpu.memory_space<vmem>>, vector<1x1x32xf32>
    %481 = vector.shape_cast %480 : vector<1x1x32xf32> to vector<1x32xf32>
    %482 = vector.broadcast %481 : vector<1x32xf32> to vector<34x32xf32>
    %483 = arith.addf %479, %482 : vector<34x32xf32>
    %484 = arith.addf %430, %483 : vector<34x32xf32>
    %485 = vector.extract_strided_slice %484 {offsets = [0, 0], sizes = [1, 32], strides = [1, 1]} : vector<34x32xf32> to vector<1x32xf32>
    %486 = vector.extract_strided_slice %484 {offsets = [17, 0], sizes = [1, 32], strides = [1, 1]} : vector<34x32xf32> to vector<1x32xf32>
    %487 = tpu.concatenate %485, %486 in 0 : vector<1x32xf32>, vector<1x32xf32> -> vector<2x32xf32>
    %c0_233 = arith.constant 0 : index
    %c0_234 = arith.constant 0 : index
    %488 = vector.load %arg15[%c0_233, %c0_234] : memref<32x10xf32, #tpu.memory_space<vmem>>, vector<32x10xf32>
    %cst_235 = arith.constant dense<0.000000e+00> : vector<2x10xf32>
    %489 = tpu.matmul %487, %488, %cst_235 {dimension_numbers = #tpu.dot_dimension_numbers<[1], [0], [0], [1], [0, 0, 1, 1], [], []>} : vector<2x32xf32>, vector<32x10xf32>, vector<2x10xf32> -> vector<2x10xf32>
    %c0_236 = arith.constant 0 : index
    %c0_237 = arith.constant 0 : index
    %490 = vector.load %arg16[%c0_236, %c0_237] : memref<1x10xf32, #tpu.memory_space<vmem>>, vector<1x10xf32>
    %491 = vector.broadcast %490 : vector<1x10xf32> to vector<2x10xf32>
    %492 = arith.addf %489, %491 : vector<2x10xf32>
    %c0_238 = arith.constant 0 : index
    %c0_239 = arith.constant 0 : index
    %493 = vector.load %arg17[%c0_238, %c0_239] : memref<2x10xf32, #tpu.memory_space<vmem>>, vector<2x10xf32>
    tpu.vector_store %arg17[%c0_238, %c0_239], %492 {strides = array<i32>} : memref<2x10xf32, #tpu.memory_space<vmem>>, vector<2x10xf32>,
    return
  }
}

</mosaic_0001>

<bundles_post_ra>
// kernel: vit_forward.1
= control target key start
LH: loop header
LB: loop body
LE: loop exit
PB: predicated region body
PF: predicated region fallthrough
CT: control target
= control target key end

     0   :  { %s7390_s0 = inlined_call_operand.vmem [shape: f32[32,48], index: 0, kind: input, shape index: {}]   ;;  %s7391_s1 = inlined_call_operand.vmem [shape: f32[48,32], index: 1, kind: input, shape index: {}]   ;;  %s7392_s2 = inlined_call_operand.vmem [shape: f32[17,32], index: 2, kind: input, shape index: {}]   ;;  %s7393_s3 = inlined_call_operand.vmem [shape: f32[2,1,32], index: 3, kind: input, shape index: {}]   ;;  %s7394_s4 = inlined_call_operand.vmem [shape: f32[2,1,32], index: 4, kind: input, shape index: {}]   ;;  %s7395_s5 = inlined_call_operand.vmem [shape: f32[2,32,96], index: 5, kind: input, shape index: {}]   ;;  %s7396_s6 = inlined_call_operand.vmem [shape: f32[2,1,96], index: 6, kind: input, shape index: {}]   ;;  %s7397_s7 = inlined_call_operand.vmem [shape: f32[2,32,32], index: 7, kind: input, shape index: {}]   ;;  %s7398_s8 = inlined_call_operand.vmem [shape: f32[2,1,32], index: 8, kind: input, shape index: {}]   ;;  %s7399_s9 = inlined_call_operand.vmem [shape: f32[2,1,32], index: 9, kind: input, shape index: {}]   ;;  %s7400_s10 = inlined_call_operand.vmem [shape: f32[2,1,32], index: 10, kind: input, shape index: {}]   ;;  %s7401_s11 = inlined_call_operand.vmem [shape: f32[2,32,64], index: 11, kind: input, shape index: {}]   ;;  %s7402_s12 = inlined_call_operand.vmem [shape: f32[2,1,64], index: 12, kind: input, shape index: {}]   ;;  %s7403_s13 = inlined_call_operand.vmem [shape: f32[2,64,32], index: 13, kind: input, shape index: {}]   ;;  %s7404_s14 = inlined_call_operand.vmem [shape: f32[2,1,32], index: 14, kind: input, shape index: {}]   ;;  %s7405_s15 = inlined_call_operand.vmem [shape: f32[32,10], index: 15, kind: input, shape index: {}]   ;;  %s7406_s16 = inlined_call_operand.vmem [shape: f32[1,10], index: 16, kind: input, shape index: {}]   ;;  %s7407_s17 = inlined_call_operand.hbm [shape: f32[2,10], index: 17, kind: output, shape index: {}]  }
   0x1   :  { %7437 = sst [smem:[#allocation12_spill]] %s7390_s0 }
   0x2   :  { %7438 = sst [smem:[#allocation13_spill]] %s7391_s1 }
   0x3   :  { %s7439_s26 = sld [smem:[#allocation13_spill]]  ;;  %vm67_vm0 = vcmask 392192  }
   0x4   :  { %s7440_s24 = sld [smem:[#allocation12_spill]] }
   0x9   :  { %v66_v0 = vld [vmem:[%s7439_s26 + $0x28] sm:$0xff]  ;;  %v65_v1 = vld [vmem:[%s7439_s26 + $0x20] sm:$0xff]  ;;  %v64_v2 = vld [vmem:[%s7439_s26 + $0x18] sm:$0xff] }
   0xa   :  { %90 = vmatpush.msra.mxu0 %v66_v0  ;;  %v63_v3 = vld [vmem:[%s7439_s26 + $0x10] sm:$0xff]  ;;  %v62_v4 = vld [vmem:[%s7439_s26 + $0x8] sm:$0xff]  ;;  %v61_v5 = vld [vmem:[%s7439_s26] sm:$0xff] }
   0xb   :  { %v57_v6 = vld [vmem:[%s7440_s24] sm:$0xff] }
   0xc   :  { %91 = vmatpush.msra.mxu0 %v65_v1 }
   0xe   :  { %92 = vmatpush.msra.mxu0 %v64_v2 }
  0x10   :  { %93 = vmatpush.msra.mxu0 %v63_v3 }
  0x12   :  { %94 = vmatpush.msra.mxu0 %v62_v4 }
  0x13   :  { %22 = vsyncpa [#allocation5], 0  ;;  %v58_v7 = vld [vmem:[%s7440_s24 + $0x8] sm:$0xff]  ;;  %v59_v8 = vld [vmem:[%s7440_s24 + $0x10] sm:$0xff]  ;;  %vm112_vm1 = vcmask 253952   ;;  %vm117_vm2 = vcmask 1046528  }
  0x14   :  { %95 = vmatpush.msra.mxu0 %v61_v5  ;;  %v60_v9 = vld [vmem:[%s7440_s24 + $0x18] sm:$0xff]  ;;  %v109_v10 = vld [vmem:[%s7392_s2] sm:$0xff]  ;;  %v110_v11 = vld [vmem:[%s7392_s2 + $0x8] sm:$0xff]  ;;  %vm127_vm3 = vcmask 261120   ;;  %v5351_v34 = vmov 32.0   ;;  %vm154_vm5 = vcmask 254976  }
  0x15   :  { %4716 = vmatmul.msk.f32.vlgmr.msra.gmra.mxu0 %vm67_vm0, %v57_v6  ;;  %113 = vst.msk [vmem:[#allocation2] sm:$0x1] %vm112_vm1, %v109_v10  ;;  %v118_v12 = vrot.slane %v109_v10, 1  ;;  %v119_v13 = vrot.slane %v110_v11, 1  ;;  %v111_v15 = vld [vmem:[%s7392_s2 + $0x10] sm:$0x1]  ;;  %5066 = vrcp.f32 %v5351_v34 }
  0x16   :  { %130 = vst.msk [vmem:[#allocation2 + $0x11] sm:$0x1] %vm112_vm1, %v109_v10  ;;  %v121_v18 = vrot.slane %v111_v15, 1  ;;  %v279_v63 = vld [vmem:[%s7395_s5 + $0x18] sm:$0xff]  ;;  %v278_v0 = vld [vmem:[%s7395_s5 + $0x10] sm:$0xff]  ;;  %v277_v1 = vld [vmem:[%s7395_s5 + $0x8] sm:$0xff] }
  0x17   :  { %v120_v14 = vsel %vm117_vm2, %v118_v12, %v119_v13  ;;  %311 = vmatpush.msra.mxu1 %v279_v63  ;;  %v276_v2 = vld [vmem:[%s7395_s5] sm:$0xff]  ;;  %s5352_s20 = smov 96   ;;  %s5353_s21 = smov 88  }
  0x18   :  { %v122_v19 = vsel %vm117_vm2, %v119_v13, %v121_v18  ;;  %s5354_s2 = smov 120   ;;  %s7428_s22 = smov 80  }
  0x19   :  { %312 = vmatpush.msra.mxu1 %v278_v0  ;;  %s5356_s23 = smov 104   ;;  %s7412_s24 = smov 64  }
  0x1a   :  { %s5358_s25 = smov 72   ;;  %s5359_s27 = smov 112  }
  0x1b   :  { %v5067_v35 = vpop.eup %5066  ;;  %313 = vmatpush.msra.mxu1 %v277_v1  ;;  %s7416_s28 = smov 56   ;;  %s7414_s29 = smov 40  }
  0x1c   :  { %v159_v36 = vmul.f32 32.0, %v5067_v35  ;;  %vm163_vm4 = vweird.f32 %v5067_v35  ;;  %s7410_s26 = smov 48   ;;  %s7426_s0 = smov 16  }
  0x1d   :  { %4717 = vmatmul.msk.f32.gmra.mxu0 %vm67_vm0, %v58_v7  ;;  %314 = vmatpush.msra.mxu1 %v276_v2  ;;  %s7418_s30 = smov 8   ;;  %s7420_s18 = smov 24  }
  0x1e   :  { %v160_v37 = vsub.f32 1.0, %v159_v36  ;;  %s7447_s1 = smov 56  }
  0x20   :  { %v161_v38 = vmul.f32 %v5067_v35, %v160_v37 }
  0x22   :  { %v162_v39 = vadd.f32 %v5067_v35, %v161_v38 }
  0x24   :  { %v5506_v40 = vsel %vm163_vm4, %v5067_v35, %v162_v39 }
  0x25   :  { %4718 = vmatmul.msk.f32.gmra.mxu0 %vm67_vm0, %v59_v8  ;;  %7441 = vst [vmem:[#allocation7_spill] sm:$0xff] %v5506_v40 }
  0x2d   :  { %4719 = vmatmul.msk.f32.gmra.mxu0 %vm67_vm0, %v60_v9 }
  0x92   :  { %v97_v16 = vpop.f32.mrf.mxu0 }
  0x93   :  { %v125_v17 = vadd.f32 %v120_v14, %v97_v16 }
  0x95   :  { %128 = vst.msk [vmem:[#allocation2 + $0x1] sm:$0xff] %vm127_vm3, %v125_v17 }
  0x9a   :  { %v100_v20 = vpop.f32.mrf.mxu0 }
  0x9b   :  { %v126_v21 = vadd.f32 %v122_v19, %v100_v20  ;;  %v5547_v20 = vld [vmem:[%s7393_s3] ss:$0 sm:$0xff] }
  0x9c   :  { %v135_v22 = vld [vmem:[#allocation2] sm:$0xff] }
  0x9d   :  { %129 = vst.msk [vmem:[#allocation2 + $0x9] sm:$0xff] %vm127_vm3, %v126_v21  ;;  %v142_v23 = vsel %vm127_vm3, %v135_v22, 0.0 }
  0x9e   :  { %143 = vadd.xlane.f32.xlu0 %v142_v23 }
  0xa2   :  { %v103_v24 = vpop.f32.mrf.mxu0 }
  0xa3   :  { %v131_v25 = vadd.f32 %v120_v14, %v103_v24  ;;  %v5552_v24 = vld [vmem:[%s7394_s4] ss:$0 sm:$0xff] }
  0xa4   :  { %v136_v26 = vld [vmem:[#allocation2 + $0x8] sm:$0xff] }
  0xa5   :  { %133 = vst.msk [vmem:[#allocation2 + $0x12] sm:$0xff] %vm127_vm3, %v131_v25  ;;  %v145_v27 = vsel %vm127_vm3, %v136_v26, 0.0 }
  0xa6   :  { %146 = vadd.xlane.f32.xlu0 %v145_v27 }
  0xaa   :  { %v106_v28 = vpop.f32.mrf.mxu0 }
  0xab   :  { %v132_v29 = vadd.f32 %v122_v19, %v106_v28 }
  0xac   :  { %v137_v30 = vld [vmem:[#allocation2 + $0x10] sm:$0xff] }
  0xad   :  { %134 = vst.msk [vmem:[#allocation2 + $0x1a] sm:$0xff] %vm127_vm3, %v132_v29  ;;  %v148_v31 = vsel %vm127_vm3, %v137_v30, 0.0 }
  0xae   :  { %149 = vadd.xlane.f32.xlu1 %v148_v31 }
  0xb4   :  { %v138_v32 = vld [vmem:[#allocation2 + $0x18] sm:$0xff]  ;;  %v139_v58 = vld [vmem:[#allocation2 + $0x20] sm:$0x3] }
  0xb5   :  { %v151_v33 = vsel %vm127_vm3, %v138_v32, 0.0  ;;  %v155_v60 = vsel %vm154_vm5, %v139_v58, 0.0 }
  0xb6   :  { %152 = vadd.xlane.f32.xlu0 %v151_v33 }
 0x111   :  { %v144_v41 = vpop.xlane.xlu0 %143 }
 0x112   :  { %v165_v42 = vmul.f32 %v5506_v40, %v144_v41 }
 0x114   :  { %v170_v43 = vsub.f32 %v135_v22, %v165_v42 }
 0x116   :  { %v175_v44 = vmul.f32 %v170_v43, %v170_v43 }
 0x118   :  { %v180_v45 = vsel %vm127_vm3, %v175_v44, 0.0 }
 0x119   :  { %v147_v46 = vpop.xlane.xlu0 %146  ;;  %181 = vadd.xlane.f32.xlu1 %v180_v45 }
 0x11a   :  { %v166_v47 = vmul.f32 %v5506_v40, %v147_v46 }
 0x11c   :  { %v5511_v48 = vsub.f32 %v136_v26, %v166_v47 }
 0x11e   :  { %v176_v49 = vmul.f32 %v5511_v48, %v5511_v48 }
 0x120   :  { %v183_v50 = vsel %vm127_vm3, %v176_v49, 0.0 }
 0x121   :  { %184 = vadd.xlane.f32.xlu2 %v183_v50  ;;  %v150_v51 = vpop.xlane.xlu1 %149 }
 0x122   :  { %v167_v52 = vmul.f32 %v5506_v40, %v150_v51 }
 0x124   :  { %v5517_v53 = vsub.f32 %v137_v30, %v167_v52 }
 0x126   :  { %v177_v54 = vmul.f32 %v5517_v53, %v5517_v53 }
 0x128   :  { %v186_v55 = vsel %vm127_vm3, %v177_v54, 0.0 }
 0x129   :  { %187 = vadd.xlane.f32.xlu2 %v186_v55  ;;  %v153_v56 = vpop.xlane.xlu0 %152 }
 0x12a   :  { %v168_v57 = vmul.f32 %v5506_v40, %v153_v56 }
 0x12c   :  { %v5523_v59 = vsub.f32 %v138_v32, %v168_v57 }
 0x12e   :  { %v178_v61 = vmul.f32 %v5523_v59, %v5523_v59 }
 0x130   :  { %v189_v62 = vsel %vm127_vm3, %v178_v61, 0.0 }
 0x131   :  { %156 = vadd.xlane.f32.xlu2 %v155_v60  ;;  %190 = vadd.xlane.f32.xlu1 %v189_v62 }
 0x18c   :  { %v182_v3 = vpop.xlane.xlu1 %181 }
 0x18d   :  { %v195_v4 = vmul.f32 %v182_v3, %v5506_v40  ;;  %v5580_v3 = vld [vmem:[%s7396_s6] ss:$0 sm:$0xff] }
 0x18f   :  { %v200_v5 = vadd.f32 1e-05, %v195_v4 }
 0x191   :  { %5068 = vrsqrt.f32 %v200_v5  ;;  %vm211_vm7 = vweird.f32 %v200_v5 }
 0x194   :  { %v185_v6 = vpop.xlane.xlu2 %184 }
 0x195   :  { %v196_v7 = vmul.f32 %v185_v6, %v5506_v40 }
 0x197   :  { %v5069_v8 = vpop.eup %5068  ;;  %v201_v9 = vadd.f32 1e-05, %v196_v7 }
 0x198   :  { %v206_v10 = vmul.f32 %v5069_v8, %v200_v5  ;;  %vm212_vm6 = vweird.f32 %v5069_v8 }
 0x199   :  { %5070 = vrsqrt.f32 %v201_v9  ;;  %vm213_vm8 = vmor %vm211_vm7, %vm212_vm6  ;;  %vm221_vm10 = vweird.f32 %v201_v9 }
 0x19a   :  { %v207_v11 = vmul.f32 %v5069_v8, %v206_v10 }
 0x19c   :  { %v208_v12 = vmul.f32 0.5, %v207_v11  ;;  %v188_v13 = vpop.xlane.xlu2 %187 }
 0x19d   :  { %v197_v14 = vmul.f32 %v188_v13, %v5506_v40 }
 0x19e   :  { %v209_v15 = vsub.f32 1.5, %v208_v12 }
 0x19f   :  { %v5071_v16 = vpop.eup %5070  ;;  %v202_v17 = vadd.f32 1e-05, %v197_v14 }
 0x1a0   :  { %v210_v18 = vmul.f32 %v5069_v8, %v209_v15  ;;  %v216_v19 = vmul.f32 %v5071_v16, %v201_v9  ;;  %vm222_vm9 = vweird.f32 %v5071_v16 }
 0x1a1   :  { %5072 = vrsqrt.f32 %v202_v17  ;;  %vm223_vm11 = vmor %vm221_vm10, %vm222_vm9  ;;  %vm231_vm13 = vweird.f32 %v202_v17  ;;  %vm505_vm9 = vcmask 1040384   ;;  %vm382_vm10 = vcmask 138240  }
 0x1a2   :  { %v217_v21 = vmul.f32 %v5071_v16, %v216_v19  ;;  %v214_v22 = vsel %vm213_vm8, %v5069_v8, %v210_v18  ;;  %vm340_vm8 = vcmask 64512  }
 0x1a3   :  { %v255_v23 = vmul.f32 %v214_v22, %v170_v43 }
 0x1a4   :  { %v218_v25 = vmul.f32 0.5, %v217_v21  ;;  %v157_v26 = vpop.xlane.xlu2 %156  ;;  %v191_v27 = vpop.xlane.xlu1 %190 }
 0x1a5   :  { %v169_v28 = vmul.f32 %v5506_v40, %v157_v26  ;;  %v198_v29 = vmul.f32 %v191_v27, %v5506_v40  ;;  %v263_v30 = vmul.f32 %v5547_v20, %v255_v23 }
 0x1a6   :  { %v219_v31 = vsub.f32 1.5, %v218_v25 }
 0x1a7   :  { %v5073_v32 = vpop.eup %5072  ;;  %v5557_v33 = vsub.f32 %v139_v58, %v169_v28  ;;  %v203_v34 = vadd.f32 1e-05, %v198_v29  ;;  %v271_v35 = vadd.f32 %v5552_v24, %v263_v30 }
 0x1a8   :  { %v220_v36 = vmul.f32 %v5071_v16, %v219_v31  ;;  %v226_v37 = vmul.f32 %v5073_v32, %v202_v17  ;;  %vm232_vm12 = vweird.f32 %v5073_v32 }
 0x1a9   :  { %5074 = vrsqrt.f32 %v203_v34  ;;  %4720 = vmatmul.msk.f32.vlgmr.msra.gmra.mxu1 %vm127_vm3, %v271_v35  ;;  %v179_v38 = vmul.f32 %v5557_v33, %v5557_v33  ;;  %vm233_vm14 = vmor %vm231_vm13, %vm232_vm12  ;;  %vm241_vm0 = vweird.f32 %v203_v34 }
 0x1aa   :  { %v227_v39 = vmul.f32 %v5073_v32, %v226_v37  ;;  %v224_v41 = vsel %vm223_vm11, %v5071_v16, %v220_v36  ;;  %vm389_vm11 = vcmask 131072  }
 0x1ab   :  { %v192_v42 = vsel %vm154_vm5, %v179_v38, 0.0  ;;  %v256_v43 = vmul.f32 %v224_v41, %v5511_v48 }
 0x1ac   :  { %v228_v44 = vmul.f32 0.5, %v227_v39  ;;  %193 = vadd.xlane.f32.xlu0 %v192_v42 }
 0x1ad   :  { %v264_v45 = vmul.f32 %v5547_v20, %v256_v43 }
 0x1ae   :  { %v229_v46 = vsub.f32 1.5, %v228_v44 }
 0x1af   :  { %v5075_v47 = vpop.eup %5074  ;;  %v272_v49 = vadd.f32 %v5552_v24, %v264_v45 }
 0x1b0   :  { %v230_v50 = vmul.f32 %v5073_v32, %v229_v46  ;;  %v236_v51 = vmul.f32 %v5075_v47, %v203_v34  ;;  %vm242_vm15 = vweird.f32 %v5075_v47 }
 0x1b1   :  { %4721 = vmatmul.msk.f32.gmra.mxu1 %vm127_vm3, %v272_v49  ;;  %vm243_vm1 = vmor %vm241_vm0, %vm242_vm15 }
 0x1b2   :  { %v237_v52 = vmul.f32 %v5075_v47, %v236_v51  ;;  %v234_v54 = vsel %vm233_vm14, %v5073_v32, %v230_v50 }
 0x1b3   :  { %v257_v55 = vmul.f32 %v234_v54, %v5517_v53 }
 0x1b4   :  { %v238_v48 = vmul.f32 0.5, %v237_v52 }
 0x1b5   :  { %v265_v56 = vmul.f32 %v5547_v20, %v257_v55 }
 0x1b6   :  { %v239_v57 = vsub.f32 1.5, %v238_v48 }
 0x1b7   :  { %v273_v58 = vadd.f32 %v5552_v24, %v265_v56 }
 0x1b8   :  { %v240_v60 = vmul.f32 %v5075_v47, %v239_v57 }
 0x1b9   :  { %4722 = vmatmul.msk.f32.gmra.mxu1 %vm127_vm3, %v273_v58 }
 0x1ba   :  { %v244_v61 = vsel %vm243_vm1, %v5075_v47, %v240_v60 }
 0x1bb   :  { %v258_v62 = vmul.f32 %v244_v61, %v5523_v59 }
 0x1bd   :  { %v266_v63 = vmul.f32 %v5547_v20, %v258_v62 }
 0x1bf   :  { %v274_v0 = vadd.f32 %v5552_v24, %v266_v63 }
 0x1c1   :  { %4723 = vmatmul.msk.f32.gmra.mxu1 %vm127_vm3, %v274_v0 }
 0x21f   :  { %v194_v53 = vpop.xlane.xlu0 %193 }
 0x220   :  { %v199_v1 = vmul.f32 %v194_v53, %v5506_v40 }
 0x222   :  { %v204_v2 = vadd.f32 1e-05, %v199_v1 }
 0x224   :  { %5076 = vrsqrt.f32 %v204_v2  ;;  %vm251_vm6 = vweird.f32 %v204_v2 }
 0x226   :  { %v316_v4 = vpop.f32.mrf.mxu1 }
 0x227   :  { %v317_v5 = vadd.f32 %v5580_v3, %v316_v4 }
 0x229   :  { %334 = vrot.lane.b32.xlu0 %v317_v5, %s5352_s20  ;;  %538 = vrot.lane.b32.xlu1 %v317_v5, %s5353_s21 }
 0x22a   :  { %v5077_v59 = vpop.eup %5076 }
 0x22b   :  { %v246_v6 = vmul.f32 %v5077_v59, %v204_v2  ;;  %vm252_vm4 = vweird.f32 %v5077_v59 }
 0x22c   :  { %vm253_vm7 = vmor %vm251_vm6, %vm252_vm4 }
 0x22d   :  { %v247_v7 = vmul.f32 %v5077_v59, %v246_v6 }
 0x22e   :  { %v319_v8 = vpop.f32.mrf.mxu1 }
 0x22f   :  { %v248_v9 = vmul.f32 0.5, %v247_v7  ;;  %v320_v10 = vadd.f32 %v5580_v3, %v319_v8 }
 0x231   :  { %v249_v11 = vsub.f32 1.5, %v248_v9  ;;  %546 = vrot.lane.b32.xlu2 %v320_v10, %s5354_s2  ;;  %544 = vrot.lane.b32.xlu0 %v317_v5, %s5354_s2  ;;  %v5588_v12 = vpack.i.bf16 %v317_v5, %v320_v10 }
 0x232   :  { %336 = vrot.lane.b32.xlu1 %v320_v10, %s5352_s20 }
 0x233   :  { %v250_v13 = vmul.f32 %v5077_v59, %v249_v11 }
 0x235   :  { %v254_v14 = vsel %vm253_vm7, %v5077_v59, %v250_v13 }
 0x236   :  { %v322_v15 = vpop.f32.mrf.mxu1  ;;  %v259_v16 = vmul.f32 %v254_v14, %v5557_v33 }
 0x237   :  { %v5593_v17 = vadd.f32 %v5580_v3, %v322_v15 }
 0x238   :  { %v267_v18 = vmul.f32 %v5547_v20, %v259_v16 }
 0x239   :  { %4725 = vmatpush.xpose.msk.msra.mxu2 %vm340_vm8, %v5593_v17  ;;  %759 = vrot.lane.b32.xlu2 %v320_v10, %s7428_s22  ;;  %v1197_v23 = vrot.slane %v5593_v17, 1 }
 0x23a   :  { %982 = vrot.lane.b32.xlu0 %v317_v5, %s5356_s23  ;;  %4970 = vrot.lane.b32.xlu1 %v5588_v12, %s7412_s24  ;;  %v275_v19 = vadd.f32 %v5552_v24, %v267_v18 }
 0x23c   :  { %4724 = vmatmul.msk.f32.gmra.mxu1 %vm127_vm3, %v275_v19 }
 0x23d   :  { %4726 = vmatpush.xpose.msk.msra.mxu2 %vm340_vm8, %v320_v10 }
 0x23e   :  { %v325_v20 = vpop.f32.mrf.mxu1 }
 0x23f   :  { %v326_v21 = vadd.f32 %v5580_v3, %v325_v20 }
 0x241   :  { %4727 = vmatpush.xpose.msk.msra.mxu2 %vm340_vm8, %v317_v5  ;;  %338 = vrot.lane.b32.xlu2 %v5593_v17, %s5352_s20  ;;  %v1198_v22 = vrot.slane %v326_v21, 1 }
 0x242   :  { %976 = vrot.lane.b32.xlu0 %v317_v5, %s5358_s25  ;;  %984 = vrot.lane.b32.xlu1 %v320_v10, %s5356_s23 }
 0x243   :  { %v5626_v24 = vsel %vm117_vm2, %v1197_v23, %v1198_v22 }
 0x249   :  { %492 = vrot.lane.b32.xlu2 %v5593_v17, %s7412_s24 }
 0x24a   :  { %763 = vrot.lane.b32.xlu0 %v317_v5, %s5359_s27  ;;  %765 = vrot.lane.b32.xlu1 %v320_v10, %s5359_s27 }
 0x252   :  { %757 = vrot.lane.b32.xlu0 %v317_v5, %s7428_s22  ;;  %978 = vrot.lane.b32.xlu1 %v320_v10, %s5358_s25 }
 0x25a   :  { %540 = vrot.lane.b32.xlu0 %v320_v10, %s5353_s21  ;;  %986 = vrot.lane.b32.xlu1 %v5593_v17, %s5356_s23 }
 0x262   :  { %548 = vrot.lane.b32.xlu0 %v5593_v17, %s5354_s2  ;;  %767 = vrot.lane.b32.xlu1 %v5593_v17, %s5359_s27 }
 0x26a   :  { %542 = vrot.lane.b32.xlu0 %v5593_v17, %s5353_s21  ;;  %1401 = vrot.lane.b32.xlu1 %v5626_v24, %s5353_s21 }
 0x272   :  { %980 = vrot.lane.b32.xlu0 %v5593_v17, %s5358_s25  ;;  %1841 = vrot.lane.b32.xlu1 %v5626_v24, %s5356_s23 }
 0x27a   :  { %761 = vrot.lane.b32.xlu0 %v5593_v17, %s7428_s22  ;;  %1835 = vrot.lane.b32.xlu1 %v5626_v24, %s5358_s25 }
 0x282   :  { %1407 = vrot.lane.b32.xlu0 %v5626_v24, %s5354_s2 }
 0x28a   :  { %1202 = vrot.lane.b32.xlu0 %v5626_v24, %s5352_s20 }
 0x28b   :  { %v547_v25 = vpop.permute.xlu2 %546 }
 0x292   :  { %1624 = vrot.lane.b32.xlu0 %v5626_v24, %s5359_s27 }
 0x293   :  { %v760_v26 = vpop.permute.xlu2 %759 }
 0x29b   :  { %v339_v27 = vpop.permute.xlu2 %338  ;;  %v5646_v28 = vpop.permute.xlu1 %538 }
 0x29c   :  { %v335_v29 = vpop.permute.xlu0 %334 }
 0x29d   :  { %4728 = vmatmul.msk.f32.vlgmr.msra.gmra.mxu2 %vm340_vm8, %v335_v29 }
 0x2a3   :  { %v493_v30 = vpop.permute.xlu2 %492 }
 0x2a4   :  { %v337_v31 = vpop.permute.xlu1 %336  ;;  %v545_v32 = vpop.permute.xlu0 %544  ;;  %4731 = vmatpush.msk.msrb.mxu2 %vm505_vm9, %v493_v30  ;;  %4949 = vmatpush.msk.msra.mxu3 %vm505_vm9, %v493_v30 }
 0x2a5   :  { %4729 = vmatmul.msk.f32.gmra.mxu2 %vm340_vm8, %v337_v31 }
 0x2ac   :  { %v4971_v33 = vpop.permute.xlu1 %4970  ;;  %v5652_v34 = vpop.permute.xlu0 %982 }
 0x2ad   :  { %4730 = vmatmul.msk.f32.gmra.mxu2 %vm340_vm8, %v339_v27  ;;  %v4972_v35 = vunpack.i.l.bf16 %v4971_v33  ;;  %v4973_v36 = vunpack.i.h.bf16 %v4971_v33 }
 0x2af   :  { %522 = vmatpush.msrb.mxu2 %v4972_v35  ;;  %4950 = vmatpush.msra.mxu3 %v4972_v35 }
 0x2b1   :  { %523 = vmatpush.msrb.mxu2 %v4973_v36  ;;  %4951 = vmatpush.msra.mxu3 %v4973_v36 }
 0x2b4   :  { %v5655_v37 = vpop.permute.xlu1 %984  ;;  %v5657_v38 = vpop.permute.xlu0 %976 }
 0x2b9   :  { %v328_v39 = vpop.f32.mrf.mxu1 }
 0x2ba   :  { %v329_v41 = vadd.f32 %v5580_v3, %v328_v39 }
 0x2bc   :  { %v5660_v42 = vrot.slane %v329_v41, 1  ;;  %v766_v43 = vpop.permute.xlu1 %765  ;;  %v764_v44 = vpop.permute.xlu0 %763 }
 0x2be   :  { %1405 = vrot.lane.b32.xlu0 %v5660_v42, %s5353_s21  ;;  %1411 = vrot.lane.b32.xlu1 %v5660_v42, %s5354_s2  ;;  %v5678_v50 = vsel %vm117_vm2, %v1198_v22, %v5660_v42 }
 0x2c4   :  { %v5666_v45 = vpop.permute.xlu1 %978  ;;  %v758_v46 = vpop.permute.xlu0 %757 }
 0x2c6   :  { %1628 = vrot.lane.b32.xlu0 %v5660_v42, %s5359_s27  ;;  %1845 = vrot.lane.b32.xlu1 %v5660_v42, %s5356_s23 }
 0x2cc   :  { %v5672_v47 = vpop.permute.xlu1 %986  ;;  %v5674_v49 = vpop.permute.xlu0 %540 }
 0x2ce   :  { %1206 = vrot.lane.b32.xlu0 %v5660_v42, %s5352_s20  ;;  %1409 = vrot.lane.b32.xlu1 %v5678_v50, %s5354_s2 }
 0x2d4   :  { %v768_v51 = vpop.permute.xlu1 %767  ;;  %v549_v52 = vpop.permute.xlu0 %548 }
 0x2d5   :  { %4735 = vmatpush.xpose.msk.msrb.mxu3 %vm340_vm8, %v549_v52  ;;  %4745 = vmatpush.xpose.msk.msrb.mxu0 %vm340_vm8, %v768_v51 }
 0x2d6   :  { %1204 = vrot.lane.b32.xlu0 %v5678_v50, %s5352_s20  ;;  %1403 = vrot.lane.b32.xlu1 %v5678_v50, %s5353_s21 }
 0x2d9   :  { %4736 = vmatpush.xpose.msk.msrb.mxu3 %vm340_vm8, %v547_v25  ;;  %4746 = vmatpush.xpose.msk.msrb.mxu0 %vm340_vm8, %v766_v43 }
 0x2dc   :  { %v5692_v54 = vpop.permute.xlu0 %542  ;;  %v5716_v58 = vpop.permute.xlu1 %1401 }
 0x2dd   :  { %4737 = vmatpush.xpose.msk.msrb.mxu3 %vm340_vm8, %v545_v32  ;;  %4747 = vmatpush.xpose.msk.msrb.mxu0 %vm340_vm8, %v764_v44 }
 0x2de   :  { %1843 = vrot.lane.b32.xlu1 %v5678_v50, %s5356_s23 }
 0x2e0   :  { %4748 = vmatmul.msk.f32.vlgmr.msrb.gmra.mxu0 %vm340_vm8, %v758_v46 }
 0x2e1   :  { %4765 = vmatpush.xpose.msk.msra.mxu0 %vm340_vm8, %v5660_v42 }
 0x2e4   :  { %v5703_v55 = vpop.permute.xlu0 %980  ;;  %v5718_v60 = vpop.permute.xlu1 %1841 }
 0x2e5   :  { %4766 = vmatpush.xpose.msk.msra.mxu0 %vm340_vm8, %v5678_v50 }
 0x2e6   :  { %1626 = vrot.lane.b32.xlu1 %v5678_v50, %s5359_s27 }
 0x2e8   :  { %4749 = vmatmul.msk.f32.gmra.mxu0 %vm340_vm8, %v760_v26 }
 0x2e9   :  { %4767 = vmatpush.xpose.msk.msra.mxu0 %vm340_vm8, %v5626_v24 }
 0x2ec   :  { %v762_v48 = vpop.permute.xlu0 %761  ;;  %v5721_v0 = vpop.permute.xlu1 %1835 }
 0x2ee   :  { %1837 = vrot.lane.b32.xlu1 %v5678_v50, %s5358_s25 }
 0x2f0   :  { %4750 = vmatmul.msk.f32.gmra.mxu0 %vm340_vm8, %v762_v48 }
 0x2f4   :  { %v5713_v56 = vpop.permute.xlu0 %1407 }
 0x2fc   :  { %v1203_v57 = vpop.permute.xlu0 %1202 }
 0x2fd   :  { %4768 = vmatmul.msk.f32.vlgmr.msra.gmra.mxu0 %vm340_vm8, %v1203_v57 }
 0x304   :  { %v1625_v1 = vpop.permute.xlu0 %1624 }
 0x320   :  { %v370_v61 = vpop.f32.mrf.mxu2 }
 0x321   :  { %v379_v62 = vmul.f32 0.35355338, %v370_v61 }
 0x323   :  { %v383_v63 = vsel %vm382_vm10, %v379_v62, -inf }
 0x324   :  { %384 = vmax.xlane.f32.xlu2 %v383_v63 }
 0x328   :  { %v373_v53 = vpop.f32.mrf.mxu2 }
 0x329   :  { %v380_v2 = vmul.f32 0.35355338, %v373_v53 }
 0x32b   :  { %v386_v3 = vsel %vm382_vm10, %v380_v2, -inf }
 0x32c   :  { %387 = vmax.xlane.f32.xlu1 %v386_v3 }
 0x330   :  { %v376_v4 = vpop.f32.mrf.mxu2  ;;  %v5724_v5 = vpop.permute.xlu1 %1411 }
 0x331   :  { %v381_v59 = vmul.f32 0.35355338, %v376_v4  ;;  %v5726_v6 = vpop.permute.xlu0 %1405 }
 0x333   :  { %v390_v7 = vsel %vm389_vm11, %v381_v59, -inf }
 0x334   :  { %391 = vmax.xlane.f32.xlu0 %v390_v7 }
 0x338   :  { %v5729_v8 = vpop.permute.xlu1 %1845 }
 0x339   :  { %v1629_v9 = vpop.permute.xlu0 %1628 }
 0x33a   :  { %4785 = vmatpush.xpose.msk.msrb.mxu0 %vm340_vm8, %v1629_v9 }
 0x340   :  { %v5732_v10 = vpop.permute.xlu1 %1409 }
 0x341   :  { %v1207_v11 = vpop.permute.xlu0 %1206 }
 0x345   :  { %1839 = vrot.lane.b32.xlu1 %v5660_v42, %s5358_s25 }
 0x348   :  { %1618 = vrot.lane.b32.xlu0 %v5626_v24, %s7428_s22  ;;  %v5738_v13 = vpop.permute.xlu1 %1403 }
 0x349   :  { %v1205_v14 = vpop.permute.xlu0 %1204 }
 0x34a   :  { %4769 = vmatmul.msk.f32.gmra.mxu0 %vm340_vm8, %v1205_v14 }
 0x350   :  { %v5741_v15 = vpop.permute.xlu1 %1843 }
 0x352   :  { %4770 = vmatmul.msk.f32.gmra.mxu0 %vm340_vm8, %v1207_v11 }
 0x358   :  { %v1627_v16 = vpop.permute.xlu1 %1626 }
 0x359   :  { %4786 = vmatpush.xpose.msk.msrb.mxu0 %vm340_vm8, %v1627_v16 }
 0x35d   :  { %4787 = vmatpush.xpose.msk.msrb.mxu0 %vm340_vm8, %v1625_v1  ;;  %v798_v18 = vpop.f32.mrf.mxu0 }
 0x35e   :  { %v807_v63 = vmul.f32 0.35355338, %v798_v18 }
 0x360   :  { %v5746_v20 = vpop.permute.xlu1 %1837 }
 0x365   :  { %v801_v19 = vpop.f32.mrf.mxu0 }
 0x366   :  { %v808_v4 = vmul.f32 0.35355338, %v801_v19 }
 0x368   :  { %v813_v7 = vsel %vm382_vm10, %v808_v4, -inf }
 0x36d   :  { %v804_v25 = vpop.f32.mrf.mxu0 }
 0x37a   :  { %v1237_v32 = vpop.f32.mrf.mxu0 }
 0x37b   :  { %v5752_v33 = vmul.f32 0.35355338, %v1237_v32 }
 0x37d   :  { %v1249_v44 = vsel %vm382_vm10, %v5752_v33, -inf }
 0x397   :  { %v385_v21 = vpop.xlane.xlu2 %384 }
 0x398   :  { %v393_v22 = vsub.f32 %v379_v62, %v385_v21  ;;  %v809_v62 = vmul.f32 0.35355338, %v804_v25 }
 0x39a   :  { %v396_v23 = vmul.f32 1.442695, %v393_v22  ;;  %v816_v53 = vsel %vm389_vm11, %v809_v62, -inf }
 0x39c   :  { %5078 = vpow2.f32 %v396_v23 }
 0x39f   :  { %v388_v26 = vpop.xlane.xlu1 %387 }
 0x3a0   :  { %v394_v27 = vsub.f32 %v380_v2, %v388_v26  ;;  %v810_v2 = vsel %vm382_vm10, %v807_v63, -inf }
 0x3a2   :  { %v5748_v29 = vpop.eup %5078  ;;  %v398_v30 = vmul.f32 1.442695, %v394_v27 }
 0x3a3   :  { %v402_v31 = vsel %vm382_vm10, %v5748_v29, 0.0 }
 0x3a4   :  { %5080 = vpow2.f32 %v398_v30  ;;  %403 = vadd.xlane.f32.xlu2 %v402_v31 }
 0x3a7   :  { %v392_v35 = vpop.xlane.xlu0 %391 }
 0x3a8   :  { %v395_v36 = vsub.f32 %v381_v59, %v392_v35 }
 0x3aa   :  { %v5754_v39 = vpop.eup %5080  ;;  %v400_v41 = vmul.f32 1.442695, %v395_v36 }
 0x3ab   :  { %v405_v43 = vsel %vm382_vm10, %v5754_v39, 0.0 }
 0x3ac   :  { %5082 = vpow2.f32 %v400_v41  ;;  %406 = vadd.xlane.f32.xlu1 %v405_v43  ;;  %1250 = vmax.xlane.f32.xlu2 %v1249_v44 }
 0x3b2   :  { %v5760_v46 = vpop.eup %5082 }
 0x3b3   :  { %v408_v51 = vsel %vm389_vm11, %v5760_v46, 0.0 }
 0x3b4   :  { %409 = vadd.xlane.f32.xlu0 %v408_v51 }
 0x3b7   :  { %v5787_v9 = vpop.permute.xlu1 %1839 }
 0x3ba   :  { %v1619_v52 = vpop.permute.xlu0 %1618 }
 0x3bb   :  { %4788 = vmatmul.msk.f32.vlgmr.msrb.gmra.mxu0 %vm340_vm8, %v1619_v52 }
 0x3c5   :  { %1622 = vrot.lane.b32.xlu1 %v5660_v42, %s7428_s22 }
 0x3c7   :  { %v1240_v48 = vpop.f32.mrf.mxu0 }
 0x3c8   :  { %v5767_v57 = vmul.f32 0.35355338, %v1240_v48  ;;  %1620 = vrot.lane.b32.xlu0 %v5678_v50, %s7428_s22 }
 0x3ca   :  { %v1252_v61 = vsel %vm382_vm10, %v5767_v57, -inf }
 0x3cb   :  { %1253 = vmax.xlane.f32.xlu2 %v1252_v61 }
 0x3cf   :  { %v1243_v1 = vpop.f32.mrf.mxu0 }
 0x3d0   :  { %v1248_v3 = vmul.f32 0.35355338, %v1243_v1 }
 0x3d2   :  { %v1255_v59 = vsel %vm389_vm11, %v1248_v3, -inf }
 0x3ef   :  { %817 = vmax.xlane.f32.xlu1 %v816_v53 }
 0x3f2   :  { %811 = vmax.xlane.f32.xlu0 %v810_v2 }
 0x3f7   :  { %1256 = vmax.xlane.f32.xlu1 %v1255_v59 }
 0x3fa   :  { %814 = vmax.xlane.f32.xlu0 %v813_v7 }
 0x40e   :  { %4975 = vrot.lane.b32.xlu0 %v5588_v12, %s7416_s28 }
 0x410   :  { %1137 = vrot.lane.b32.xlu1 %v5593_v17, %s7414_s29 }
 0x418   :  { %4980 = vrot.lane.b32.xlu1 %v5588_v12, %s7414_s29 }
 0x41f   :  { %v5791_v18 = vpop.xlane.xlu1 %406 }
 0x420   :  { %4985 = vrot.lane.b32.xlu1 %v5588_v12, %s7410_s26  ;;  %v5796_v12 = vpop.xlane.xlu2 %403  ;;  %vm431_vm1 = vweird.f32 %v5791_v18 }
 0x421   :  { %vm416_vm13 = vweird.f32 %v5796_v12 }
 0x427   :  { %v5789_v11 = vpop.xlane.xlu0 %409 }
 0x428   :  { %1562 = vrot.lane.b32.xlu1 %v5660_v42, %s7416_s28  ;;  %v1251_v23 = vpop.xlane.xlu2 %1250 }
 0x429   :  { %v1258_v27 = vsub.f32 %v5752_v33, %v1251_v23 }
 0x42b   :  { %v1261_v36 = vmul.f32 1.442695, %v1258_v27 }
 0x437   :  { %v1623_v22 = vpop.permute.xlu1 %1622 }
 0x438   :  { %v1659_v14 = vpop.f32.mrf.mxu0 }
 0x439   :  { %v1668_v16 = vmul.f32 0.35355338, %v1659_v14 }
 0x43a   :  { %v1621_v19 = vpop.permute.xlu0 %1620 }
 0x43b   :  { %4789 = vmatmul.msk.f32.gmra.mxu0 %vm340_vm8, %v1621_v19  ;;  %v1671_v21 = vsel %vm382_vm10, %v1668_v16, -inf }
 0x43c   :  { %1672 = vmax.xlane.f32.xlu2 %v1671_v21 }
 0x43e   :  { %v1254_v7 = vpop.xlane.xlu2 %1253 }
 0x443   :  { %4790 = vmatmul.msk.f32.gmra.mxu0 %vm340_vm8, %v1623_v22 }
 0x462   :  { %v818_v25 = vpop.xlane.xlu1 %817 }
 0x463   :  { %v821_v26 = vsub.f32 %v809_v62, %v818_v25 }
 0x465   :  { %v826_v30 = vmul.f32 1.442695, %v821_v26  ;;  %v812_v31 = vpop.xlane.xlu0 %811 }
 0x466   :  { %v819_v32 = vsub.f32 %v807_v63, %v812_v31 }
 0x467   :  { %5084 = vpow2.f32 %v826_v30 }
 0x468   :  { %v822_v35 = vmul.f32 1.442695, %v819_v32 }
 0x46a   :  { %5086 = vpow2.f32 %v822_v35  ;;  %v1257_v41 = vpop.xlane.xlu1 %1256  ;;  %v1259_v35 = vsub.f32 %v5767_v57, %v1254_v7 }
 0x46b   :  { %5088 = vpow2.f32 %v1261_v36  ;;  %v1260_v44 = vsub.f32 %v1248_v3, %v1257_v41 }
 0x46c   :  { %v1263_v36 = vmul.f32 1.442695, %v1259_v35 }
 0x46d   :  { %v5799_v43 = vpop.eup %5084  ;;  %v815_v51 = vpop.xlane.xlu0 %814  ;;  %v1265_v62 = vmul.f32 1.442695, %v1260_v44 }
 0x46e   :  { %v820_v52 = vsub.f32 %v808_v4, %v815_v51  ;;  %v834_v48 = vsel %vm389_vm11, %v5799_v43, 0.0 }
 0x46f   :  { %835 = vadd.xlane.f32.xlu1 %v834_v48 }
 0x470   :  { %v5803_v61 = vpop.eup %5086  ;;  %v824_v33 = vmul.f32 1.442695, %v820_v52 }
 0x471   :  { %v828_v63 = vsel %vm382_vm10, %v5803_v61, 0.0  ;;  %v5807_v53 = vpop.eup %5088 }
 0x472   :  { %5090 = vpow2.f32 %v824_v33  ;;  %829 = vadd.xlane.f32.xlu0 %v828_v63  ;;  %v1267_v1 = vsel %vm382_vm10, %v5807_v53, 0.0 }
 0x473   :  { %5092 = vpow2.f32 %v1265_v62 }
 0x477   :  { %1268 = vadd.xlane.f32.xlu1 %v1267_v1 }
 0x478   :  { %v5811_v2 = vpop.eup %5090 }
 0x479   :  { %v831_v3 = vsel %vm382_vm10, %v5811_v2, 0.0  ;;  %v5815_v4 = vpop.eup %5092 }
 0x47a   :  { %832 = vadd.xlane.f32.xlu0 %v831_v3  ;;  %v1273_v59 = vsel %vm389_vm11, %v5815_v4, 0.0 }
 0x47f   :  { %1274 = vadd.xlane.f32.xlu1 %v1273_v59 }
 0x480   :  { %v4976_v1 = vpop.permute.xlu0 %4975 }
 0x481   :  { %v4977_v59 = vunpack.i.l.bf16 %v4976_v1 }
 0x4af   :  { %v1673_v14 = vpop.xlane.xlu2 %1672 }
 0x4b0   :  { %v1680_v19 = vsub.f32 %v1668_v16, %v1673_v14  ;;  %v5831_v16 = vpack.i.bf16 %v5626_v24, %v5678_v50  ;;  %v4978_v14 = vunpack.i.h.bf16 %v4976_v1 }
 0x4b2   :  { %v1683_v21 = vmul.f32 1.442695, %v1680_v19 }
 0x4b4   :  { %5094 = vpow2.f32 %v1683_v21 }
 0x4b5   :  { %5096 = vpow2.f32 %v1263_v36 }
 0x4b8   :  { %v1662_v22 = vpop.f32.mrf.mxu0 }
 0x4b9   :  { %v1669_v23 = vmul.f32 0.35355338, %v1662_v22 }
 0x4ba   :  { %v5819_v25 = vpop.eup %5094 }
 0x4bb   :  { %v1689_v26 = vsel %vm382_vm10, %v5819_v25, 0.0  ;;  %v1674_v27 = vsel %vm382_vm10, %v1669_v23, -inf  ;;  %v5836_v41 = vpop.eup %5096 }
 0x4bc   :  { %1690 = vadd.xlane.f32.xlu1 %v1689_v26  ;;  %1675 = vmax.xlane.f32.xlu2 %v1674_v27  ;;  %v1270_v44 = vsel %vm382_vm10, %v5836_v41, 0.0 }
 0x4c0   :  { %v1665_v30 = vpop.f32.mrf.mxu0 }
 0x4c1   :  { %v1670_v31 = vmul.f32 0.35355338, %v1665_v30 }
 0x4c3   :  { %v1677_v32 = vsel %vm389_vm11, %v1670_v31, -inf }
 0x4c4   :  { %1678 = vmax.xlane.f32.xlu2 %v1677_v32 }
 0x4dc   :  { %699 = vrot.lane.b32.xlu2 %v5593_v17, %s7416_s28 }
 0x4e4   :  { %918 = vrot.lane.b32.xlu2 %v5593_v17, %s7410_s26  ;;  %v5840_v17 = vpop.permute.xlu1 %1137 }
 0x4ec   :  { %4990 = vrot.lane.b32.xlu2 %v5831_v16, %s7416_s28  ;;  %v5844_v57 = vpop.permute.xlu1 %4980  ;;  %s7450_s28 = smov 48  }
 0x4f4   :  { %v4986_v21 = vpop.permute.xlu1 %4985 }
 0x4f5   :  { %v4988_v26 = vunpack.i.h.bf16 %v4986_v21 }
 0x515   :  { %1271 = vadd.xlane.f32.xlu2 %v1270_v44 }
 0x52f   :  { %v1676_v51 = vpop.xlane.xlu2 %1675 }
 0x530   :  { %v1681_v52 = vsub.f32 %v1669_v23, %v1676_v51  ;;  %v4987_v23 = vunpack.i.l.bf16 %v4986_v21 }
 0x532   :  { %v1685_v48 = vmul.f32 1.442695, %v1681_v52 }
 0x534   :  { %5098 = vpow2.f32 %v1685_v48  ;;  %v422_v48 = vand.u32 2147483648, %v5796_v12 }
 0x536   :  { %v423_v1 = vor.u32 1.1754944e-38, %v422_v48 }
 0x537   :  { %v1679_v24 = vpop.xlane.xlu2 %1678 }
 0x538   :  { %v1682_v50 = vsub.f32 %v1670_v31, %v1679_v24  ;;  %v420_v24 = vand.u32 2147483647, %v5796_v12 }
 0x53a   :  { %v5842_v33 = vpop.eup %5098  ;;  %v1687_v62 = vmul.f32 1.442695, %v1682_v50  ;;  %vm421_vm15 = vcmp.eq.f32.partialorder %v420_v24, 8.507059e+37 }
 0x53b   :  { %v1692_v63 = vsel %vm382_vm10, %v5842_v33, 0.0 }
 0x53c   :  { %5100 = vpow2.f32 %v1687_v62  ;;  %1693 = vadd.xlane.f32.xlu1 %v1692_v63 }
 0x53d   :  { %5102 = vrcp.f32 %v5796_v12 }
 0x53e   :  { %5104 = vrcp.f32 %v5791_v18 }
 0x53f   :  { %v700_v3 = vpop.permute.xlu2 %699  ;;  %5106 = vrcp.f32 %v5789_v11 }
 0x540   :  { %4741 = vmatpush.msk.msra.mxu2 %vm505_vm9, %v700_v3 }
 0x542   :  { %v5849_v7 = vpop.eup %5100  ;;  %728 = vmatpush.msra.mxu2 %v4977_v59 }
 0x543   :  { %v1695_v19 = vsel %vm389_vm11, %v5849_v7, 0.0  ;;  %v5103_v27 = vpop.eup %5102 }
 0x544   :  { %1696 = vadd.xlane.f32.xlu2 %v1695_v19  ;;  %729 = vmatpush.msra.mxu2 %v4978_v14  ;;  %v412_v30 = vmul.f32 %v5103_v27, %v5796_v12  ;;  %v5105_v32 = vpop.eup %5104  ;;  %vm417_vm12 = vweird.f32 %v5103_v27  ;;  %v437_v19 = vand.u32 2147483648, %v5791_v18 }
 0x545   :  { %v427_v35 = vmul.f32 %v5105_v32, %v5791_v18  ;;  %v5107_v52 = vpop.eup %5106  ;;  %vm418_vm14 = vmor %vm416_vm13, %vm417_vm12  ;;  %vm432_vm0 = vweird.f32 %v5105_v32  ;;  %vm446_vm12 = vweird.f32 %v5789_v11 }
 0x546   :  { %v413_v31 = vsub.f32 1.0, %v412_v30  ;;  %v442_v50 = vmul.f32 %v5107_v52, %v5789_v11  ;;  %vm433_vm4 = vmor %vm431_vm1, %vm432_vm0  ;;  %vm447_vm7 = vweird.f32 %v5107_v52 }
 0x547   :  { %v919_v22 = vpop.permute.xlu2 %918  ;;  %v428_v44 = vsub.f32 1.0, %v427_v35  ;;  %vm448_vm13 = vmor %vm446_vm12, %vm447_vm7 }
 0x548   :  { %4751 = vmatpush.msk.msrb.mxu1 %vm505_vm9, %v919_v22  ;;  %v414_v36 = vmul.f32 %v5103_v27, %v413_v31  ;;  %v443_v59 = vsub.f32 1.0, %v442_v50  ;;  %v435_v22 = vand.u32 2147483647, %v5791_v18  ;;  %v452_v31 = vand.u32 2147483648, %v5789_v11 }
 0x549   :  { %v429_v63 = vmul.f32 %v5105_v32, %v428_v44 }
 0x54a   :  { %947 = vmatpush.msrb.mxu1 %v4987_v23  ;;  %v415_v51 = vadd.f32 %v5103_v27, %v414_v36  ;;  %v444_v23 = vmul.f32 %v5107_v52, %v443_v59  ;;  %vm436_vm6 = vcmp.eq.f32.partialorder %v435_v22, 8.507059e+37  ;;  %v453_v36 = vor.u32 1.1754944e-38, %v452_v31 }
 0x54b   :  { %v430_v14 = vadd.f32 %v5105_v32, %v429_v63 }
 0x54c   :  { %948 = vmatpush.msrb.mxu1 %v4988_v26  ;;  %v419_v62 = vsel %vm418_vm14, %v5103_v27, %v415_v51  ;;  %v438_v26 = vor.u32 1.1754944e-38, %v437_v19  ;;  %v445_v30 = vadd.f32 %v5107_v52, %v444_v23  ;;  %v830_v51 = vpop.xlane.xlu0 %829 }
 0x54d   :  { %v424_v3 = vsel %vm421_vm15, %v423_v1, %v419_v62  ;;  %v434_v12 = vsel %vm433_vm4, %v5105_v32, %v430_v14  ;;  %5108 = vrcp.f32 %v830_v51  ;;  %v848_v22 = vand.u32 2147483648, %v830_v51 }
 0x54e   :  { %v425_v21 = vmul.f32 %v5748_v29, %v424_v3  ;;  %v439_v27 = vsel %vm436_vm6, %v438_v26, %v434_v12  ;;  %v450_v29 = vand.u32 2147483647, %v5789_v11  ;;  %v449_v18 = vsel %vm448_vm13, %v5107_v52, %v445_v30 }
 0x54f   :  { %v440_v35 = vmul.f32 %v5754_v39, %v439_v27  ;;  %v5874_v48 = vpop.permute.xlu2 %4990  ;;  %v5876_v39 = vpop.permute.xlu1 %1562  ;;  %vm842_vm0 = vweird.f32 %v830_v51  ;;  %v846_v12 = vand.u32 2147483647, %v830_v51  ;;  %v849_v30 = vor.u32 1.1754944e-38, %v848_v22 }
 0x550   :  { %vm451_vm14 = vcmp.eq.f32.partialorder %v450_v29, 8.507059e+37  ;;  %v4982_v29 = vunpack.i.l.bf16 %v5844_v57 }
 0x551   :  { %v454_v32 = vsel %vm451_vm14, %v453_v36, %v449_v18  ;;  %vm847_vm4 = vcmp.eq.f32.partialorder %v846_v12, 8.507059e+37 }
 0x552   :  { %v455_v44 = vmul.f32 %v5760_v46, %v454_v32 }
 0x553   :  { %v5109_v11 = vpop.eup %5108 }
 0x554   :  { %v833_v24 = vpop.xlane.xlu0 %832  ;;  %v838_v50 = vmul.f32 %v5109_v11, %v830_v51  ;;  %vm843_vm15 = vweird.f32 %v5109_v11 }
 0x555   :  { %5110 = vrcp.f32 %v833_v24  ;;  %vm844_vm1 = vmor %vm842_vm0, %vm843_vm15  ;;  %v863_v32 = vand.u32 2147483648, %v833_v24  ;;  %vm857_vm7 = vweird.f32 %v833_v24 }
 0x556   :  { %v839_v63 = vsub.f32 1.0, %v838_v50 }
 0x557   :  { %v836_v62 = vpop.xlane.xlu1 %835 }
 0x558   :  { %5112 = vrcp.f32 %v836_v62  ;;  %v840_v3 = vmul.f32 %v5109_v11, %v839_v63  ;;  %vm872_vm15 = vweird.f32 %v836_v62 }
 0x55a   :  { %v841_v19 = vadd.f32 %v5109_v11, %v840_v3 }
 0x55b   :  { %v5111_v1 = vpop.eup %5110 }
 0x55c   :  { %v853_v46 = vmul.f32 %v5111_v1, %v833_v24  ;;  %v845_v27 = vsel %vm844_vm1, %v5109_v11, %v841_v19  ;;  %vm858_vm6 = vweird.f32 %v5111_v1  ;;  %v861_v11 = vand.u32 2147483647, %v833_v24 }
 0x55d   :  { %vm859_vm12 = vmor %vm857_vm7, %vm858_vm6  ;;  %v876_v24 = vand.u32 2147483647, %v836_v62 }
 0x55e   :  { %v854_v14 = vsub.f32 1.0, %v853_v46  ;;  %v864_v46 = vor.u32 1.1754944e-38, %v863_v32  ;;  %vm862_vm13 = vcmp.eq.f32.partialorder %v861_v11, 8.507059e+37 }
 0x55f   :  { %vm877_vm1 = vcmp.eq.f32.partialorder %v876_v24, 8.507059e+37 }
 0x560   :  { %v855_v26 = vmul.f32 %v5111_v1, %v854_v14  ;;  %v878_v14 = vand.u32 2147483648, %v836_v62 }
 0x562   :  { %v856_v36 = vadd.f32 %v5111_v1, %v855_v26  ;;  %v879_v19 = vor.u32 1.1754944e-38, %v878_v14 }
 0x564   :  { %v860_v63 = vsel %vm859_vm12, %v5111_v1, %v856_v36 }
 0x56d   :  { %456 = vxpose.xlu2.b32.start [1/3] (short) (narrow) %v425_v21, 24  ;;  %v5113_v21 = vpop.eup %5112 }
 0x56e   :  { %v868_v23 = vmul.f32 %v5113_v21, %v836_v62  ;;  %vm873_vm14 = vweird.f32 %v5113_v21 }
 0x56f   :  { %vm874_vm0 = vmor %vm872_vm15, %vm873_vm14 }
 0x570   :  { %v869_v18 = vsub.f32 1.0, %v868_v23 }
 0x572   :  { %v870_v50 = vmul.f32 %v5113_v21, %v869_v18 }
 0x575   :  { %457 = vxpose.xlu2.b32.cont [2/3] (short) (narrow) %v440_v35, 24  ;;  %v850_v35 = vsel %vm847_vm4, %v849_v30, %v845_v27  ;;  %vm536_vm4 = vcmask 57344  }
 0x576   :  { %v851_v51 = vmul.f32 %v5803_v61, %v850_v35 }
 0x57d   :  { %458 = vxpose.xlu2.b32.end [3/3] (short) (narrow) %v455_v44, 24  ;;  %v4983_v44 = vunpack.i.h.bf16 %v5844_v57  ;;  %v871_v57 = vadd.f32 %v5113_v21, %v870_v50 }
 0x57f   :  { %v875_v1 = vsel %vm874_vm0, %v5113_v21, %v871_v57  ;;  %v5989_v57 = vpop.xlane.xlu1 %1268 }
 0x580   :  { %v880_v12 = vsel %vm877_vm1, %v879_v19, %v875_v1 }
 0x588   :  { %v5878_v52 = vpop.xlane.xlu2 %1271 }
 0x5b7   :  { %v5880_v59 = vpop.xlane.xlu2 %1696 }
 0x5e6   :  { %1357 = vrot.lane.b32.xlu2 %v5660_v42, %s7412_s24 }
 0x606   :  { %v472_v31 = vpop.trf.xlu2 }
 0x607   :  { %4732 = vmatmul.msk.f32.vlgmr.msrb.gmra.mxu2 %vm382_vm10, %v472_v31 }
 0x608   :  { %4761 = vmatpush.msk.msrb.mxu2 %vm505_vm9, %v5840_v17  ;;  %v865_v17 = vsel %vm862_vm13, %v864_v46, %v860_v63 }
 0x609   :  { %v866_v61 = vmul.f32 %v5811_v2, %v865_v17 }
 0x60a   :  { %1166 = vmatpush.msrb.mxu2 %v4982_v29 }
 0x60c   :  { %1167 = vmatpush.msrb.mxu2 %v4983_v44  ;;  %882 = vxpose.xlu2.b32.start [1/3] (short) (narrow) %v851_v51, 24 }
 0x60e   :  { %v473_v3 = vpop.trf.xlu2 }
 0x60f   :  { %4733 = vmatmul.msk.f32.vlgmr.msra.gmra.mxu3 %vm382_vm10, %v473_v3 }
 0x610   :  { %4755 = vmatpush.xpose.msk.msra.mxu3 %vm340_vm8, %v5672_v47  ;;  %v881_v47 = vmul.f32 %v5799_v43, %v880_v12 }
 0x614   :  { %4756 = vmatpush.xpose.msk.msra.mxu3 %vm340_vm8, %v5655_v37  ;;  %883 = vxpose.xlu2.b32.cont [2/3] (short) (narrow) %v866_v61, 24  ;;  %v5992_v61 = vpop.xlane.xlu1 %1274 }
 0x616   :  { %v474_v22 = vpop.trf.xlu2 }
 0x617   :  { %4734 = vmatmul.msk.f32.gmra.mxu3 %vm382_vm10, %v474_v22 }
 0x618   :  { %4757 = vmatpush.xpose.msk.msra.mxu3 %vm340_vm8, %v5652_v34 }
 0x61c   :  { %884 = vxpose.xlu2.b32.end [3/3] (short) (narrow) %v881_v47, 24  ;;  %v5994_v24 = vpop.xlane.xlu1 %1690 }
 0x61f   :  { %4738 = vmatmul.msk.f32.vlgmr.msrb.gmra.mxu3 %vm340_vm8, %v5646_v28 }
 0x620   :  { %4775 = vmatpush.xpose.msk.msrb.mxu3 %vm340_vm8, %v5724_v5 }
 0x624   :  { %4776 = vmatpush.xpose.msk.msrb.mxu3 %vm340_vm8, %v5732_v10  ;;  %v5998_v1 = vpop.xlane.xlu1 %1693 }
 0x627   :  { %4739 = vmatmul.msk.f32.gmra.mxu3 %vm340_vm8, %v5674_v49 }
 0x628   :  { %4777 = vmatpush.xpose.msk.msrb.mxu3 %vm340_vm8, %v5713_v56 }
 0x62f   :  { %4740 = vmatmul.msk.f32.gmra.mxu3 %vm340_vm8, %v5692_v54 }
 0x637   :  { %4758 = vmatmul.msk.f32.vlgmr.msra.gmra.mxu3 %vm340_vm8, %v5657_v38 }
 0x638   :  { %4795 = vmatpush.xpose.msk.msra.mxu3 %vm340_vm8, %v5729_v8 }
 0x63c   :  { %4796 = vmatpush.xpose.msk.msra.mxu3 %vm340_vm8, %v5741_v15 }
 0x63f   :  { %4759 = vmatmul.msk.f32.gmra.mxu3 %vm340_vm8, %v5666_v45 }
 0x640   :  { %4797 = vmatpush.xpose.msk.msra.mxu3 %vm340_vm8, %v5718_v60  ;;  %v1358_v28 = vpop.permute.xlu2 %1357 }
 0x641   :  { %4771 = vmatpush.msk.msra.mxu1 %vm505_vm9, %v1358_v28 }
 0x647   :  { %4760 = vmatmul.msk.f32.gmra.mxu3 %vm340_vm8, %v5703_v55 }
 0x64f   :  { %4778 = vmatmul.msk.f32.vlgmr.msrb.gmra.mxu3 %vm340_vm8, %v5716_v58 }
 0x657   :  { %4779 = vmatmul.msk.f32.gmra.mxu3 %vm340_vm8, %v5738_v13 }
 0x65f   :  { %4780 = vmatmul.msk.f32.gmra.mxu3 %vm340_vm8, %v5726_v6 }
 0x667   :  { %4798 = vmatmul.msk.f32.vlgmr.msra.gmra.mxu3 %vm340_vm8, %v5721_v0 }
 0x66f   :  { %4799 = vmatmul.msk.f32.gmra.mxu3 %vm340_vm8, %v5746_v20 }
 0x677   :  { %4800 = vmatmul.msk.f32.gmra.mxu3 %vm340_vm8, %v5787_v9 }
 0x68a   :  { %v525_v34 = vpop.f32.mrf.mxu2 }
 0x68b   :  { %534 = vst.msk [vmem:[#allocation3] sm:$0xff] %vm340_vm8, %v525_v34 }
 0x692   :  { %v528_v37 = vpop.f32.mrf.mxu3 }
 0x693   :  { %535 = vst.msk [vmem:[#allocation3 + $0x8] sm:$0xff] %vm340_vm8, %v528_v37 }
 0x69a   :  { %v531_v38 = vpop.f32.mrf.mxu3 }
 0x69b   :  { %537 = vst.msk [vmem:[#allocation3 + $0x10] sm:$0x1] %vm536_vm4, %v531_v38 }
 0x6a2   :  { %v579_v45 = vpop.f32.mrf.mxu3 }
 0x6a3   :  { %v588_v49 = vmul.f32 0.35355338, %v579_v45 }
 0x6a5   :  { %v591_v54 = vsel %vm382_vm10, %v588_v49, -inf  ;;  %v898_v62 = vpop.trf.xlu2 }
 0x6a6   :  { %592 = vmax.xlane.f32.xlu0 %v591_v54  ;;  %4752 = vmatmul.msk.f32.vlgmr.msrb.gmra.mxu1 %vm382_vm10, %v898_v62 }
 0x6aa   :  { %v582_v55 = vpop.f32.mrf.mxu3 }
 0x6ab   :  { %v5939_v56 = vmul.f32 0.35355338, %v582_v55 }
 0x6ad   :  { %v594_v58 = vsel %vm382_vm10, %v5939_v56, -inf  ;;  %v899_v51 = vpop.trf.xlu2 }
 0x6ae   :  { %595 = vmax.xlane.f32.xlu1 %v594_v58  ;;  %4753 = vmatmul.msk.f32.gmra.mxu1 %vm382_vm10, %v899_v51 }
 0x6b2   :  { %v585_v60 = vpop.f32.mrf.mxu3 }
 0x6b3   :  { %v5943_v0 = vmul.f32 0.35355338, %v585_v60 }
 0x6b5   :  { %v597_v5 = vsel %vm389_vm11, %v5943_v0, -inf  ;;  %v900_v14 = vpop.trf.xlu2 }
 0x6b6   :  { %598 = vmax.xlane.f32.xlu2 %v597_v5  ;;  %4754 = vmatmul.msk.f32.gmra.mxu1 %vm382_vm10, %v900_v14 }
 0x6ba   :  { %v1017_v6 = vpop.f32.mrf.mxu3 }
 0x6bb   :  { %v5947_v8 = vmul.f32 0.35355338, %v1017_v6 }
 0x6bd   :  { %v1029_v10 = vsel %vm382_vm10, %v5947_v8, -inf }
 0x6be   :  { %1030 = vmax.xlane.f32.xlu0 %v1029_v10 }
 0x6c2   :  { %v1020_v13 = vpop.f32.mrf.mxu3 }
 0x6c3   :  { %v5964_v30 = vmul.f32 0.35355338, %v1020_v13 }
 0x6c5   :  { %v1032_v31 = vsel %vm382_vm10, %v5964_v30, -inf }
 0x6c7   :  { %1996 = vrot.lane.b32.xlu1 %v5660_v42, %s7414_s29 }
 0x6ca   :  { %v1023_v15 = vpop.f32.mrf.mxu3 }
 0x6cb   :  { %v5972_v36 = vmul.f32 0.35355338, %v1023_v15 }
 0x6cd   :  { %v1035_v11 = vsel %vm389_vm11, %v5972_v36, -inf }
 0x6ce   :  { %4995 = vrot.lane.b32.xlu2 %v5831_v16, %s7412_s24  ;;  %s7449_s24 = smov 64  }
 0x6d2   :  { %v1442_v20 = vpop.f32.mrf.mxu3 }
 0x6d3   :  { %v5968_v35 = vmul.f32 0.35355338, %v1442_v20 }
 0x6d5   :  { %v1454_v44 = vsel %vm382_vm10, %v5968_v35, -inf }
 0x6da   :  { %v1445_v9 = vpop.f32.mrf.mxu3 }
 0x6db   :  { %v5955_v43 = vmul.f32 0.35355338, %v1445_v9 }
 0x6dd   :  { %v1457_v2 = vsel %vm382_vm10, %v5955_v43, -inf }
 0x6de   :  { %1458 = vmax.xlane.f32.xlu0 %v1457_v2 }
 0x6e2   :  { %v1448_v21 = vpop.f32.mrf.mxu3 }
 0x6e3   :  { %v5960_v23 = vmul.f32 0.35355338, %v1448_v21 }
 0x6e5   :  { %v1460_v26 = vsel %vm389_vm11, %v5960_v23, -inf }
 0x6e6   :  { %1461 = vmax.xlane.f32.xlu0 %v1460_v26 }
 0x6ea   :  { %v1876_v27 = vpop.f32.mrf.mxu3 }
 0x6eb   :  { %v5981_v50 = vmul.f32 0.35355338, %v1876_v27 }
 0x6ed   :  { %v1888_v17 = vsel %vm382_vm10, %v5981_v50, -inf }
 0x6f1   :  { %1033 = vmax.xlane.f32.xlu1 %v1032_v31 }
 0x6f2   :  { %v1879_v29 = vpop.f32.mrf.mxu3 }
 0x6f3   :  { %v5970_v18 = vmul.f32 0.35355338, %v1879_v29 }
 0x6f5   :  { %v1891_v32 = vsel %vm382_vm10, %v5970_v18, -inf }
 0x6f6   :  { %1892 = vmax.xlane.f32.xlu0 %v1891_v32 }
 0x6f7   :  { %1455 = vmax.xlane.f32.xlu2 %v1454_v44 }
 0x6f9   :  { %1036 = vmax.xlane.f32.xlu1 %v1035_v11 }
 0x6fa   :  { %v1882_v63 = vpop.f32.mrf.mxu3 }
 0x6fb   :  { %v5983_v46 = vmul.f32 0.35355338, %v1882_v63 }
 0x6fd   :  { %v1894_v3 = vsel %vm389_vm11, %v5983_v46, -inf }
 0x6fe   :  { %1895 = vmax.xlane.f32.xlu0 %v1894_v3 }
 0x6ff   :  { %1889 = vmax.xlane.f32.xlu2 %v1888_v17 }
 0x717   :  { %5000 = vrot.lane.b32.xlu2 %v5831_v16, %s7414_s29  ;;  %s4707_s29 = sshll.u32 %s7407_s17, 4  ;;  %s4708_s29 = int_to_ptr.hbm [resolvable:$true] %s4707_s29 }
 0x719   :  { %v593_v19 = vpop.xlane.xlu0 %592 }
 0x71a   :  { %v600_v22 = vsub.f32 %v588_v49, %v593_v19 }
 0x71c   :  { %v603_v12 = vmul.f32 1.442695, %v600_v22 }
 0x71e   :  { %5114 = vpow2.f32 %v603_v12 }
 0x721   :  { %v596_v47 = vpop.xlane.xlu1 %595 }
 0x722   :  { %v601_v28 = vsub.f32 %v5939_v56, %v596_v47 }
 0x724   :  { %v6001_v34 = vpop.eup %5114  ;;  %v605_v37 = vmul.f32 1.442695, %v601_v28 }
 0x725   :  { %v609_v38 = vsel %vm382_vm10, %v6001_v34, 0.0 }
 0x726   :  { %5116 = vpow2.f32 %v605_v37  ;;  %610 = vadd.xlane.f32.xlu1 %v609_v38 }
 0x729   :  { %v599_v45 = vpop.xlane.xlu2 %598 }
 0x72a   :  { %v602_v54 = vsub.f32 %v5943_v0, %v599_v45 }
 0x72c   :  { %v6006_v55 = vpop.eup %5116  ;;  %v607_v58 = vmul.f32 1.442695, %v602_v54 }
 0x72d   :  { %v612_v49 = vsel %vm382_vm10, %v6006_v55, 0.0 }
 0x72e   :  { %5118 = vpow2.f32 %v607_v58  ;;  %613 = vadd.xlane.f32.xlu1 %v612_v49 }
 0x731   :  { %v4996_v56 = vpop.permute.xlu2 %4995  ;;  %v1031_v60 = vpop.xlane.xlu0 %1030 }
 0x732   :  { %v4997_v5 = vunpack.i.l.bf16 %v4996_v56  ;;  %v1038_v6 = vsub.f32 %v5947_v8, %v1031_v60  ;;  %v4998_v13 = vunpack.i.h.bf16 %v4996_v56 }
 0x734   :  { %v6011_v10 = vpop.eup %5118  ;;  %v1041_v15 = vmul.f32 1.442695, %v1038_v6  ;;  %1386 = vmatpush.msra.mxu1 %v4997_v5 }
 0x735   :  { %v615_v0 = vsel %vm389_vm11, %v6011_v10, 0.0 }
 0x736   :  { %5120 = vpow2.f32 %v1041_v15  ;;  %616 = vadd.xlane.f32.xlu0 %v615_v0  ;;  %1387 = vmatpush.msra.mxu1 %v4998_v13 }
 0x739   :  { %v6020_v21 = vpop.permute.xlu1 %1996 }
 0x73c   :  { %v6015_v20 = vpop.eup %5120 }
 0x73d   :  { %v1047_v9 = vsel %vm382_vm10, %v6015_v20, 0.0 }
 0x73e   :  { %1048 = vadd.xlane.f32.xlu1 %v1047_v9 }
 0x751   :  { %v1459_v2 = vpop.xlane.xlu0 %1458 }
 0x759   :  { %v1462_v62 = vpop.xlane.xlu0 %1461 }
 0x75a   :  { %v1465_v8 = vsub.f32 %v5960_v23, %v1462_v62 }
 0x75c   :  { %v1470_v26 = vmul.f32 1.442695, %v1465_v8 }
 0x75e   :  { %5122 = vpow2.f32 %v1470_v26 }
 0x764   :  { %v6022_v27 = vpop.eup %5122  ;;  %v1034_v31 = vpop.xlane.xlu1 %1033 }
 0x765   :  { %v1039_v29 = vsub.f32 %v5964_v30, %v1034_v31  ;;  %v1478_v32 = vsel %vm389_vm11, %v6022_v27, 0.0 }
 0x766   :  { %1479 = vadd.xlane.f32.xlu0 %v1478_v32 }
 0x767   :  { %v1043_v44 = vmul.f32 1.442695, %v1039_v29 }
 0x769   :  { %5124 = vpow2.f32 %v1043_v44  ;;  %v1893_v51 = vpop.xlane.xlu0 %1892 }
 0x76a   :  { %v1898_v11 = vsub.f32 %v5970_v18, %v1893_v51  ;;  %v1456_v23 = vpop.xlane.xlu2 %1455 }
 0x76b   :  { %v1463_v19 = vsub.f32 %v5968_v35, %v1456_v23  ;;  %v1464_v35 = vsub.f32 %v5955_v43, %v1459_v2 }
 0x76c   :  { %v1902_v63 = vmul.f32 1.442695, %v1898_v11  ;;  %v1037_v3 = vpop.xlane.xlu1 %1036 }
 0x76d   :  { %v1040_v17 = vsub.f32 %v5972_v36, %v1037_v3  ;;  %v1466_v18 = vmul.f32 1.442695, %v1463_v19  ;;  %v1468_v54 = vmul.f32 1.442695, %v1464_v35 }
 0x76e   :  { %5126 = vpow2.f32 %v1902_v63 }
 0x76f   :  { %v6029_v14 = vpop.eup %5124  ;;  %v1045_v30 = vmul.f32 1.442695, %v1040_v17 }
 0x770   :  { %v1050_v22 = vsel %vm382_vm10, %v6029_v14, 0.0 }
 0x771   :  { %5128 = vpow2.f32 %v1045_v30  ;;  %1051 = vadd.xlane.f32.xlu1 %v1050_v22  ;;  %v1896_v12 = vpop.xlane.xlu0 %1895 }
 0x772   :  { %v1899_v47 = vsub.f32 %v5983_v46, %v1896_v12  ;;  %v1890_v58 = vpop.xlane.xlu2 %1889 }
 0x773   :  { %v1897_v60 = vsub.f32 %v5981_v50, %v1890_v58 }
 0x774   :  { %v6035_v28 = vpop.eup %5126  ;;  %v1904_v37 = vmul.f32 1.442695, %v1899_v47 }
 0x775   :  { %v1909_v36 = vsel %vm382_vm10, %v6035_v28, 0.0  ;;  %v1900_v5 = vmul.f32 1.442695, %v1897_v60 }
 0x776   :  { %5130 = vpow2.f32 %v1904_v37  ;;  %1910 = vadd.xlane.f32.xlu2 %v1909_v36 }
 0x777   :  { %v6039_v38 = vpop.eup %5128  ;;  %5132 = vpow2.f32 %v1466_v18 }
 0x778   :  { %v1053_v45 = vsel %vm389_vm11, %v6039_v38, 0.0  ;;  %5134 = vpow2.f32 %v1468_v54 }
 0x779   :  { %1054 = vadd.xlane.f32.xlu1 %v1053_v45  ;;  %5136 = vpow2.f32 %v1900_v5 }
 0x77c   :  { %v6044_v46 = vpop.eup %5130 }
 0x77d   :  { %v6046_v49 = vpop.eup %5132  ;;  %v1912_v56 = vsel %vm389_vm11, %v6044_v46, 0.0 }
 0x77e   :  { %1913 = vadd.xlane.f32.xlu0 %v1912_v56  ;;  %v1472_v43 = vsel %vm382_vm10, %v6046_v49, 0.0  ;;  %v6053_v6 = vpop.eup %5134 }
 0x77f   :  { %v1475_v13 = vsel %vm382_vm10, %v6053_v6, 0.0  ;;  %v6057_v15 = vpop.eup %5136 }
 0x780   :  { %v1906_v0 = vsel %vm382_vm10, %v6057_v15, 0.0 }
 0x781   :  { %1473 = vadd.xlane.f32.xlu1 %v1472_v43 }
 0x789   :  { %1476 = vadd.xlane.f32.xlu1 %v1475_v13 }
 0x791   :  { %1907 = vadd.xlane.f32.xlu1 %v1906_v0 }
 0x799   :  { %v611_v9 = vpop.xlane.xlu1 %610 }
 0x79a   :  { %5138 = vrcp.f32 %v611_v9  ;;  %v629_v26 = vand.u32 2147483648, %v611_v9  ;;  %v627_v29 = vand.u32 2147483647, %v611_v9  ;;  %vm623_vm7 = vweird.f32 %v611_v9 }
 0x79c   :  { %v630_v51 = vor.u32 1.1754944e-38, %v629_v26  ;;  %vm628_vm13 = vcmp.eq.f32.partialorder %v627_v29, 8.507059e+37 }
 0x7a0   :  { %v5139_v50 = vpop.eup %5138 }
 0x7a1   :  { %v619_v2 = vmul.f32 %v5139_v50, %v611_v9  ;;  %v614_v62 = vpop.xlane.xlu1 %613  ;;  %vm624_vm6 = vweird.f32 %v5139_v50 }
 0x7a2   :  { %5140 = vrcp.f32 %v614_v62  ;;  %vm625_vm12 = vmor %vm623_vm7, %vm624_vm6  ;;  %v644_v30 = vand.u32 2147483648, %v614_v62  ;;  %v642_v12 = vand.u32 2147483647, %v614_v62  ;;  %vm638_vm15 = vweird.f32 %v614_v62 }
 0x7a3   :  { %v620_v8 = vsub.f32 1.0, %v619_v2 }
 0x7a4   :  { %v645_v37 = vor.u32 1.1754944e-38, %v644_v30  ;;  %vm643_vm1 = vcmp.eq.f32.partialorder %v642_v12, 8.507059e+37 }
 0x7a5   :  { %v621_v31 = vmul.f32 %v5139_v50, %v620_v8 }
 0x7a7   :  { %v622_v32 = vadd.f32 %v5139_v50, %v621_v31 }
 0x7a8   :  { %v5141_v44 = vpop.eup %5140 }
 0x7a9   :  { %v634_v11 = vmul.f32 %v5141_v44, %v614_v62  ;;  %v617_v63 = vpop.xlane.xlu0 %616  ;;  %v626_v23 = vsel %vm625_vm12, %v5139_v50, %v622_v32  ;;  %vm639_vm14 = vweird.f32 %v5141_v44 }
 0x7aa   :  { %5142 = vrcp.f32 %v617_v63  ;;  %v631_v3 = vsel %vm628_vm13, %v630_v51, %v626_v23  ;;  %vm640_vm0 = vmor %vm638_vm15, %vm639_vm14  ;;  %v657_v43 = vand.u32 2147483647, %v617_v63  ;;  %vm653_vm7 = vweird.f32 %v617_v63 }
 0x7ab   :  { %v635_v17 = vsub.f32 1.0, %v634_v11  ;;  %v632_v19 = vmul.f32 %v6001_v34, %v631_v3  ;;  %v659_v34 = vand.u32 2147483648, %v617_v63 }
 0x7ac   :  { %vm658_vm13 = vcmp.eq.f32.partialorder %v657_v43, 8.507059e+37 }
 0x7ad   :  { %663 = vxpose.xlu0.b32.start [1/3] (short) (narrow) %v632_v19, 24  ;;  %v636_v22 = vmul.f32 %v5141_v44, %v635_v17  ;;  %v660_v0 = vor.u32 1.1754944e-38, %v659_v34 }
 0x7af   :  { %v637_v47 = vadd.f32 %v5141_v44, %v636_v22 }
 0x7b0   :  { %v5143_v18 = vpop.eup %5142 }
 0x7b1   :  { %v649_v36 = vmul.f32 %v5143_v18, %v617_v63  ;;  %v1049_v35 = vpop.xlane.xlu1 %1048  ;;  %v641_v45 = vsel %vm640_vm0, %v5141_v44, %v637_v47  ;;  %vm654_vm6 = vweird.f32 %v5143_v18 }
 0x7b2   :  { %5144 = vrcp.f32 %v1049_v35  ;;  %v646_v54 = vsel %vm643_vm1, %v645_v37, %v641_v45  ;;  %vm655_vm12 = vmor %vm653_vm7, %vm654_vm6  ;;  %v1067_v31 = vand.u32 2147483648, %v1049_v35  ;;  %vm1061_vm15 = vweird.f32 %v1049_v35 }
 0x7b3   :  { %v650_v58 = vsub.f32 1.0, %v649_v36  ;;  %v647_v56 = vmul.f32 %v6006_v55, %v646_v54  ;;  %v1065_v29 = vand.u32 2147483647, %v1049_v35 }
 0x7b4   :  { %v1068_v44 = vor.u32 1.1754944e-38, %v1067_v31 }
 0x7b5   :  { %664 = vxpose.xlu0.b32.cont [2/3] (short) (narrow) %v647_v56, 24  ;;  %v651_v60 = vmul.f32 %v5143_v18, %v650_v58  ;;  %vm1066_vm1 = vcmp.eq.f32.partialorder %v1065_v29, 8.507059e+37 }
 0x7b7   :  { %v652_v5 = vadd.f32 %v5143_v18, %v651_v60 }
 0x7b8   :  { %v5145_v13 = vpop.eup %5144 }
 0x7b9   :  { %v1057_v9 = vmul.f32 %v5145_v13, %v1049_v35  ;;  %v656_v50 = vsel %vm655_vm12, %v5143_v18, %v652_v5  ;;  %vm1062_vm14 = vweird.f32 %v5145_v13  ;;  %v6065_v18 = vpop.permute.xlu2 %5000 }
 0x7ba   :  { %v661_v2 = vsel %vm658_vm13, %v660_v0, %v656_v50  ;;  %vm1063_vm0 = vmor %vm1061_vm15, %vm1062_vm14 }
 0x7bb   :  { %v1058_v62 = vsub.f32 1.0, %v1057_v9  ;;  %v662_v8 = vmul.f32 %v6011_v10, %v661_v2 }
 0x7bd   :  { %665 = vxpose.xlu0.b32.end [3/3] (short) (narrow) %v662_v8, 24  ;;  %v1059_v26 = vmul.f32 %v5145_v13, %v1058_v62 }
 0x7bf   :  { %v1060_v55 = vadd.f32 %v5145_v13, %v1059_v26 }
 0x7c1   :  { %v1064_v32 = vsel %vm1063_vm0, %v5145_v13, %v1060_v55 }
 0x7c2   :  { %v1069_v51 = vsel %vm1066_vm1, %v1068_v44, %v1064_v32 }
 0x7c3   :  { %v1070_v11 = vmul.f32 %v6015_v20, %v1069_v51 }
 0x7cb   :  { %1101 = vxpose.xlu1.b32.start [1/3] (short) (narrow) %v1070_v11, 24 }
 0x7d9   :  { %v6070_v13 = vpop.xlane.xlu0 %1479 }
 0x7e4   :  { %v1052_v63 = vpop.xlane.xlu1 %1051 }
 0x7e5   :  { %5146 = vrcp.f32 %v1052_v63  ;;  %v1082_v19 = vand.u32 2147483648, %v1052_v63  ;;  %v1080_v22 = vand.u32 2147483647, %v1052_v63  ;;  %vm1076_vm7 = vweird.f32 %v1052_v63 }
 0x7e7   :  { %v1083_v37 = vor.u32 1.1754944e-38, %v1082_v19  ;;  %vm1081_vm13 = vcmp.eq.f32.partialorder %v1080_v22, 8.507059e+37 }
 0x7e9   :  { %v1911_v5 = vpop.xlane.xlu2 %1910 }
 0x7eb   :  { %v5147_v23 = vpop.eup %5146 }
 0x7ec   :  { %v1072_v3 = vmul.f32 %v5147_v23, %v1052_v63  ;;  %v1055_v10 = vpop.xlane.xlu1 %1054  ;;  %vm1077_vm6 = vweird.f32 %v5147_v23 }
 0x7ed   :  { %5148 = vrcp.f32 %v1055_v10  ;;  %vm1078_vm12 = vmor %vm1076_vm7, %vm1077_vm6  ;;  %v1097_v34 = vand.u32 2147483648, %v1055_v10  ;;  %v1095_v60 = vand.u32 2147483647, %v1055_v10  ;;  %vm1091_vm15 = vweird.f32 %v1055_v10 }
 0x7ee   :  { %v1073_v17 = vsub.f32 1.0, %v1072_v3  ;;  %5150 = vrcp.f32 %v1911_v5 }
 0x7ef   :  { %v1098_v50 = vor.u32 1.1754944e-38, %v1097_v34  ;;  %vm1096_vm1 = vcmp.eq.f32.partialorder %v1095_v60, 8.507059e+37 }
 0x7f0   :  { %v1074_v30 = vmul.f32 %v5147_v23, %v1073_v17 }
 0x7f1   :  { %v1914_v8 = vpop.xlane.xlu0 %1913 }
 0x7f2   :  { %v1075_v12 = vadd.f32 %v5147_v23, %v1074_v30 }
 0x7f3   :  { %v5149_v47 = vpop.eup %5148 }
 0x7f4   :  { %v1087_v20 = vmul.f32 %v5149_v47, %v1055_v10  ;;  %v6067_v36 = vpop.xlane.xlu1 %1473  ;;  %v1079_v35 = vsel %vm1078_vm12, %v5147_v23, %v1075_v12  ;;  %vm1092_vm14 = vweird.f32 %v5149_v47  ;;  %v5151_v62 = vpop.eup %5150 }
 0x7f5   :  { %v1084_v45 = vsel %vm1081_vm13, %v1083_v37, %v1079_v35  ;;  %vm1093_vm0 = vmor %vm1091_vm15, %vm1092_vm14  ;;  %v1931_v55 = vmul.f32 %v5151_v62, %v1911_v5  ;;  %vm1936_vm12 = vweird.f32 %v5151_v62  ;;  %vm1935_vm15 = vweird.f32 %v1911_v5 }
 0x7f6   :  { %v1088_v54 = vsub.f32 1.0, %v1087_v20  ;;  %v1085_v58 = vmul.f32 %v6029_v14, %v1084_v45  ;;  %v1939_v35 = vand.u32 2147483647, %v1911_v5 }
 0x7f7   :  { %v1932_v29 = vsub.f32 1.0, %v1931_v55 }
 0x7f8   :  { %1102 = vxpose.xlu1.b32.cont [2/3] (short) (narrow) %v1085_v58, 24  ;;  %v1089_v56 = vmul.f32 %v5149_v47, %v1088_v54 }
 0x7f9   :  { %v1933_v11 = vmul.f32 %v5151_v62, %v1932_v29 }
 0x7fa   :  { %v1090_v43 = vadd.f32 %v5149_v47, %v1089_v56 }
 0x7fb   :  { %v1934_v22 = vadd.f32 %v5151_v62, %v1933_v11 }
 0x7fc   :  { %v6072_v0 = vpop.xlane.xlu1 %1476  ;;  %v1094_v9 = vsel %vm1093_vm0, %v5149_v47, %v1090_v43  ;;  %v1941_v47 = vand.u32 2147483648, %v1911_v5  ;;  %vm1937_vm0 = vmor %vm1935_vm15, %vm1936_vm12  ;;  %v1954_v5 = vand.u32 2147483647, %v1914_v8  ;;  %vm1703_vm15 = vweird.f32 %v5994_v24 }
 0x7fd   :  { %v1099_v2 = vsel %vm1096_vm1, %v1098_v50, %v1094_v9  ;;  %v1938_v58 = vsel %vm1937_vm0, %v5151_v62, %v1934_v22  ;;  %vm1940_vm1 = vcmp.eq.f32.partialorder %v1939_v35, 8.507059e+37  ;;  %v1956_v50 = vand.u32 2147483648, %v1914_v8 }
 0x7fe   :  { %v1100_v14 = vmul.f32 %v6039_v38, %v1099_v2  ;;  %v1942_v56 = vor.u32 1.1754944e-38, %v1941_v47 }
 0x800   :  { %1103 = vxpose.xlu1.b32.end [3/3] (short) (narrow) %v1100_v14, 24  ;;  %v1943_v34 = vsel %vm1940_vm1, %v1942_v56, %v1938_v58 }
 0x804   :  { %v1908_v26 = vpop.xlane.xlu1 %1907 }
 0x805   :  { %5152 = vrcp.f32 %v1908_v26  ;;  %v1926_v63 = vand.u32 2147483648, %v1908_v26  ;;  %v1924_v38 = vand.u32 2147483647, %v1908_v26  ;;  %vm1920_vm7 = vweird.f32 %v1908_v26 }
 0x806   :  { %5154 = vrcp.f32 %v1914_v8 }
 0x807   :  { %5156 = vrcp.f32 %v5994_v24  ;;  %v1927_v17 = vor.u32 1.1754944e-38, %v1926_v63  ;;  %vm1925_vm14 = vcmp.eq.f32.partialorder %v1924_v38, 8.507059e+37 }
 0x808   :  { %5158 = vrcp.f32 %v5998_v1 }
 0x809   :  { %5160 = vrcp.f32 %v5880_v59 }
 0x80a   :  { %5162 = vrcp.f32 %v6067_v36 }
 0x80b   :  { %v5153_v31 = vpop.eup %5152  ;;  %5164 = vrcp.f32 %v6072_v0 }
 0x80c   :  { %v1916_v32 = vmul.f32 %v5153_v31, %v1908_v26  ;;  %v5155_v44 = vpop.eup %5154  ;;  %vm1921_vm6 = vweird.f32 %v5153_v31  ;;  %v1957_v26 = vor.u32 1.1754944e-38, %v1956_v50  ;;  %5166 = vrcp.f32 %v6070_v13 }
 0x80d   :  { %v1946_v23 = vmul.f32 %v5155_v44, %v1914_v8  ;;  %vm1922_vm13 = vmor %vm1920_vm7, %vm1921_vm6  ;;  %v5157_v12 = vpop.eup %5156  ;;  %vm1951_vm6 = vweird.f32 %v5155_v44  ;;  %vm1950_vm7 = vweird.f32 %v1914_v8  ;;  %v1707_v8 = vand.u32 2147483647, %v5994_v24 }
 0x80e   :  { %v1917_v51 = vsub.f32 1.0, %v1916_v32  ;;  %v1699_v45 = vmul.f32 %v5157_v12, %v5994_v24  ;;  %v5159_v9 = vpop.eup %5158  ;;  %vm1952_vm12 = vmor %vm1950_vm7, %vm1951_vm6  ;;  %vm1718_vm7 = vweird.f32 %v5998_v1  ;;  %v1492_v50 = vand.u32 2147483648, %v6067_v36 }
 0x80f   :  { %v1947_v19 = vsub.f32 1.0, %v1946_v23  ;;  %v1714_v2 = vmul.f32 %v5159_v9, %v5998_v1  ;;  %v5161_v32 = vpop.eup %5160  ;;  %vm1708_vm1 = vcmp.eq.f32.partialorder %v1707_v8, 8.507059e+37  ;;  %vm1719_vm6 = vweird.f32 %v5159_v9 }
 0x810   :  { %v1918_v3 = vmul.f32 %v5153_v31, %v1917_v51  ;;  %v1700_v60 = vsub.f32 1.0, %v1699_v45  ;;  %v1709_v51 = vand.u32 2147483648, %v5994_v24  ;;  %v1729_v11 = vmul.f32 %v5161_v32, %v5880_v59 }
 0x811   :  { %v1948_v54 = vmul.f32 %v5155_v44, %v1947_v19  ;;  %5168 = vrcp.f32 %v5989_v57 }
 0x812   :  { %v1919_v10 = vadd.f32 %v5153_v31, %v1918_v3  ;;  %v1701_v62 = vmul.f32 %v5157_v12, %v1700_v60  ;;  %v1710_v23 = vor.u32 1.1754944e-38, %v1709_v51  ;;  %v1730_v38 = vsub.f32 1.0, %v1729_v11 }
 0x813   :  { %v1949_v43 = vadd.f32 %v5155_v44, %v1948_v54  ;;  %5170 = vrcp.f32 %v5878_v52 }
 0x814   :  { %v1923_v30 = vsel %vm1922_vm13, %v5153_v31, %v1919_v10  ;;  %vm1955_vm13 = vcmp.eq.f32.partialorder %v1954_v5, 8.507059e+37  ;;  %v1715_v31 = vsub.f32 1.0, %v1714_v2  ;;  %v1702_v29 = vadd.f32 %v5157_v12, %v1701_v62 }
 0x815   :  { %v1928_v37 = vsel %vm1925_vm14, %v1927_v17, %v1923_v30  ;;  %v1953_v14 = vsel %vm1952_vm12, %v5155_v44, %v1949_v43  ;;  %vm1704_vm14 = vweird.f32 %v5157_v12  ;;  %v1724_v10 = vand.u32 2147483648, %v5998_v1  ;;  %vm1720_vm12 = vmor %vm1718_vm7, %vm1719_vm6 }
 0x816   :  { %v1929_v20 = vmul.f32 %v6057_v15, %v1928_v37  ;;  %v1944_v15 = vmul.f32 %v6035_v28, %v1943_v34  ;;  %v1958_v55 = vsel %vm1955_vm13, %v1957_v26, %v1953_v14  ;;  %vm1705_vm0 = vmor %vm1703_vm15, %vm1704_vm14  ;;  %v1716_v63 = vmul.f32 %v5159_v9, %v1715_v31 }
 0x817   :  { %v1959_v28 = vmul.f32 %v6044_v46, %v1958_v55  ;;  %v1706_v44 = vsel %vm1705_vm0, %v5157_v12, %v1702_v29  ;;  %v1722_v17 = vand.u32 2147483647, %v5998_v1  ;;  %v1731_v30 = vmul.f32 %v5161_v32, %v1730_v38 }
 0x818   :  { %1960 = vxpose.xlu2.b32.start [1/3] (short) (narrow) %v1929_v20, 24  ;;  %v1711_v3 = vsel %vm1708_vm1, %v1710_v23, %v1706_v44  ;;  %v1717_v46 = vadd.f32 %v5159_v9, %v1716_v63  ;;  %v1725_v22 = vor.u32 1.1754944e-38, %v1724_v10  ;;  %vm1734_vm14 = vweird.f32 %v5161_v32 }
 0x819   :  { %v1712_v24 = vmul.f32 %v5819_v25, %v1711_v3  ;;  %vm1723_vm13 = vcmp.eq.f32.partialorder %v1722_v17, 8.507059e+37  ;;  %v1732_v47 = vadd.f32 %v5161_v32, %v1731_v30  ;;  %v1739_v25 = vand.u32 2147483648, %v5880_v59 }
 0x81a   :  { %v1721_v19 = vsel %vm1720_vm12, %v5159_v9, %v1717_v46  ;;  %vm1733_vm15 = vweird.f32 %v5880_v59  ;;  %v1737_v1 = vand.u32 2147483647, %v5880_v59  ;;  %vm1486_vm7 = vweird.f32 %v6067_v36 }
 0x81b   :  { %v1726_v12 = vsel %vm1723_vm13, %v1725_v22, %v1721_v19  ;;  %vm1735_vm0 = vmor %vm1733_vm15, %vm1734_vm14  ;;  %v1740_v54 = vor.u32 1.1754944e-38, %v1739_v25  ;;  %v1493_v62 = vor.u32 1.1754944e-38, %v1492_v50  ;;  %v1507_v31 = vand.u32 2147483648, %v6072_v0 }
 0x81c   :  { %v1727_v20 = vmul.f32 %v5842_v33, %v1726_v12  ;;  %v1736_v35 = vsel %vm1735_vm0, %v5161_v32, %v1732_v47  ;;  %vm1738_vm1 = vcmp.eq.f32.partialorder %v1737_v1, 8.507059e+37  ;;  %vm1501_vm15 = vweird.f32 %v6072_v0 }
 0x81d   :  { %v1741_v56 = vsel %vm1738_vm1, %v1740_v54, %v1736_v35  ;;  %v1505_v32 = vand.u32 2147483647, %v6072_v0  ;;  %v1522_v63 = vand.u32 2147483648, %v6070_v13  ;;  %v4992_v23 = vunpack.i.l.bf16 %v5874_v48 }
 0x81e   :  { %v1742_v43 = vmul.f32 %v5849_v7, %v1741_v56  ;;  %v4993_v3 = vunpack.i.h.bf16 %v5874_v48  ;;  %5172 = vrcp.f32 %v5992_v61  ;;  %v1287_v12 = vand.u32 2147483648, %v5989_v57 }
 0x81f   :  { %vm1506_vm1 = vcmp.eq.f32.partialorder %v1505_v32, 8.507059e+37  ;;  %v1523_v46 = vor.u32 1.1754944e-38, %v1522_v63  ;;  %v1285_v47 = vand.u32 2147483647, %v5989_v57 }
 0x820   :  { %1961 = vxpose.xlu2.b32.cont [2/3] (short) (narrow) %v1944_v15, 24  ;;  %v1490_v15 = vand.u32 2147483647, %v6067_v36  ;;  %v1288_v1 = vor.u32 1.1754944e-38, %v1287_v12 }
 0x822   :  { %vm1491_vm13 = vcmp.eq.f32.partialorder %v1490_v15, 8.507059e+37  ;;  %v5002_v15 = vunpack.i.l.bf16 %v6065_v18 }
 0x828   :  { %1962 = vxpose.xlu2.b32.end [3/3] (short) (narrow) %v1959_v28, 24  ;;  %v1508_v28 = vor.u32 1.1754944e-38, %v1507_v31 }
 0x82b   :  { %1779 = vrot.lane.b32.xlu0 %v5660_v42, %s7410_s26  ;;  %v5163_v42 = vpop.eup %5162 }
 0x82c   :  { %v1482_v37 = vmul.f32 %v5163_v42, %v6067_v36  ;;  %v5165_v58 = vpop.eup %5164  ;;  %vm1487_vm6 = vweird.f32 %v5163_v42 }
 0x82d   :  { %v1497_v34 = vmul.f32 %v5165_v58, %v6072_v0  ;;  %v5167_v59 = vpop.eup %5166  ;;  %vm1488_vm12 = vmor %vm1486_vm7, %vm1487_vm6  ;;  %vm1502_vm14 = vweird.f32 %v5165_v58  ;;  %vm1516_vm7 = vweird.f32 %v6070_v13  ;;  %v1520_v0 = vand.u32 2147483647, %v6070_v13 }
 0x82e   :  { %v1483_v45 = vsub.f32 1.0, %v1482_v37  ;;  %v1512_v5 = vmul.f32 %v5167_v59, %v6070_v13  ;;  %vm1503_vm0 = vmor %vm1501_vm15, %vm1502_vm14  ;;  %vm1517_vm6 = vweird.f32 %v5167_v59  ;;  %v5169_v48 = vpop.eup %5168  ;;  %vm1281_vm15 = vweird.f32 %v5989_v57 }
 0x82f   :  { %v1498_v33 = vsub.f32 1.0, %v1497_v34  ;;  %v1277_v13 = vmul.f32 %v5169_v48, %v5989_v57  ;;  %v5171_v19 = vpop.eup %5170  ;;  %vm1282_vm14 = vweird.f32 %v5169_v48  ;;  %v1300_v34 = vand.u32 2147483647, %v5878_v52 }
 0x830   :  { %1743 = vxpose.xlu2.b32.start [1/3] (short) (narrow) %v1712_v24, 24  ;;  %v1484_v60 = vmul.f32 %v5163_v42, %v1483_v45  ;;  %v1513_v7 = vsub.f32 1.0, %v1512_v5 }
 0x831   :  { %v1499_v2 = vmul.f32 %v5165_v58, %v1498_v33  ;;  %v1278_v17 = vsub.f32 1.0, %v1277_v13 }
 0x832   :  { %v1485_v9 = vadd.f32 %v5163_v42, %v1484_v60  ;;  %v1514_v36 = vmul.f32 %v5167_v59, %v1513_v7 }
 0x833   :  { %v1500_v55 = vadd.f32 %v5165_v58, %v1499_v2  ;;  %v1279_v30 = vmul.f32 %v5169_v48, %v1278_v17 }
 0x834   :  { %v1489_v14 = vsel %vm1488_vm12, %v5163_v42, %v1485_v9  ;;  %v1515_v44 = vadd.f32 %v5167_v59, %v1514_v36  ;;  %vm1518_vm12 = vmor %vm1516_vm7, %vm1517_vm6  ;;  %v5173_v42 = vpop.eup %5172  ;;  %vm1297_vm6 = vweird.f32 %v5171_v19  ;;  %vm1296_vm7 = vweird.f32 %v5878_v52 }
 0x835   :  { %v1494_v26 = vsel %vm1491_vm13, %v1493_v62, %v1489_v14  ;;  %v1504_v51 = vsel %vm1503_vm0, %v5165_v58, %v1500_v55  ;;  %vm1521_vm13 = vcmp.eq.f32.partialorder %v1520_v0, 8.507059e+37  ;;  %v1280_v22 = vadd.f32 %v5169_v48, %v1279_v30  ;;  %vm1283_vm0 = vmor %vm1281_vm15, %vm1282_vm14 }
 0x836   :  { %v1495_v29 = vmul.f32 %v6046_v49, %v1494_v26  ;;  %v1509_v8 = vsel %vm1506_vm1, %v1508_v28, %v1504_v51  ;;  %v1519_v38 = vsel %vm1518_vm12, %v5167_v59, %v1515_v44  ;;  %v1307_v37 = vmul.f32 %v5173_v42, %v5992_v61  ;;  %vm1298_vm12 = vmor %vm1296_vm7, %vm1297_vm6 }
 0x837   :  { %v1510_v49 = vmul.f32 %v6053_v6, %v1509_v8  ;;  %v1524_v10 = vsel %vm1521_vm13, %v1523_v46, %v1519_v38  ;;  %vm1286_vm1 = vcmp.eq.f32.partialorder %v1285_v47, 8.507059e+37  ;;  %v1302_v58 = vand.u32 2147483648, %v5878_v52 }
 0x838   :  { %1744 = vxpose.xlu2.b32.cont [2/3] (short) (narrow) %v1727_v20, 24  ;;  %v1284_v20 = vsel %vm1283_vm0, %v5169_v48, %v1280_v22  ;;  %v1308_v45 = vsub.f32 1.0, %v1307_v37  ;;  %vm1301_vm13 = vcmp.eq.f32.partialorder %v1300_v34, 8.507059e+37  ;;  %vm1312_vm14 = vweird.f32 %v5173_v42 }
 0x839   :  { %v1289_v35 = vsel %vm1286_vm1, %v1288_v1, %v1284_v20  ;;  %v1317_v59 = vand.u32 2147483648, %v5992_v61  ;;  %vm1311_vm15 = vweird.f32 %v5992_v61  ;;  %v5003_v14 = vunpack.i.h.bf16 %v6065_v18 }
 0x83a   :  { %v1290_v56 = vmul.f32 %v5807_v53, %v1289_v35  ;;  %v1309_v57 = vmul.f32 %v5173_v42, %v1308_v45  ;;  %vm1313_vm0 = vmor %vm1311_vm15, %vm1312_vm14  ;;  %vm752_vm6 = vcmask 130112   ;;  %vm971_vm7 = vcmask 195712   ;;  %v2060_v45 = vld [vmem:[%s7397_s7 + $0x18] sm:$0xff] }
 0x83b   :  { %v1318_v2 = vor.u32 1.1754944e-38, %v1317_v59  ;;  %2092 = vmatpush.msra.mxu0 %v2060_v45  ;;  %vm7425_vm14 = vcmask 261312   ;;  %vm7422_vm15 = vcmask 254144  }
 0x83c   :  { %v1310_v9 = vadd.f32 %v5173_v42, %v1309_v57 }
 0x83e   :  { %v1314_v5 = vsel %vm1313_vm0, %v5173_v42, %v1310_v9 }
 0x840   :  { %1745 = vxpose.xlu2.b32.end [3/3] (short) (narrow) %v1742_v43, 24  ;;  %v1303_v43 = vor.u32 1.1754944e-38, %v1302_v58  ;;  %v2058_v58 = vld [vmem:[%s7397_s7 + $0x8] sm:$0xff] }
 0x84d   :  { %1526 = vxpose.xlu0.b32.start [1/3] (short) (narrow) %v1495_v29, 24 }
 0x851   :  { %v679_v11 = vpop.trf.xlu0 }
 0x852   :  { %4742 = vmatmul.msk.f32.vlgmr.msra.gmra.mxu2 %vm382_vm10, %v679_v11 }
 0x853   :  { %4781 = vmatpush.msk.msra.mxu2 %vm505_vm9, %v5876_v39  ;;  %v1525_v39 = vmul.f32 %v6022_v27, %v1524_v10 }
 0x855   :  { %1591 = vmatpush.msra.mxu2 %v4992_v23  ;;  %1527 = vxpose.xlu0.b32.cont [2/3] (short) (narrow) %v1510_v49, 24 }
 0x857   :  { %1592 = vmatpush.msra.mxu2 %v4993_v3 }
 0x859   :  { %v680_v24 = vpop.trf.xlu0 }
 0x85a   :  { %4743 = vmatmul.msk.f32.gmra.mxu2 %vm382_vm10, %v680_v24  ;;  %5005 = vrot.lane.b32.xlu1 %v5831_v16, %s7410_s26  ;;  %v1292_v16 = vmul.f32 %v5171_v19, %v5878_v52  ;;  %v1315_v52 = vand.u32 2147483647, %v5992_v61 }
 0x85c   :  { %v1293_v27 = vsub.f32 1.0, %v1292_v16  ;;  %vm1316_vm1 = vcmp.eq.f32.partialorder %v1315_v52, 8.507059e+37 }
 0x85d   :  { %1528 = vxpose.xlu0.b32.end [3/3] (short) (narrow) %v1525_v39, 24  ;;  %v1319_v62 = vsel %vm1316_vm1, %v1318_v2, %v1314_v5 }
 0x85e   :  { %v1294_v25 = vmul.f32 %v5171_v19, %v1293_v27 }
 0x860   :  { %v1295_v54 = vadd.f32 %v5171_v19, %v1294_v25 }
 0x861   :  { %v681_v6 = vpop.trf.xlu0 }
 0x862   :  { %4744 = vmatmul.msk.f32.gmra.mxu2 %vm382_vm10, %v681_v6  ;;  %v1299_v60 = vsel %vm1298_vm12, %v5171_v19, %v1295_v54  ;;  %v2059_v54 = vld [vmem:[%s7397_s7 + $0x10] sm:$0xff]  ;;  %vm7424_vm12 = vcmask 122944  }
 0x863   :  { %v1304_v33 = vsel %vm1301_vm13, %v1303_v43, %v1299_v60  ;;  %2093 = vmatpush.msra.mxu0 %v2059_v54  ;;  %vm7423_vm13 = vcmask 188544  }
 0x864   :  { %v1305_v53 = vmul.f32 %v5836_v41, %v1304_v33  ;;  %v1320_v41 = vmul.f32 %v5815_v4, %v1319_v62 }
 0x865   :  { %2094 = vmatpush.msra.mxu0 %v2058_v58 }
 0x88f   :  { %1321 = vxpose.xlu1.b32.start [1/3] (short) (narrow) %v1290_v56, 24  ;;  %v2057_v56 = vld [vmem:[%s7397_s7] sm:$0xff] }
 0x890   :  { %2095 = vmatpush.msra.mxu0 %v2057_v56 }
 0x894   :  { %v1117_v50 = vpop.trf.xlu1 }
 0x895   :  { %4762 = vmatmul.msk.f32.vlgmr.msrb.gmra.mxu2 %vm382_vm10, %v1117_v50 }
 0x896   :  { %4801 = vmatpush.msk.msrb.mxu2 %vm505_vm9, %v6020_v21  ;;  %v950_v21 = vpop.f32.mrf.mxu1 }
 0x897   :  { %1322 = vxpose.xlu1.b32.cont [2/3] (short) (narrow) %v1305_v53, 24 }
 0x898   :  { %2025 = vmatpush.msrb.mxu2 %v5002_v15 }
 0x89a   :  { %2026 = vmatpush.msrb.mxu2 %v5003_v14 }
 0x89c   :  { %v1118_v7 = vpop.trf.xlu1 }
 0x89d   :  { %v1780_v26 = vpop.permute.xlu0 %1779  ;;  %4763 = vmatmul.msk.f32.gmra.mxu2 %vm382_vm10, %v1118_v7 }
 0x89e   :  { %4791 = vmatpush.msk.msrb.mxu1 %vm505_vm9, %v1780_v26  ;;  %v953_v31 = vpop.f32.mrf.mxu1 }
 0x89f   :  { %1323 = vxpose.xlu1.b32.end [3/3] (short) (narrow) %v1320_v41, 24 }
 0x8a4   :  { %v1119_v61 = vpop.trf.xlu1 }
 0x8a5   :  { %4764 = vmatmul.msk.f32.gmra.mxu2 %vm382_vm10, %v1119_v61 }
 0x8a6   :  { %v956_v4 = vpop.f32.mrf.mxu1 }
 0x8b1   :  { %v1976_v8 = vpop.trf.xlu2 }
 0x8b9   :  { %v1977_v44 = vpop.trf.xlu2 }
 0x8c1   :  { %v1978_v63 = vpop.trf.xlu2 }
 0x8c9   :  { %v1759_v23 = vpop.trf.xlu2 }
 0x8cb   :  { %962 = vrot.lane.b32.xlu0 %v950_v21, %s7426_s0  ;;  %v5052_v21 = vld [vmem:[%s7398_s8] ss:$0 sm:$0xff] }
 0x8cc   :  { %v5006_v18 = vpop.permute.xlu1 %5005 }
 0x8cd   :  { %v5007_v55 = vunpack.i.l.bf16 %v5006_v18  ;;  %v5008_v29 = vunpack.i.h.bf16 %v5006_v18 }
 0x8cf   :  { %1808 = vmatpush.msrb.mxu1 %v5007_v55 }
 0x8d1   :  { %1809 = vmatpush.msrb.mxu1 %v5008_v29  ;;  %v1760_v49 = vpop.trf.xlu2 }
 0x8d3   :  { %964 = vrot.lane.b32.xlu0 %v953_v31, %s7426_s0  ;;  %v5320_v31 = vld [vmem:[#allocation2] sm:$0xff] }
 0x8d5   :  { %v731_v32 = vpop.f32.mrf.mxu2 }
 0x8d9   :  { %v1761_v0 = vpop.trf.xlu2 }
 0x8db   :  { %966 = vrot.lane.b32.xlu0 %v956_v4, %s7426_s0 }
 0x8dd   :  { %v734_v36 = vpop.f32.mrf.mxu2 }
 0x8de   :  { %745 = vrot.lane.b32.xlu2 %v734_v36, %s7418_s30 }
 0x8e5   :  { %v737_v48 = vpop.f32.mrf.mxu2 }
 0x8f1   :  { %v1542_v51 = vpop.trf.xlu0 }
 0x8f2   :  { %4782 = vmatmul.msk.f32.vlgmr.msra.gmra.mxu2 %vm382_vm10, %v1542_v51  ;;  %v5321_v51 = vld [vmem:[#allocation2 + $0x8] sm:$0xff] }
 0x8f9   :  { %v1543_v28 = vpop.trf.xlu0  ;;  %743 = vrot.lane.b32.xlu1 %v731_v32, %s7418_s30 }
 0x8fa   :  { %4783 = vmatmul.msk.f32.gmra.mxu2 %vm382_vm10, %v1543_v28 }
 0x901   :  { %v1544_v11 = vpop.trf.xlu0 }
 0x902   :  { %4784 = vmatmul.msk.f32.gmra.mxu2 %vm382_vm10, %v1544_v11 }
 0x90a   :  { %4802 = vmatmul.msk.f32.vlgmr.msrb.gmra.mxu2 %vm382_vm10, %v1976_v8 }
 0x912   :  { %4803 = vmatmul.msk.f32.gmra.mxu2 %vm382_vm10, %v1977_v44 }
 0x918   :  { %v1169_v13 = vpop.f32.mrf.mxu2 }
 0x91a   :  { %4804 = vmatmul.msk.f32.gmra.mxu2 %vm382_vm10, %v1978_v63  ;;  %v5322_v63 = vld [vmem:[#allocation2 + $0x10] sm:$0xff] }
 0x920   :  { %v1172_v17 = vpop.f32.mrf.mxu2 }
 0x928   :  { %v1175_v19 = vpop.f32.mrf.mxu2 }
 0x933   :  { %v1337_v3 = vpop.trf.xlu1 }
 0x934   :  { %4772 = vmatmul.msk.f32.vlgmr.msra.gmra.mxu1 %vm382_vm10, %v1337_v3 }
 0x938   :  { %v746_v38 = vpop.permute.xlu2 %745 }
 0x939   :  { %754 = vst.msk [vmem:[#allocation3 + $0x8] sm:$0xff] %vm752_vm6, %v746_v38  ;;  %v5323_v38 = vld [vmem:[#allocation2 + $0x18] sm:$0xff] }
 0x93b   :  { %v1338_v46 = vpop.trf.xlu1 }
 0x93c   :  { %4773 = vmatmul.msk.f32.gmra.mxu1 %vm382_vm10, %v1338_v46 }
 0x93d   :  { %v963_v10 = vpop.permute.xlu0 %962 }
 0x943   :  { %v1339_v24 = vpop.trf.xlu1 }
 0x944   :  { %4774 = vmatmul.msk.f32.gmra.mxu1 %vm382_vm10, %v1339_v24 }
 0x945   :  { %v965_v39 = vpop.permute.xlu0 %964 }
 0x946   :  { %973 = vst.msk [vmem:[#allocation3 + $0x8] sm:$0xff] %vm971_vm7, %v965_v39 }
 0x94c   :  { %4792 = vmatmul.msk.f32.vlgmr.msrb.gmra.mxu1 %vm382_vm10, %v1759_v23 }
 0x94d   :  { %v967_v34 = vpop.permute.xlu0 %966 }
 0x954   :  { %4793 = vmatmul.msk.f32.gmra.mxu1 %vm382_vm10, %v1760_v49 }
 0x95c   :  { %4794 = vmatmul.msk.f32.gmra.mxu1 %vm382_vm10, %v1761_v0 }
 0x96b   :  { %v744_v6 = vpop.permute.xlu1 %743 }
 0x96c   :  { %753 = vst.msk [vmem:[#allocation3] sm:$0xff] %vm752_vm6, %v744_v6  ;;  %v5324_v6 = vld [vmem:[#allocation2 + $0x20] sm:$0x3] }
 0x96d   :  { %972 = vst.msk [vmem:[#allocation3] sm:$0xff] %vm971_vm7, %v963_v10 }
 0x975   :  { %v1594_v30 = vpop.f32.mrf.mxu2 }
 0x97d   :  { %v1597_v27 = vpop.f32.mrf.mxu2 }
 0x985   :  { %v1600_v12 = vpop.f32.mrf.mxu2 }
 0x98d   :  { %v2028_v37 = vpop.f32.mrf.mxu2 }
 0x995   :  { %v2031_v20 = vpop.f32.mrf.mxu2 }
 0x99d   :  { %v2034_v1 = vpop.f32.mrf.mxu2 }
 0x9b1   :  { %v1389_v16 = vpop.f32.mrf.mxu1 }
 0x9b2   :  { %1398 = vst.msk [vmem:[#allocation3 + $0x11] sm:$0xff] %vm340_vm8, %v1389_v16 }
 0x9b9   :  { %v1392_v22 = vpop.f32.mrf.mxu1 }
 0x9ba   :  { %1399 = vst.msk [vmem:[#allocation3 + $0x19] sm:$0xff] %vm340_vm8, %v1392_v22 }
 0x9c1   :  { %v1395_v42 = vpop.f32.mrf.mxu1 }
 0x9c2   :  { %1400 = vst.msk [vmem:[#allocation3 + $0x21] sm:$0x1] %vm536_vm4, %v1395_v42 }
 0x9c9   :  { %v1811_v47 = vpop.f32.mrf.mxu1 }
 0x9ca   :  { %1823 = vrot.lane.b32.xlu0 %v1811_v47, %s7426_s0 }
 0x9d1   :  { %v1814_v25 = vpop.f32.mrf.mxu1 }
 0x9d2   :  { %1825 = vrot.lane.b32.xlu1 %v1814_v25, %s7426_s0  ;;  %747 = vrot.lane.b32.xlu0 %v737_v48, %s7418_s30 }
 0x9d9   :  { %v1817_v35 = vpop.f32.mrf.mxu1 }
 0x9da   :  { %1181 = vrot.lane.b32.xlu0 %v1169_v13, %s7420_s18  ;;  %1610 = vrot.lane.b32.xlu1 %v1600_v12, %s7418_s30 }
 0x9e2   :  { %1183 = vrot.lane.b32.xlu0 %v1172_v17, %s7420_s18  ;;  %2044 = vrot.lane.b32.xlu1 %v2034_v1, %s7420_s18 }
 0x9ea   :  { %1185 = vrot.lane.b32.xlu0 %v1175_v19, %s7420_s18 }
 0x9f2   :  { %1606 = vrot.lane.b32.xlu0 %v1594_v30, %s7418_s30 }
 0x9fa   :  { %2040 = vrot.lane.b32.xlu0 %v2028_v37, %s7420_s18 }
 0xa02   :  { %1608 = vrot.lane.b32.xlu0 %v1597_v27, %s7418_s30 }
 0xa0a   :  { %2042 = vrot.lane.b32.xlu0 %v2031_v20, %s7420_s18 }
 0xa12   :  { %1827 = vrot.lane.b32.xlu0 %v1817_v35, %s7426_s0 }
 0xa3c   :  { %v1824_v57 = vpop.permute.xlu0 %1823 }
 0xa44   :  { %v1826_v60 = vpop.permute.xlu1 %1825  ;;  %v748_v43 = vpop.permute.xlu0 %747 }
 0xa45   :  { %756 = vst.msk [vmem:[#allocation3 + $0x10] sm:$0x1] %vm7424_vm12, %v748_v43 }
 0xa46   :  { %975 = vst.msk [vmem:[#allocation3 + $0x10] sm:$0x1] %vm7423_vm13, %v967_v34 }
 0xa4c   :  { %v1182_v33 = vpop.permute.xlu0 %1181  ;;  %v1611_v9 = vpop.permute.xlu1 %1610 }
 0xa4d   :  { %1191 = vst.msk [vmem:[#allocation3] sm:$0xff] %vm7425_vm14, %v1182_v33 }
 0xa4e   :  { %1617 = vst.msk [vmem:[#allocation3 + $0x21] sm:$0x1] %vm7424_vm12, %v1611_v9 }
 0xa54   :  { %v1184_v59 = vpop.permute.xlu0 %1183  ;;  %v2052_v50 = vld [vmem:[#allocation3] sm:$0xff]  ;;  %v2045_v41 = vpop.permute.xlu1 %2044 }
 0xa55   :  { %1192 = vst.msk [vmem:[#allocation3 + $0x8] sm:$0xff] %vm7425_vm14, %v1184_v59  ;;  %4805 = vmatmul.msk.f32.vlgmr.msra.gmra.mxu0 %vm127_vm3, %v2052_v50  ;;  %v2248_v50 = vld [vmem:[%s7401_s11 + $0x18] sm:$0xff] }
 0xa56   :  { %2280 = vmatpush.msra.mxu1 %v2248_v50 }
 0xa5c   :  { %v1186_v53 = vpop.permute.xlu0 %1185  ;;  %v2053_v52 = vld [vmem:[#allocation3 + $0x8] sm:$0xff] }
 0xa5d   :  { %1194 = vst.msk [vmem:[#allocation3 + $0x10] sm:$0x1] %vm7422_vm15, %v1186_v53  ;;  %4806 = vmatmul.msk.f32.gmra.mxu0 %vm127_vm3, %v2053_v52  ;;  %v2247_v53 = vld [vmem:[%s7401_s11 + $0x10] sm:$0xff]  ;;  %v2246_v52 = vld [vmem:[%s7401_s11 + $0x8] sm:$0xff] }
 0xa5e   :  { %2281 = vmatpush.msra.mxu1 %v2247_v53 }
 0xa60   :  { %2282 = vmatpush.msra.mxu1 %v2246_v52 }
 0xa64   :  { %v1607_v15 = vpop.permute.xlu0 %1606 }
 0xa65   :  { %1615 = vst.msk [vmem:[#allocation3 + $0x11] sm:$0xff] %vm752_vm6, %v1607_v15  ;;  %v2245_v15 = vld [vmem:[%s7401_s11] sm:$0xff] }
 0xa66   :  { %1832 = vst.msk [vmem:[#allocation3 + $0x11] sm:$0xff] %vm971_vm7, %v1824_v57  ;;  %2283 = vmatpush.msra.mxu1 %v2245_v15 }
 0xa6c   :  { %v2041_v5 = vpop.permute.xlu0 %2040 }
 0xa6d   :  { %2049 = vst.msk [vmem:[#allocation3 + $0x11] sm:$0xff] %vm7425_vm14, %v2041_v5 }
 0xa74   :  { %v1609_v2 = vpop.permute.xlu0 %1608  ;;  %v2054_v14 = vld [vmem:[#allocation3 + $0x10] sm:$0xff] }
 0xa75   :  { %1616 = vst.msk [vmem:[#allocation3 + $0x19] sm:$0xff] %vm752_vm6, %v1609_v2  ;;  %4807 = vmatmul.msk.f32.gmra.mxu0 %vm127_vm3, %v2054_v14 }
 0xa76   :  { %1833 = vst.msk [vmem:[#allocation3 + $0x19] sm:$0xff] %vm971_vm7, %v1826_v60 }
 0xa7c   :  { %v2043_v62 = vpop.permute.xlu0 %2042 }
 0xa7d   :  { %2050 = vst.msk [vmem:[#allocation3 + $0x19] sm:$0xff] %vm7425_vm14, %v2043_v62 }
 0xa84   :  { %v1828_v26 = vpop.permute.xlu0 %1827  ;;  %v2055_v7 = vld [vmem:[#allocation3 + $0x18] sm:$0xff] }
 0xa85   :  { %1834 = vst.msk [vmem:[#allocation3 + $0x21] sm:$0x1] %vm7423_vm13, %v1828_v26  ;;  %4808 = vmatmul.msk.f32.gmra.mxu0 %vm127_vm3, %v2055_v7 }
 0xa86   :  { %2051 = vst.msk [vmem:[#allocation3 + $0x21] sm:$0x1] %vm7422_vm15, %v2045_v41 }
 0xa8d   :  { %v2056_v61 = vld [vmem:[#allocation3 + $0x20] sm:$0x3] }
 0xa8e   :  { %4809 = vmatmul.msk.f32.gmra.mxu0 %vm127_vm3, %v2056_v61 }
 0xad2   :  { %v2097_v18 = vpop.f32.mrf.mxu0 }
 0xad3   :  { %v2098_v55 = vadd.f32 %v5052_v21, %v2097_v18 }
 0xad5   :  { %v6222_v29 = vadd.f32 %v5320_v31, %v2098_v55 }
 0xad7   :  { %v2119_v32 = vsel %vm127_vm3, %v6222_v29, 0.0 }
 0xad8   :  { %2120 = vadd.xlane.f32.xlu0 %v2119_v32 }
 0xada   :  { %v2100_v4 = vpop.f32.mrf.mxu0 }
 0xadb   :  { %v2101_v36 = vadd.f32 %v5052_v21, %v2100_v4 }
 0xadd   :  { %v6226_v28 = vadd.f32 %v5321_v51, %v2101_v36  ;;  %v6290_v36 = vld [vmem:[%s7399_s9] ss:$0 sm:$0xff] }
 0xadf   :  { %v2122_v8 = vsel %vm127_vm3, %v6226_v28, 0.0 }
 0xae0   :  { %2123 = vadd.xlane.f32.xlu1 %v2122_v8 }
 0xaf2   :  { %v2103_v11 = vpop.f32.mrf.mxu0 }
 0xaf3   :  { %v2104_v44 = vadd.f32 %v5052_v21, %v2103_v11 }
 0xaf5   :  { %v6230_v23 = vadd.f32 %v5322_v63, %v2104_v44  ;;  %v6295_v44 = vld [vmem:[%s7400_s10] ss:$0 sm:$0xff] }
 0xaf7   :  { %v2125_v49 = vsel %vm127_vm3, %v6230_v23, 0.0 }
 0xaf8   :  { %2126 = vadd.xlane.f32.xlu2 %v2125_v49 }
 0xb02   :  { %v2106_v0 = vpop.f32.mrf.mxu0 }
 0xb03   :  { %v2107_v3 = vadd.f32 %v5052_v21, %v2106_v0 }
 0xb05   :  { %v6234_v46 = vadd.f32 %v5323_v38, %v2107_v3 }
 0xb07   :  { %v2128_v10 = vsel %vm127_vm3, %v6234_v46, 0.0 }
 0xb08   :  { %2129 = vadd.xlane.f32.xlu1 %v2128_v10 }
 0xb0b   :  { %v2109_v24 = vpop.f32.mrf.mxu0 }
 0xb0c   :  { %v2110_v39 = vadd.f32 %v5052_v21, %v2109_v24 }
 0xb0e   :  { %v6238_v48 = vadd.f32 %v5324_v6, %v2110_v39 }
 0xb10   :  { %v2131_v13 = vsel %vm154_vm5, %v6238_v48, 0.0 }
 0xb11   :  { %2132 = vadd.xlane.f32.xlu1 %v2131_v13 }
 0xb4b   :  { %v2121_v17 = vpop.xlane.xlu0 %2120 }
 0xb4c   :  { %v2134_v19 = vmul.f32 %v2121_v17, %v5506_v40 }
 0xb4e   :  { %v2139_v30 = vsub.f32 %v6222_v29, %v2134_v19 }
 0xb50   :  { %v2144_v16 = vmul.f32 %v2139_v30, %v2139_v30 }
 0xb52   :  { %v2149_v27 = vsel %vm127_vm3, %v2144_v16, 0.0 }
 0xb53   :  { %2150 = vadd.xlane.f32.xlu0 %v2149_v27  ;;  %v2124_v22 = vpop.xlane.xlu1 %2123 }
 0xb54   :  { %v2135_v42 = vmul.f32 %v2124_v22, %v5506_v40 }
 0xb56   :  { %v6247_v12 = vsub.f32 %v6226_v28, %v2135_v42 }
 0xb58   :  { %v2145_v47 = vmul.f32 %v6247_v12, %v6247_v12 }
 0xb5a   :  { %v2152_v37 = vsel %vm127_vm3, %v2145_v47, 0.0 }
 0xb5b   :  { %2153 = vadd.xlane.f32.xlu0 %v2152_v37 }
 0xb6b   :  { %v2127_v25 = vpop.xlane.xlu2 %2126 }
 0xb6c   :  { %v2136_v20 = vmul.f32 %v2127_v25, %v5506_v40 }
 0xb6e   :  { %v6254_v1 = vsub.f32 %v6230_v23, %v2136_v20 }
 0xb70   :  { %v2146_v35 = vmul.f32 %v6254_v1, %v6254_v1 }
 0xb72   :  { %v2155_v45 = vsel %vm127_vm3, %v2146_v35, 0.0 }
 0xb73   :  { %2156 = vadd.xlane.f32.xlu2 %v2155_v45 }
 0xb7b   :  { %v2130_v54 = vpop.xlane.xlu1 %2129 }
 0xb7c   :  { %v2137_v58 = vmul.f32 %v2130_v54, %v5506_v40 }
 0xb7e   :  { %v6261_v56 = vsub.f32 %v6234_v46, %v2137_v58 }
 0xb80   :  { %v2147_v34 = vmul.f32 %v6261_v56, %v6261_v56 }
 0xb82   :  { %v2158_v57 = vsel %vm127_vm3, %v2147_v34, 0.0 }
 0xb83   :  { %2159 = vadd.xlane.f32.xlu0 %v2158_v57 }
 0xb84   :  { %v2133_v60 = vpop.xlane.xlu1 %2132 }
 0xb85   :  { %v2138_v43 = vmul.f32 %v2133_v60, %v5506_v40 }
 0xb87   :  { %v6268_v33 = vsub.f32 %v6238_v48, %v2138_v43 }
 0xb89   :  { %v2148_v9 = vmul.f32 %v6268_v33, %v6268_v33 }
 0xb8b   :  { %v2161_v59 = vsel %vm154_vm5, %v2148_v9, 0.0 }
 0xb8c   :  { %2162 = vadd.xlane.f32.xlu1 %v2161_v59 }
 0xbc6   :  { %v2151_v5 = vpop.xlane.xlu0 %2150 }
 0xbc7   :  { %v2164_v2 = vmul.f32 %v2151_v5, %v5506_v40 }
 0xbc9   :  { %v2169_v14 = vadd.f32 1e-05, %v2164_v2 }
 0xbcb   :  { %5174 = vrsqrt.f32 %v2169_v14  ;;  %vm2180_vm1 = vweird.f32 %v2169_v14 }
 0xbce   :  { %v2154_v62 = vpop.xlane.xlu0 %2153 }
 0xbcf   :  { %v2165_v26 = vmul.f32 %v2154_v62, %v5506_v40 }
 0xbd1   :  { %v5175_v7 = vpop.eup %5174  ;;  %v2170_v41 = vadd.f32 1e-05, %v2165_v26 }
 0xbd2   :  { %v2175_v61 = vmul.f32 %v5175_v7, %v2169_v14  ;;  %vm2181_vm0 = vweird.f32 %v5175_v7 }
 0xbd3   :  { %5176 = vrsqrt.f32 %v2170_v41  ;;  %vm2182_vm15 = vmor %vm2180_vm1, %vm2181_vm0  ;;  %vm2190_vm12 = vweird.f32 %v2170_v41 }
 0xbd4   :  { %v2176_v21 = vmul.f32 %v5175_v7, %v2175_v61 }
 0xbd6   :  { %v2177_v18 = vmul.f32 0.5, %v2176_v21 }
 0xbd8   :  { %v2178_v55 = vsub.f32 1.5, %v2177_v18 }
 0xbd9   :  { %v5177_v31 = vpop.eup %5176 }
 0xbda   :  { %v2179_v32 = vmul.f32 %v5175_v7, %v2178_v55  ;;  %v2185_v4 = vmul.f32 %v5177_v31, %v2170_v41  ;;  %vm2191_vm13 = vweird.f32 %v5177_v31 }
 0xbdb   :  { %vm2192_vm14 = vmor %vm2190_vm12, %vm2191_vm13 }
 0xbdc   :  { %v2183_v51 = vsel %vm2182_vm15, %v5175_v7, %v2179_v32  ;;  %v2186_v8 = vmul.f32 %v5177_v31, %v2185_v4  ;;  %v2349_v32 = vld [vmem:[%s7403_s13 + $0x20] sm:$0xff]  ;;  %v2348_v4 = vld [vmem:[%s7403_s13 + $0x18] sm:$0xff] }
 0xbdd   :  { %v2224_v11 = vmul.f32 %v2183_v51, %v2139_v30  ;;  %v2346_v51 = vld [vmem:[%s7403_s13 + $0x8] sm:$0xff] }
 0xbde   :  { %v2187_v63 = vmul.f32 0.5, %v2186_v8  ;;  %v2345_v8 = vld [vmem:[%s7403_s13] sm:$0xff] }
 0xbdf   :  { %v2232_v49 = vmul.f32 %v6290_v36, %v2224_v11  ;;  %v5055_v11 = vld [vmem:[%s7402_s12] ss:$0 sm:$0xff] }
 0xbe0   :  { %v2188_v0 = vsub.f32 1.5, %v2187_v63 }
 0xbe1   :  { %v2240_v3 = vadd.f32 %v6295_v44, %v2232_v49 }
 0xbe2   :  { %v2189_v38 = vmul.f32 %v5177_v31, %v2188_v0 }
 0xbe3   :  { %4810 = vmatmul.msk.f32.vlgmr.msra.gmra.mxu1 %vm127_vm3, %v2240_v3 }
 0xbe4   :  { %v2193_v10 = vsel %vm2192_vm14, %v5177_v31, %v2189_v38  ;;  %v2351_v31 = vld [vmem:[%s7403_s13 + $0x30] sm:$0xff] }
 0xbe5   :  { %v2225_v24 = vmul.f32 %v2193_v10, %v6247_v12 }
 0xbe6   :  { %v2157_v39 = vpop.xlane.xlu2 %2156 }
 0xbe7   :  { %v2166_v6 = vmul.f32 %v2157_v39, %v5506_v40  ;;  %v2233_v13 = vmul.f32 %v6290_v36, %v2225_v24 }
 0xbe9   :  { %v2171_v17 = vadd.f32 1e-05, %v2166_v6  ;;  %v2241_v19 = vadd.f32 %v6295_v44, %v2233_v13 }
 0xbeb   :  { %5178 = vrsqrt.f32 %v2171_v17  ;;  %4811 = vmatmul.msk.f32.gmra.mxu1 %vm127_vm3, %v2241_v19  ;;  %vm2200_vm13 = vweird.f32 %v2171_v17 }
 0xbf1   :  { %v5179_v30 = vpop.eup %5178 }
 0xbf2   :  { %v2195_v16 = vmul.f32 %v5179_v30, %v2171_v17  ;;  %vm2201_vm12 = vweird.f32 %v5179_v30 }
 0xbf3   :  { %vm2202_vm14 = vmor %vm2200_vm13, %vm2201_vm12 }
 0xbf4   :  { %v2196_v27 = vmul.f32 %v5179_v30, %v2195_v16 }
 0xbf6   :  { %v2197_v22 = vmul.f32 0.5, %v2196_v27  ;;  %v2160_v42 = vpop.xlane.xlu0 %2159 }
 0xbf7   :  { %v2167_v47 = vmul.f32 %v2160_v42, %v5506_v40 }
 0xbf8   :  { %v2198_v37 = vsub.f32 1.5, %v2197_v22 }
 0xbf9   :  { %v2172_v12 = vadd.f32 1e-05, %v2167_v47 }
 0xbfa   :  { %v2199_v25 = vmul.f32 %v5179_v30, %v2198_v37 }
 0xbfb   :  { %5180 = vrsqrt.f32 %v2172_v12  ;;  %vm2210_vm0 = vweird.f32 %v2172_v12 }
 0xbfc   :  { %v2203_v20 = vsel %vm2202_vm14, %v5179_v30, %v2199_v25 }
 0xbfd   :  { %v2226_v35 = vmul.f32 %v2203_v20, %v6254_v1 }
 0xbff   :  { %v2163_v45 = vpop.xlane.xlu1 %2162  ;;  %v2234_v54 = vmul.f32 %v6290_v36, %v2226_v35 }
 0xc00   :  { %v2168_v58 = vmul.f32 %v2163_v45, %v5506_v40 }
 0xc01   :  { %v5181_v34 = vpop.eup %5180  ;;  %v2242_v57 = vadd.f32 %v6295_v44, %v2234_v54 }
 0xc02   :  { %v2205_v60 = vmul.f32 %v5181_v34, %v2172_v12  ;;  %v2173_v43 = vadd.f32 1e-05, %v2168_v58  ;;  %vm2211_vm15 = vweird.f32 %v5181_v34 }
 0xc03   :  { %4812 = vmatmul.msk.f32.gmra.mxu1 %vm127_vm3, %v2242_v57  ;;  %vm2212_vm1 = vmor %vm2210_vm0, %vm2211_vm15  ;;  %vm7430_vm15 = vcmask 523264  }
 0xc04   :  { %v2206_v9 = vmul.f32 %v5181_v34, %v2205_v60  ;;  %5182 = vrsqrt.f32 %v2173_v43  ;;  %vm2220_vm13 = vweird.f32 %v2173_v43 }
 0xc06   :  { %v2207_v59 = vmul.f32 0.5, %v2206_v9 }
 0xc08   :  { %v2208_v50 = vsub.f32 1.5, %v2207_v59 }
 0xc0a   :  { %v5183_v53 = vpop.eup %5182  ;;  %v2209_v52 = vmul.f32 %v5181_v34, %v2208_v50 }
 0xc0b   :  { %v2215_v1 = vmul.f32 %v5183_v53, %v2173_v43  ;;  %vm2221_vm12 = vweird.f32 %v5183_v53 }
 0xc0c   :  { %v2213_v15 = vsel %vm2212_vm1, %v5181_v34, %v2209_v52  ;;  %vm2222_vm14 = vmor %vm2220_vm13, %vm2221_vm12 }
 0xc0d   :  { %v2216_v5 = vmul.f32 %v5183_v53, %v2215_v1  ;;  %v2227_v2 = vmul.f32 %v2213_v15, %v6261_v56  ;;  %v2352_v56 = vld [vmem:[%s7403_s13 + $0x38] sm:$0xff] }
 0xc0e   :  { %2381 = vmatpush.msrb.mxu3 %v2352_v56 }
 0xc0f   :  { %v2217_v14 = vmul.f32 0.5, %v2216_v5  ;;  %v2235_v62 = vmul.f32 %v6290_v36, %v2227_v2 }
 0xc10   :  { %2382 = vmatpush.msrb.mxu3 %v2351_v31 }
 0xc11   :  { %v2218_v26 = vsub.f32 1.5, %v2217_v14  ;;  %v2243_v7 = vadd.f32 %v6295_v44, %v2235_v62 }
 0xc13   :  { %v2219_v41 = vmul.f32 %v5183_v53, %v2218_v26  ;;  %4813 = vmatmul.msk.f32.gmra.mxu1 %vm127_vm3, %v2243_v7 }
 0xc15   :  { %v2223_v61 = vsel %vm2222_vm14, %v5183_v53, %v2219_v41 }
 0xc16   :  { %v2228_v21 = vmul.f32 %v2223_v61, %v6268_v33  ;;  %v2350_v33 = vld [vmem:[%s7403_s13 + $0x28] sm:$0xff] }
 0xc17   :  { %2383 = vmatpush.msrb.mxu3 %v2350_v33 }
 0xc18   :  { %v2236_v18 = vmul.f32 %v6290_v36, %v2228_v21  ;;  %v2347_v36 = vld [vmem:[%s7403_s13 + $0x10] sm:$0xff] }
 0xc19   :  { %2384 = vmatpush.msrb.mxu3 %v2349_v32 }
 0xc1a   :  { %v2244_v55 = vadd.f32 %v6295_v44, %v2236_v18 }
 0xc1b   :  { %2385 = vmatpush.msrb.mxu3 %v2348_v4 }
 0xc1c   :  { %4814 = vmatmul.msk.f32.gmra.mxu1 %vm127_vm3, %v2244_v55 }
 0xc1d   :  { %2386 = vmatpush.msrb.mxu3 %v2347_v36 }
 0xc1f   :  { %2387 = vmatpush.msrb.mxu3 %v2346_v51  ;;  %v5056_v51 = vld [vmem:[%s7404_s14] ss:$0 sm:$0xff] }
 0xc21   :  { %2388 = vmatpush.msrb.mxu3 %v2345_v8 }
 0xc60   :  { %v2285_v44 = vpop.f32.mrf.mxu1 }
 0xc61   :  { %v2286_v63 = vadd.f32 %v5055_v11, %v2285_v44 }
 0xc63   :  { %v2305_v49 = vmul.f32 0.044715, %v2286_v63  ;;  %v2300_v27 = vmul.f32 0.5, %v2286_v63 }
 0xc65   :  { %v2310_v0 = vmul.f32 %v2305_v49, %v2286_v63 }
 0xc67   :  { %v2315_v3 = vmul.f32 %v2310_v0, %v2286_v63 }
 0xc68   :  { %v2288_v38 = vpop.f32.mrf.mxu1 }
 0xc69   :  { %v2320_v10 = vadd.f32 %v2315_v3, %v2286_v63  ;;  %v2289_v24 = vadd.f32 %v5055_v11, %v2288_v38 }
 0xc6b   :  { %v2325_v39 = vmul.f32 0.7978846, %v2320_v10  ;;  %v2306_v6 = vmul.f32 0.044715, %v2289_v24  ;;  %v2301_v37 = vmul.f32 0.5, %v2289_v24 }
 0xc6d   :  { %5184 = vtanh.f32 %v2325_v39  ;;  %v2311_v13 = vmul.f32 %v2306_v6, %v2289_v24 }
 0xc6f   :  { %v2316_v17 = vmul.f32 %v2311_v13, %v2289_v24 }
 0xc71   :  { %v2321_v19 = vadd.f32 %v2316_v17, %v2289_v24 }
 0xc73   :  { %v5185_v30 = vpop.eup %5184  ;;  %v2326_v16 = vmul.f32 0.7978846, %v2321_v19 }
 0xc74   :  { %v2335_v22 = vadd.f32 1.0, %v5185_v30 }
 0xc75   :  { %5186 = vtanh.f32 %v2326_v16 }
 0xc76   :  { %v2340_v42 = vmul.f32 %v2335_v22, %v2300_v27 }
 0xc78   :  { %4815 = vmatmul.msk.f32.vlgmr.msrb.gmra.mxu3 %vm7430_vm15, %v2340_v42 }
 0xc7b   :  { %v5187_v47 = vpop.eup %5186 }
 0xc7c   :  { %v2336_v12 = vadd.f32 1.0, %v5187_v47 }
 0xc7e   :  { %v2341_v25 = vmul.f32 %v2336_v12, %v2301_v37 }
 0xc80   :  { %v2291_v20 = vpop.f32.mrf.mxu1  ;;  %4816 = vmatmul.msk.f32.gmra.mxu3 %vm7430_vm15, %v2341_v25 }
 0xc81   :  { %v2292_v35 = vadd.f32 %v5055_v11, %v2291_v20 }
 0xc83   :  { %v2307_v45 = vmul.f32 0.044715, %v2292_v35  ;;  %v2302_v50 = vmul.f32 0.5, %v2292_v35 }
 0xc85   :  { %v2312_v54 = vmul.f32 %v2307_v45, %v2292_v35 }
 0xc87   :  { %v2317_v58 = vmul.f32 %v2312_v54, %v2292_v35 }
 0xc89   :  { %v2322_v34 = vadd.f32 %v2317_v58, %v2292_v35 }
 0xc8b   :  { %v2327_v57 = vmul.f32 0.7978846, %v2322_v34 }
 0xc8d   :  { %5188 = vtanh.f32 %v2327_v57 }
 0xc90   :  { %v2294_v60 = vpop.f32.mrf.mxu1 }
 0xc91   :  { %v2295_v43 = vadd.f32 %v5055_v11, %v2294_v60 }
 0xc93   :  { %v5189_v9 = vpop.eup %5188  ;;  %v2308_v59 = vmul.f32 0.044715, %v2295_v43  ;;  %v2303_v18 = vmul.f32 0.5, %v2295_v43 }
 0xc94   :  { %v2337_v53 = vadd.f32 1.0, %v5189_v9 }
 0xc95   :  { %v2313_v52 = vmul.f32 %v2308_v59, %v2295_v43 }
 0xc96   :  { %v2342_v1 = vmul.f32 %v2337_v53, %v2302_v50  ;;  %v4825_v50 = vld [vmem:[%s7395_s5 + $0x38] sm:$0xff]  ;;  %v4824_v53 = vld [vmem:[%s7395_s5 + $0x30] sm:$0xff] }
 0xc97   :  { %v2318_v15 = vmul.f32 %v2313_v52, %v2295_v43  ;;  %2577 = vmatpush.msra.mxu2 %v4825_v50  ;;  %v4823_v52 = vld [vmem:[%s7395_s5 + $0x28] sm:$0xff] }
 0xc98   :  { %4817 = vmatmul.msk.f32.gmra.mxu3 %vm7430_vm15, %v2342_v1  ;;  %v4822_v1 = vld [vmem:[%s7395_s5 + $0x20] sm:$0xff] }
 0xc99   :  { %v2297_v5 = vpop.f32.mrf.mxu1  ;;  %v2323_v2 = vadd.f32 %v2318_v15, %v2295_v43  ;;  %2578 = vmatpush.msra.mxu2 %v4824_v53 }
 0xc9a   :  { %v2298_v14 = vadd.f32 %v5055_v11, %v2297_v5 }
 0xc9b   :  { %v2328_v62 = vmul.f32 0.7978846, %v2323_v2  ;;  %2579 = vmatpush.msra.mxu2 %v4823_v52 }
 0xc9c   :  { %v2309_v26 = vmul.f32 0.044715, %v2298_v14  ;;  %v2304_v32 = vmul.f32 0.5, %v2298_v14 }
 0xc9d   :  { %5190 = vtanh.f32 %v2328_v62  ;;  %2580 = vmatpush.msra.mxu2 %v4822_v1 }
 0xc9e   :  { %v2314_v7 = vmul.f32 %v2309_v26, %v2298_v14 }
 0xca0   :  { %v2319_v41 = vmul.f32 %v2314_v7, %v2298_v14 }
 0xca2   :  { %v2324_v61 = vadd.f32 %v2319_v41, %v2298_v14 }
 0xca3   :  { %v5191_v21 = vpop.eup %5190 }
 0xca4   :  { %v2338_v55 = vadd.f32 1.0, %v5191_v21  ;;  %v2329_v56 = vmul.f32 0.7978846, %v2324_v61 }
 0xca6   :  { %v2343_v31 = vmul.f32 %v2338_v55, %v2303_v18  ;;  %5192 = vtanh.f32 %v2329_v56 }
 0xca8   :  { %4818 = vmatmul.msk.f32.gmra.mxu3 %vm7430_vm15, %v2343_v31 }
 0xcac   :  { %v5193_v33 = vpop.eup %5192 }
 0xcad   :  { %v2339_v4 = vadd.f32 1.0, %v5193_v33 }
 0xcaf   :  { %v2344_v36 = vmul.f32 %v2339_v4, %v2304_v32 }
 0xcb1   :  { %4819 = vmatmul.msk.f32.gmra.mxu3 %vm7430_vm15, %v2344_v36 }
 0xcfb   :  { %v2390_v8 = vpop.f32.mrf.mxu3 }
 0xcfc   :  { %v2391_v11 = vadd.f32 %v5056_v51, %v2390_v8  ;;  %v6431_v8 = vld [vmem:[%s7393_s3 + $0x1] ss:$0 sm:$0xff] }
 0xcfe   :  { %v6355_v44 = vadd.f32 %v2391_v11, %v6222_v29 }
 0xd00   :  { %v2414_v63 = vsel %vm127_vm3, %v6355_v44, 0.0 }
 0xd01   :  { %2415 = vadd.xlane.f32.xlu2 %v2414_v63 }
 0xd03   :  { %v2393_v49 = vpop.f32.mrf.mxu3 }
 0xd04   :  { %v2394_v0 = vadd.f32 %v5056_v51, %v2393_v49 }
 0xd06   :  { %v6360_v3 = vadd.f32 %v2394_v0, %v6226_v28  ;;  %v6437_v0 = vld [vmem:[%s7394_s4 + $0x1] ss:$0 sm:$0xff] }
 0xd08   :  { %7442 = vst [vmem:[#allocation8_spill] sm:$0xff] %v6360_v3  ;;  %v2417_v38 = vsel %vm127_vm3, %v6360_v3, 0.0 }
 0xd09   :  { %2418 = vadd.xlane.f32.xlu0 %v2417_v38 }
 0xd1b   :  { %v2396_v10 = vpop.f32.mrf.mxu3 }
 0xd1c   :  { %v2397_v24 = vadd.f32 %v5056_v51, %v2396_v10 }
 0xd1e   :  { %v6365_v39 = vadd.f32 %v2397_v24, %v6230_v23 }
 0xd20   :  { %7443 = vst [vmem:[#allocation9_spill] sm:$0xff] %v6365_v39  ;;  %v2420_v29 = vsel %vm127_vm3, %v6365_v39, 0.0 }
 0xd21   :  { %2421 = vadd.xlane.f32.xlu1 %v2420_v29 }
 0xd2b   :  { %v2399_v6 = vpop.f32.mrf.mxu3 }
 0xd2c   :  { %v2400_v13 = vadd.f32 %v5056_v51, %v2399_v6 }
 0xd2e   :  { %v6370_v17 = vadd.f32 %v2400_v13, %v6234_v46 }
 0xd30   :  { %7444 = vst [vmem:[#allocation10_spill] sm:$0xff] %v6370_v17  ;;  %v2423_v28 = vsel %vm127_vm3, %v6370_v17, 0.0 }
 0xd31   :  { %2424 = vadd.xlane.f32.xlu0 %v2423_v28 }
 0xd34   :  { %v2402_v23 = vpop.f32.mrf.mxu3 }
 0xd35   :  { %v2403_v22 = vadd.f32 %v5056_v51, %v2402_v23 }
 0xd37   :  { %v6383_v37 = vadd.f32 %v2403_v22, %v6238_v48 }
 0xd39   :  { %7445 = vst [vmem:[#allocation11_spill] sm:$0xff] %v6383_v37  ;;  %v2426_v35 = vsel %vm154_vm5, %v6383_v37, 0.0 }
 0xd74   :  { %v2416_v19 = vpop.xlane.xlu2 %2415 }
 0xd75   :  { %v2429_v30 = vmul.f32 %v2416_v19, %v5506_v40 }
 0xd77   :  { %v6376_v16 = vsub.f32 %v6355_v44, %v2429_v30 }
 0xd79   :  { %v2439_v27 = vmul.f32 %v6376_v16, %v6376_v16 }
 0xd7b   :  { %v2444_v42 = vsel %vm127_vm3, %v2439_v27, 0.0 }
 0xd7c   :  { %2445 = vadd.xlane.f32.xlu2 %v2444_v42  ;;  %v2419_v46 = vpop.xlane.xlu0 %2418 }
 0xd7d   :  { %v2430_v47 = vmul.f32 %v2419_v46, %v5506_v40 }
 0xd7f   :  { %v6386_v12 = vsub.f32 %v6360_v3, %v2430_v47 }
 0xd81   :  { %v2440_v25 = vmul.f32 %v6386_v12, %v6386_v12 }
 0xd83   :  { %v2447_v20 = vsel %vm127_vm3, %v2440_v25, 0.0 }
 0xd84   :  { %2448 = vadd.xlane.f32.xlu1 %v2447_v20  ;;  %2427 = vadd.xlane.f32.xlu2 %v2426_v35 }
 0xd94   :  { %v2422_v45 = vpop.xlane.xlu1 %2421 }
 0xd95   :  { %v2431_v54 = vmul.f32 %v2422_v45, %v5506_v40 }
 0xd97   :  { %v6395_v58 = vsub.f32 %v6365_v39, %v2431_v54 }
 0xd99   :  { %v2441_v48 = vmul.f32 %v6395_v58, %v6395_v58 }
 0xd9b   :  { %v2450_v34 = vsel %vm127_vm3, %v2441_v48, 0.0 }
 0xd9c   :  { %2451 = vadd.xlane.f32.xlu0 %v2450_v34 }
 0xda4   :  { %v2425_v57 = vpop.xlane.xlu0 %2424 }
 0xda5   :  { %v2432_v60 = vmul.f32 %v2425_v57, %v5506_v40 }
 0xda7   :  { %v6402_v43 = vsub.f32 %v6370_v17, %v2432_v60 }
 0xda9   :  { %v2442_v9 = vmul.f32 %v6402_v43, %v6402_v43 }
 0xdab   :  { %v2453_v59 = vsel %vm127_vm3, %v2442_v9, 0.0 }
 0xdac   :  { %2454 = vadd.xlane.f32.xlu1 %v2453_v59 }
 0xdef   :  { %v2446_v15 = vpop.xlane.xlu2 %2445 }
 0xdf0   :  { %v2459_v5 = vmul.f32 %v2446_v15, %v5506_v40 }
 0xdf2   :  { %v2464_v2 = vadd.f32 1e-05, %v2459_v5 }
 0xdf4   :  { %5194 = vrsqrt.f32 %v2464_v2  ;;  %vm2475_vm1 = vweird.f32 %v2464_v2 }
 0xdf7   :  { %v2428_v14 = vpop.xlane.xlu2 %2427  ;;  %v2449_v62 = vpop.xlane.xlu1 %2448 }
 0xdf8   :  { %v2433_v26 = vmul.f32 %v2428_v14, %v5506_v40  ;;  %v2460_v7 = vmul.f32 %v2449_v62, %v5506_v40 }
 0xdfa   :  { %v5195_v41 = vpop.eup %5194  ;;  %v6423_v61 = vsub.f32 %v6383_v37, %v2433_v26  ;;  %v2465_v21 = vadd.f32 1e-05, %v2460_v7 }
 0xdfb   :  { %v2470_v18 = vmul.f32 %v5195_v41, %v2464_v2  ;;  %vm2476_vm0 = vweird.f32 %v5195_v41 }
 0xdfc   :  { %5196 = vrsqrt.f32 %v2465_v21  ;;  %v2443_v55 = vmul.f32 %v6423_v61, %v6423_v61  ;;  %vm2477_vm12 = vmor %vm2475_vm1, %vm2476_vm0  ;;  %vm2485_vm14 = vweird.f32 %v2465_v21 }
 0xdfd   :  { %v2471_v56 = vmul.f32 %v5195_v41, %v2470_v18 }
 0xdfe   :  { %v2456_v31 = vsel %vm154_vm5, %v2443_v55, 0.0 }
 0xdff   :  { %v2472_v33 = vmul.f32 0.5, %v2471_v56  ;;  %2457 = vadd.xlane.f32.xlu2 %v2456_v31 }
 0xe01   :  { %v2473_v32 = vsub.f32 1.5, %v2472_v33  ;;  %v5059_v33 = vld [vmem:[%s7396_s6 + $0x1] ss:$0 sm:$0xff]  ;;  %s7446_s6 = smov 80  }
 0xe02   :  { %v5197_v4 = vpop.eup %5196 }
 0xe03   :  { %v2474_v36 = vmul.f32 %v5195_v41, %v2473_v32  ;;  %v2480_v51 = vmul.f32 %v5197_v4, %v2465_v21  ;;  %vm2486_vm13 = vweird.f32 %v5197_v4 }
 0xe04   :  { %vm2487_vm15 = vmor %vm2485_vm14, %vm2486_vm13 }
 0xe05   :  { %v2478_v11 = vsel %vm2477_vm12, %v5195_v41, %v2474_v36  ;;  %v2481_v63 = vmul.f32 %v5197_v4, %v2480_v51 }
 0xe06   :  { %v2519_v49 = vmul.f32 %v2478_v11, %v6376_v16 }
 0xe07   :  { %v2482_v38 = vmul.f32 0.5, %v2481_v63 }
 0xe08   :  { %v2527_v10 = vmul.f32 %v6431_v8, %v2519_v49 }
 0xe09   :  { %v2483_v24 = vsub.f32 1.5, %v2482_v38 }
 0xe0a   :  { %v2535_v29 = vadd.f32 %v6437_v0, %v2527_v10 }
 0xe0b   :  { %v2484_v6 = vmul.f32 %v5197_v4, %v2483_v24 }
 0xe0c   :  { %4827 = vmatmul.msk.f32.vlgmr.msra.gmra.mxu2 %vm127_vm3, %v2535_v29 }
 0xe0d   :  { %v2488_v13 = vsel %vm2487_vm15, %v5197_v4, %v2484_v6 }
 0xe0e   :  { %v2520_v28 = vmul.f32 %v2488_v13, %v6386_v12 }
 0xe0f   :  { %v2452_v19 = vpop.xlane.xlu0 %2451 }
 0xe10   :  { %v2461_v30 = vmul.f32 %v2452_v19, %v5506_v40  ;;  %v2528_v16 = vmul.f32 %v6431_v8, %v2520_v28 }
 0xe12   :  { %v2466_v23 = vadd.f32 1e-05, %v2461_v30  ;;  %v2536_v27 = vadd.f32 %v6437_v0, %v2528_v16 }
 0xe14   :  { %5198 = vrsqrt.f32 %v2466_v23  ;;  %4828 = vmatmul.msk.f32.gmra.mxu2 %vm127_vm3, %v2536_v27  ;;  %vm2495_vm0 = vweird.f32 %v2466_v23 }
 0xe1a   :  { %v5199_v22 = vpop.eup %5198 }
 0xe1b   :  { %v2490_v42 = vmul.f32 %v5199_v22, %v2466_v23  ;;  %vm2496_vm15 = vweird.f32 %v5199_v22 }
 0xe1c   :  { %vm2497_vm1 = vmor %vm2495_vm0, %vm2496_vm15 }
 0xe1d   :  { %v2491_v46 = vmul.f32 %v5199_v22, %v2490_v42 }
 0xe1f   :  { %v2492_v47 = vmul.f32 0.5, %v2491_v46  ;;  %v2455_v25 = vpop.xlane.xlu1 %2454 }
 0xe20   :  { %v2462_v20 = vmul.f32 %v2455_v25, %v5506_v40 }
 0xe21   :  { %v2493_v35 = vsub.f32 1.5, %v2492_v47 }
 0xe22   :  { %v2467_v12 = vadd.f32 1e-05, %v2462_v20 }
 0xe23   :  { %v2494_v45 = vmul.f32 %v5199_v22, %v2493_v35 }
 0xe24   :  { %5200 = vrsqrt.f32 %v2467_v12  ;;  %vm2505_vm13 = vweird.f32 %v2467_v12 }
 0xe25   :  { %v2498_v54 = vsel %vm2497_vm1, %v5199_v22, %v2494_v45 }
 0xe26   :  { %v2521_v48 = vmul.f32 %v2498_v54, %v6395_v58 }
 0xe28   :  { %v2529_v34 = vmul.f32 %v6431_v8, %v2521_v48 }
 0xe2a   :  { %v5201_v57 = vpop.eup %5200  ;;  %v2537_v60 = vadd.f32 %v6437_v0, %v2529_v34 }
 0xe2b   :  { %v2500_v9 = vmul.f32 %v5201_v57, %v2467_v12  ;;  %vm2506_vm12 = vweird.f32 %v5201_v57 }
 0xe2c   :  { %4829 = vmatmul.msk.f32.gmra.mxu2 %vm127_vm3, %v2537_v60  ;;  %vm2507_vm14 = vmor %vm2505_vm13, %vm2506_vm12 }
 0xe2d   :  { %v2501_v59 = vmul.f32 %v5201_v57, %v2500_v9 }
 0xe2f   :  { %v2502_v50 = vmul.f32 0.5, %v2501_v59 }
 0xe31   :  { %v2503_v53 = vsub.f32 1.5, %v2502_v50 }
 0xe33   :  { %v2504_v52 = vmul.f32 %v5201_v57, %v2503_v53 }
 0xe35   :  { %v2508_v1 = vsel %vm2507_vm14, %v5201_v57, %v2504_v52 }
 0xe36   :  { %v2522_v15 = vmul.f32 %v2508_v1, %v6402_v43 }
 0xe38   :  { %v2530_v58 = vmul.f32 %v6431_v8, %v2522_v15 }
 0xe3a   :  { %v2538_v5 = vadd.f32 %v6437_v0, %v2530_v58 }
 0xe3c   :  { %4830 = vmatmul.msk.f32.gmra.mxu2 %vm127_vm3, %v2538_v5 }
 0xe72   :  { %v2458_v2 = vpop.xlane.xlu2 %2457 }
 0xe73   :  { %v2463_v14 = vmul.f32 %v2458_v2, %v5506_v40 }
 0xe75   :  { %v2468_v62 = vadd.f32 1e-05, %v2463_v14 }
 0xe77   :  { %5202 = vrsqrt.f32 %v2468_v62  ;;  %vm2515_vm0 = vweird.f32 %v2468_v62 }
 0xe7d   :  { %v5203_v26 = vpop.eup %5202 }
 0xe7e   :  { %v2510_v7 = vmul.f32 %v5203_v26, %v2468_v62  ;;  %vm2516_vm15 = vweird.f32 %v5203_v26 }
 0xe7f   :  { %vm2517_vm1 = vmor %vm2515_vm0, %vm2516_vm15 }
 0xe80   :  { %v2511_v41 = vmul.f32 %v5203_v26, %v2510_v7 }
 0xe82   :  { %v2512_v21 = vmul.f32 0.5, %v2511_v41 }
 0xe84   :  { %v2513_v18 = vsub.f32 1.5, %v2512_v21 }
 0xe86   :  { %v2514_v55 = vmul.f32 %v5203_v26, %v2513_v18 }
 0xe88   :  { %v2518_v43 = vsel %vm2517_vm1, %v5203_v26, %v2514_v55 }
 0xe89   :  { %v2523_v56 = vmul.f32 %v2518_v43, %v6423_v61 }
 0xe8b   :  { %v2531_v31 = vmul.f32 %v6431_v8, %v2523_v56 }
 0xe8d   :  { %v2539_v32 = vadd.f32 %v6437_v0, %v2531_v31 }
 0xe8f   :  { %v2582_v4 = vpop.f32.mrf.mxu2  ;;  %4831 = vmatmul.msk.f32.gmra.mxu2 %vm127_vm3, %v2539_v32 }
 0xe90   :  { %v2583_v36 = vadd.f32 %v5059_v33, %v2582_v4 }
 0xe92   :  { %3233 = vrot.lane.b32.xlu1 %v2583_v36, %s5358_s25  ;;  %2799 = vrot.lane.b32.xlu0 %v2583_v36, %s5353_s21 }
 0xe93   :  { %2805 = vrot.lane.b32.xlu2 %v2583_v36, %s5354_s2 }
 0xe97   :  { %v2585_v51 = vpop.f32.mrf.mxu2 }
 0xe98   :  { %v2586_v61 = vadd.f32 %v5059_v33, %v2585_v51 }
 0xe9a   :  { %3022 = vrot.lane.b32.xlu1 %v2583_v36, %s5359_s27  ;;  %3239 = vrot.lane.b32.xlu0 %v2583_v36, %s5356_s23  ;;  %v6469_v8 = vpack.i.bf16 %v2583_v36, %v2586_v61 }
 0xe9b   :  { %2600 = vrot.lane.b32.xlu2 %v2583_v36, %s5352_s20 }
 0xea2   :  { %2807 = vrot.lane.b32.xlu1 %v2586_v61, %s5354_s2  ;;  %2801 = vrot.lane.b32.xlu0 %v2586_v61, %s5353_s21 }
 0xea3   :  { %3016 = vrot.lane.b32.xlu2 %v2583_v36, %s7446_s6 }
 0xeaa   :  { %2602 = vrot.lane.b32.xlu1 %v2586_v61, %s5352_s20  ;;  %3235 = vrot.lane.b32.xlu0 %v2586_v61, %s5358_s25 }
 0xeab   :  { %3241 = vrot.lane.b32.xlu2 %v2586_v61, %s5356_s23 }
 0xeaf   :  { %v2588_v11 = vpop.f32.mrf.mxu2 }
 0xeb0   :  { %v6478_v63 = vadd.f32 %v5059_v33, %v2588_v11 }
 0xeb2   :  { %4832 = vmatpush.xpose.msk.msrb.mxu0 %vm340_vm8, %v6478_v63  ;;  %3018 = vrot.lane.b32.xlu1 %v2586_v61, %s7446_s6  ;;  %v3452_v38 = vrot.slane %v6478_v63, 1 }
 0xeb3   :  { %2809 = vrot.lane.b32.xlu0 %v6478_v63, %s5354_s2  ;;  %3024 = vrot.lane.b32.xlu2 %v2586_v61, %s5359_s27 }
 0xeb6   :  { %4833 = vmatpush.xpose.msk.msrb.mxu0 %vm340_vm8, %v2586_v61 }
 0xeba   :  { %3243 = vrot.lane.b32.xlu1 %v6478_v63, %s5356_s23  ;;  %4834 = vmatpush.xpose.msk.msrb.mxu0 %vm340_vm8, %v2583_v36 }
 0xebb   :  { %2803 = vrot.lane.b32.xlu0 %v6478_v63, %s5353_s21  ;;  %3026 = vrot.lane.b32.xlu2 %v6478_v63, %s5359_s27 }
 0xebf   :  { %v2591_v49 = vpop.f32.mrf.mxu2 }
 0xec0   :  { %v2592_v0 = vadd.f32 %v5059_v33, %v2591_v49 }
 0xec2   :  { %v3453_v10 = vrot.slane %v2592_v0, 1  ;;  %3020 = vrot.lane.b32.xlu1 %v6478_v63, %s7446_s6 }
 0xec3   :  { %2604 = vrot.lane.b32.xlu0 %v6478_v63, %s5352_s20 }
 0xec4   :  { %v6500_v24 = vsel %vm117_vm2, %v3452_v38, %v3453_v10 }
 0xec5   :  { %3656 = vrot.lane.b32.xlu2 %v6500_v24, %s5353_s21 }
 0xeca   :  { %4090 = vrot.lane.b32.xlu1 %v6500_v24, %s5358_s25 }
 0xecb   :  { %3237 = vrot.lane.b32.xlu0 %v6478_v63, %s5358_s25 }
 0xecd   :  { %3457 = vrot.lane.b32.xlu2 %v6500_v24, %s5352_s20 }
 0xed2   :  { %3879 = vrot.lane.b32.xlu1 %v6500_v24, %s5359_s27 }
 0xed3   :  { %3662 = vrot.lane.b32.xlu0 %v6500_v24, %s5354_s2 }
 0xed5   :  { %3873 = vrot.lane.b32.xlu2 %v6500_v24, %s7446_s6 }
 0xedb   :  { %4096 = vrot.lane.b32.xlu0 %v6500_v24, %s5356_s23 }
 0xeed   :  { %v2806_v29 = vpop.permute.xlu2 %2805 }
 0xef5   :  { %v2601_v6 = vpop.permute.xlu2 %2600 }
 0xef6   :  { %4835 = vmatmul.msk.f32.vlgmr.msrb.gmra.mxu0 %vm340_vm8, %v2601_v6 }
 0xefd   :  { %v3017_v13 = vpop.permute.xlu2 %3016 }
 0xf04   :  { %v3234_v28 = vpop.permute.xlu1 %3233  ;;  %v2800_v19 = vpop.permute.xlu0 %2799 }
 0xf05   :  { %v3242_v30 = vpop.permute.xlu2 %3241 }
 0xf0c   :  { %v3023_v16 = vpop.permute.xlu1 %3022  ;;  %v3240_v23 = vpop.permute.xlu0 %3239 }
 0xf0d   :  { %v3025_v27 = vpop.permute.xlu2 %3024 }
 0xf12   :  { %v2594_v22 = vpop.f32.mrf.mxu2 }
 0xf13   :  { %v2595_v42 = vadd.f32 %v5059_v33, %v2594_v22 }
 0xf14   :  { %v2808_v46 = vpop.permute.xlu1 %2807  ;;  %v2802_v47 = vpop.permute.xlu0 %2801 }
 0xf15   :  { %v6519_v25 = vrot.slane %v2595_v42, 1  ;;  %v3027_v20 = vpop.permute.xlu2 %3026 }
 0xf16   :  { %4852 = vmatpush.xpose.msk.msra.mxu0 %vm340_vm8, %v3027_v20 }
 0xf17   :  { %3666 = vrot.lane.b32.xlu1 %v6519_v25, %s5354_s2  ;;  %3660 = vrot.lane.b32.xlu0 %v6519_v25, %s5353_s21  ;;  %v3456_v45 = vsel %vm117_vm2, %v3453_v10, %v6519_v25 }
 0xf18   :  { %3883 = vrot.lane.b32.xlu2 %v6519_v25, %s5359_s27  ;;  %v6589_v53 = vpack.i.bf16 %v6500_v24, %v3456_v45 }
 0xf1a   :  { %4853 = vmatpush.xpose.msk.msra.mxu0 %vm340_vm8, %v3025_v27 }
 0xf1c   :  { %v2603_v35 = vpop.permute.xlu1 %2602  ;;  %v3236_v12 = vpop.permute.xlu0 %3235 }
 0xf1d   :  { %4836 = vmatmul.msk.f32.gmra.mxu0 %vm340_vm8, %v2603_v35 }
 0xf1e   :  { %4854 = vmatpush.xpose.msk.msra.mxu0 %vm340_vm8, %v3023_v16 }
 0xf1f   :  { %4100 = vrot.lane.b32.xlu1 %v6519_v25, %s5356_s23  ;;  %3461 = vrot.lane.b32.xlu0 %v6519_v25, %s5352_s20  ;;  %v3657_v9 = vpop.permute.xlu2 %3656 }
 0xf20   :  { %3664 = vrot.lane.b32.xlu2 %v3456_v45, %s5354_s2  ;;  %s7448_s2 = smov 40  }
 0xf22   :  { %4872 = vmatpush.xpose.msk.msrb.mxu0 %vm340_vm8, %v6519_v25 }
 0xf24   :  { %v3019_v54 = vpop.permute.xlu1 %3018 }
 0xf25   :  { %v2810_v48 = vpop.permute.xlu0 %2809 }
 0xf26   :  { %4873 = vmatpush.xpose.msk.msrb.mxu0 %vm340_vm8, %v3456_v45  ;;  %4842 = vmatpush.xpose.msk.msra.mxu3 %vm340_vm8, %v2810_v48 }
 0xf27   :  { %4094 = vrot.lane.b32.xlu1 %v6519_v25, %s5358_s25  ;;  %5010 = vrot.lane.b32.xlu0 %v6469_v8, %s7447_s1  ;;  %v3458_v50 = vpop.permute.xlu2 %3457 }
 0xf28   :  { %3877 = vrot.lane.b32.xlu2 %v6519_v25, %s7446_s6 }
 0xf2a   :  { %4874 = vmatpush.xpose.msk.msrb.mxu0 %vm340_vm8, %v6500_v24  ;;  %4843 = vmatpush.xpose.msk.msra.mxu3 %vm340_vm8, %v2808_v46 }
 0xf2c   :  { %v3244_v34 = vpop.permute.xlu1 %3243 }
 0xf2d   :  { %v2804_v57 = vpop.permute.xlu0 %2803 }
 0xf2e   :  { %4844 = vmatpush.xpose.msk.msra.mxu3 %vm340_vm8, %v2806_v29 }
 0xf2f   :  { %2960 = vrot.lane.b32.xlu1 %v6478_v63, %s7447_s1  ;;  %3394 = vrot.lane.b32.xlu0 %v6478_v63, %s7448_s2  ;;  %v6601_v1 = vpop.permute.xlu2 %3873 }
 0xf30   :  { %2755 = vrot.lane.b32.xlu2 %v6478_v63, %s7449_s24 }
 0xf31   :  { %4845 = vmatmul.msk.f32.vlgmr.msra.gmra.mxu3 %vm340_vm8, %v2800_v19 }
 0xf32   :  { %4862 = vmatpush.xpose.msk.msrb.mxu3 %vm340_vm8, %v3244_v34 }
 0xf34   :  { %v3021_v59 = vpop.permute.xlu1 %3020 }
 0xf35   :  { %v2605_v60 = vpop.permute.xlu0 %2604 }
 0xf36   :  { %4863 = vmatpush.xpose.msk.msrb.mxu3 %vm340_vm8, %v3242_v30  ;;  %4837 = vmatmul.msk.f32.gmra.mxu0 %vm340_vm8, %v2605_v60 }
 0xf37   :  { %5015 = vrot.lane.b32.xlu1 %v6469_v8, %s7449_s24  ;;  %3658 = vrot.lane.b32.xlu0 %v3456_v45, %s5353_s21  ;;  %s7466_s21 = smov 16  }
 0xf38   :  { %4098 = vrot.lane.b32.xlu2 %v3456_v45, %s5356_s23  ;;  %s7467_s23 = smov 24  }
 0xf39   :  { %4846 = vmatmul.msk.f32.gmra.mxu3 %vm340_vm8, %v2802_v47 }
 0xf3a   :  { %4864 = vmatpush.xpose.msk.msrb.mxu3 %vm340_vm8, %v3240_v23 }
 0xf3c   :  { %v6604_v58 = vpop.permute.xlu1 %4090 }
 0xf3d   :  { %v3238_v52 = vpop.permute.xlu0 %3237 }
 0xf3e   :  { %4855 = vmatmul.msk.f32.vlgmr.msra.gmra.mxu0 %vm340_vm8, %v3017_v13 }
 0xf3f   :  { %3459 = vrot.lane.b32.xlu1 %v3456_v45, %s5352_s20  ;;  %3177 = vrot.lane.b32.xlu0 %v6478_v63, %s7450_s28  ;;  %s7465_s20 = smov 8  }
 0xf40   :  { %5020 = vrot.lane.b32.xlu2 %v6469_v8, %s7448_s2 }
 0xf41   :  { %4847 = vmatmul.msk.f32.gmra.mxu3 %vm340_vm8, %v2804_v57 }
 0xf44   :  { %v3880_v14 = vpop.permute.xlu1 %3879 }
 0xf45   :  { %v3663_v5 = vpop.permute.xlu0 %3662 }
 0xf46   :  { %4856 = vmatmul.msk.f32.gmra.mxu0 %vm340_vm8, %v3019_v54 }
 0xf47   :  { %3612 = vrot.lane.b32.xlu1 %v6519_v25, %s7449_s24  ;;  %4092 = vrot.lane.b32.xlu0 %v3456_v45, %s5358_s25 }
 0xf48   :  { %3881 = vrot.lane.b32.xlu2 %v3456_v45, %s5359_s27 }
 0xf49   :  { %4865 = vmatmul.msk.f32.vlgmr.msrb.gmra.mxu3 %vm340_vm8, %v3234_v28 }
 0xf4d   :  { %v4097_v62 = vpop.permute.xlu0 %4096 }
 0xf4e   :  { %4857 = vmatmul.msk.f32.gmra.mxu0 %vm340_vm8, %v3021_v59 }
 0xf4f   :  { %4251 = vrot.lane.b32.xlu1 %v6519_v25, %s7448_s2  ;;  %3875 = vrot.lane.b32.xlu0 %v3456_v45, %s7446_s6 }
 0xf50   :  { %5025 = vrot.lane.b32.xlu2 %v6469_v8, %s7450_s28 }
 0xf51   :  { %4866 = vmatmul.msk.f32.gmra.mxu3 %vm340_vm8, %v3236_v12 }
 0xf56   :  { %4875 = vmatmul.msk.f32.vlgmr.msrb.gmra.mxu0 %vm340_vm8, %v3458_v50 }
 0xf57   :  { %5040 = vrot.lane.b32.xlu1 %v6589_v53, %s7448_s2 }
 0xf58   :  { %3817 = vrot.lane.b32.xlu2 %v6519_v25, %s7447_s1 }
 0xf59   :  { %4867 = vmatmul.msk.f32.gmra.mxu3 %vm340_vm8, %v3238_v52 }
 0xf60   :  { %5030 = vrot.lane.b32.xlu2 %v6589_v53, %s7447_s1 }
 0xf68   :  { %5035 = vrot.lane.b32.xlu2 %v6589_v53, %s7449_s24 }
 0xf72   :  { %v3884_v15 = vpop.permute.xlu2 %3883 }
 0xf73   :  { %4892 = vmatpush.xpose.msk.msra.mxu0 %vm340_vm8, %v3884_v15  ;;  %v2635_v7 = vpop.f32.mrf.mxu0 }
 0xf74   :  { %v6610_v55 = vmul.f32 0.35355338, %v2635_v7 }
 0xf76   :  { %v2647_v43 = vsel %vm382_vm10, %v6610_v55, -inf }
 0xf7a   :  { %v3665_v2 = vpop.permute.xlu2 %3664 }
 0xf82   :  { %v6606_v26 = vpop.permute.xlu2 %3877 }
 0xf89   :  { %v3667_v41 = vpop.permute.xlu1 %3666  ;;  %v3661_v21 = vpop.permute.xlu0 %3660 }
 0xf8a   :  { %v2756_v18 = vpop.permute.xlu2 %2755  ;;  %4882 = vmatpush.xpose.msk.msra.mxu3 %vm340_vm8, %v3667_v41 }
 0xf8b   :  { %4838 = vmatpush.msk.msrb.mxu1 %vm505_vm9, %v2756_v18 }
 0xf8e   :  { %4883 = vmatpush.xpose.msk.msra.mxu3 %vm340_vm8, %v3665_v2 }
 0xf91   :  { %2648 = vmax.xlane.f32.xlu2 %v2647_v43  ;;  %v4101_v56 = vpop.permute.xlu1 %4100  ;;  %v3462_v31 = vpop.permute.xlu0 %3461 }
 0xf92   :  { %v4099_v33 = vpop.permute.xlu2 %4098  ;;  %4884 = vmatpush.xpose.msk.msra.mxu3 %vm340_vm8, %v3663_v5 }
 0xf95   :  { %4885 = vmatmul.msk.f32.vlgmr.msra.gmra.mxu3 %vm340_vm8, %v3657_v9 }
 0xf96   :  { %4902 = vmatpush.xpose.msk.msrb.mxu3 %vm340_vm8, %v4101_v56 }
 0xf99   :  { %v6619_v32 = vpop.permute.xlu1 %4094  ;;  %v5011_v4 = vpop.permute.xlu0 %5010 }
 0xf9a   :  { %4903 = vmatpush.xpose.msk.msrb.mxu3 %vm340_vm8, %v4099_v33  ;;  %v5021_v36 = vpop.permute.xlu2 %5020  ;;  %v2638_v51 = vpop.f32.mrf.mxu0  ;;  %v5012_v63 = vunpack.i.l.bf16 %v5011_v4  ;;  %v5013_v38 = vunpack.i.h.bf16 %v5011_v4 }
 0xf9b   :  { %v6622_v61 = vmul.f32 0.35355338, %v2638_v51  ;;  %v5022_v10 = vunpack.i.l.bf16 %v5021_v36  ;;  %v5023_v24 = vunpack.i.h.bf16 %v5021_v36 }
 0xf9d   :  { %v2650_v8 = vsel %vm382_vm10, %v6622_v61, -inf }
 0xf9e   :  { %4904 = vmatpush.xpose.msk.msrb.mxu3 %vm340_vm8, %v4097_v62  ;;  %2651 = vmax.xlane.f32.xlu0 %v2650_v8 }
 0xfa1   :  { %v2961_v11 = vpop.permute.xlu1 %2960  ;;  %v3395_v49 = vpop.permute.xlu0 %3394 }
 0xfa2   :  { %v3882_v0 = vpop.permute.xlu2 %3881  ;;  %4848 = vmatpush.msk.msrb.mxu2 %vm505_vm9, %v2961_v11 }
 0xfa3   :  { %4893 = vmatpush.xpose.msk.msra.mxu0 %vm340_vm8, %v3882_v0 }
 0xfa4   :  { %2989 = vmatpush.msrb.mxu2 %v5012_v63 }
 0xfa6   :  { %2990 = vmatpush.msrb.mxu2 %v5013_v38 }
 0xfa7   :  { %4894 = vmatpush.xpose.msk.msra.mxu0 %vm340_vm8, %v3880_v14 }
 0xfa8   :  { %4868 = vmatpush.msk.msra.mxu2 %vm505_vm9, %v3395_v49 }
 0xfa9   :  { %v5016_v29 = vpop.permute.xlu1 %5015  ;;  %v3659_v13 = vpop.permute.xlu0 %3658 }
 0xfaa   :  { %3423 = vmatpush.msra.mxu2 %v5022_v10  ;;  %v5017_v6 = vunpack.i.l.bf16 %v5016_v29  ;;  %4886 = vmatmul.msk.f32.gmra.mxu3 %vm340_vm8, %v3659_v13  ;;  %v5018_v28 = vunpack.i.h.bf16 %v5016_v29  ;;  %v5026_v19 = vpop.permute.xlu2 %5025 }
 0xfab   :  { %v5027_v23 = vunpack.i.l.bf16 %v5026_v19  ;;  %v5028_v46 = vunpack.i.h.bf16 %v5026_v19 }
 0xfac   :  { %3424 = vmatpush.msra.mxu2 %v5023_v24  ;;  %2784 = vmatpush.msrb.mxu1 %v5017_v6 }
 0xfae   :  { %2785 = vmatpush.msrb.mxu1 %v5018_v28 }
 0xfb1   :  { %v3460_v30 = vpop.permute.xlu1 %3459  ;;  %v3178_v16 = vpop.permute.xlu0 %3177 }
 0xfb2   :  { %4876 = vmatmul.msk.f32.gmra.mxu0 %vm340_vm8, %v3460_v30  ;;  %4858 = vmatpush.msk.msra.mxu1 %vm505_vm9, %v3178_v16 }
 0xfb3   :  { %v2641_v27 = vpop.f32.mrf.mxu0  ;;  %4887 = vmatmul.msk.f32.gmra.mxu3 %vm340_vm8, %v3661_v21 }
 0xfb4   :  { %v6634_v22 = vmul.f32 0.35355338, %v2641_v27  ;;  %v2840_v42 = vpop.f32.mrf.mxu3  ;;  %3206 = vmatpush.msra.mxu1 %v5027_v23 }
 0xfb5   :  { %v6636_v47 = vmul.f32 0.35355338, %v2840_v42 }
 0xfb6   :  { %v2653_v20 = vsel %vm389_vm11, %v6634_v22, -inf  ;;  %3207 = vmatpush.msra.mxu1 %v5028_v46 }
 0xfb7   :  { %2654 = vmax.xlane.f32.xlu2 %v2653_v20  ;;  %v2852_v35 = vsel %vm382_vm10, %v6636_v47, -inf }
 0xfb8   :  { %2853 = vmax.xlane.f32.xlu1 %v2852_v35 }
 0xfb9   :  { %v4093_v34 = vpop.permute.xlu0 %4092 }
 0xfba   :  { %4877 = vmatmul.msk.f32.gmra.mxu0 %vm340_vm8, %v3462_v31 }
 0xfbb   :  { %v3057_v12 = vpop.f32.mrf.mxu0  ;;  %4905 = vmatmul.msk.f32.vlgmr.msrb.gmra.mxu3 %vm340_vm8, %v6604_v58 }
 0xfbc   :  { %v6645_v45 = vmul.f32 0.35355338, %v3057_v12  ;;  %v2843_v54 = vpop.f32.mrf.mxu3 }
 0xfbd   :  { %v6660_v58 = vmul.f32 0.35355338, %v2843_v54 }
 0xfbe   :  { %v3069_v48 = vsel %vm382_vm10, %v6645_v45, -inf }
 0xfbf   :  { %3070 = vmax.xlane.f32.xlu2 %v3069_v48  ;;  %v2855_v14 = vsel %vm382_vm10, %v6660_v58, -inf }
 0xfc1   :  { %v3876_v15 = vpop.permute.xlu0 %3875 }
 0xfc2   :  { %4895 = vmatmul.msk.f32.vlgmr.msra.gmra.mxu0 %vm340_vm8, %v6601_v1 }
 0xfc3   :  { %v3060_v57 = vpop.f32.mrf.mxu0  ;;  %4906 = vmatmul.msk.f32.gmra.mxu3 %vm340_vm8, %v4093_v34 }
 0xfc4   :  { %v6652_v60 = vmul.f32 0.35355338, %v3060_v57  ;;  %v2846_v9 = vpop.f32.mrf.mxu3 }
 0xfc5   :  { %v6654_v59 = vmul.f32 0.35355338, %v2846_v9 }
 0xfc6   :  { %v3072_v50 = vsel %vm382_vm10, %v6652_v60, -inf }
 0xfc7   :  { %3073 = vmax.xlane.f32.xlu0 %v3072_v50  ;;  %v2858_v52 = vsel %vm389_vm11, %v6654_v59, -inf }
 0xfc8   :  { %2859 = vmax.xlane.f32.xlu1 %v2858_v52 }
 0xfca   :  { %4896 = vmatmul.msk.f32.gmra.mxu0 %vm340_vm8, %v3876_v15 }
 0xfcb   :  { %v3063_v1 = vpop.f32.mrf.mxu0  ;;  %4907 = vmatmul.msk.f32.gmra.mxu3 %vm340_vm8, %v6619_v32  ;;  %v6687_v32 = vpop.permute.xlu1 %3612 }
 0xfcc   :  { %v6665_v5 = vmul.f32 0.35355338, %v3063_v1  ;;  %v3274_v2 = vpop.f32.mrf.mxu3 }
 0xfcd   :  { %v6681_v31 = vmul.f32 0.35355338, %v3274_v2 }
 0xfce   :  { %v3075_v62 = vsel %vm389_vm11, %v6665_v5, -inf }
 0xfcf   :  { %2856 = vmax.xlane.f32.xlu0 %v2855_v14  ;;  %3076 = vmax.xlane.f32.xlu2 %v3075_v62  ;;  %v3286_v33 = vsel %vm382_vm10, %v6681_v31, -inf }
 0xfd2   :  { %4897 = vmatmul.msk.f32.gmra.mxu0 %vm340_vm8, %v6606_v26  ;;  %v6685_v26 = vpop.permute.xlu2 %3817 }
 0xfd3   :  { %v3492_v7 = vpop.f32.mrf.mxu0  ;;  %v6691_v36 = vpop.permute.xlu1 %4251 }
 0xfd4   :  { %v6673_v41 = vmul.f32 0.35355338, %v3492_v7  ;;  %v3277_v21 = vpop.f32.mrf.mxu3 }
 0xfd5   :  { %v6675_v18 = vmul.f32 0.35355338, %v3277_v21 }
 0xfd6   :  { %v3504_v43 = vsel %vm382_vm10, %v6673_v41, -inf }
 0xfd7   :  { %3505 = vmax.xlane.f32.xlu1 %v3504_v43  ;;  %v3289_v56 = vsel %vm382_vm10, %v6675_v18, -inf }
 0xfd8   :  { %3290 = vmax.xlane.f32.xlu0 %v3289_v56 }
 0xfda   :  { %v6689_v4 = vpop.permute.xlu2 %5030 }
 0xfdb   :  { %v6695_v63 = vpop.permute.xlu1 %5040 }
 0xfdc   :  { %v3280_v8 = vpop.f32.mrf.mxu3 }
 0xfdd   :  { %v6729_v1 = vmul.f32 0.35355338, %v3280_v8 }
 0xfdf   :  { %3287 = vmax.xlane.f32.xlu1 %v3286_v33  ;;  %v3292_v43 = vsel %vm389_vm11, %v6729_v1, -inf }
 0xfe2   :  { %v6693_v51 = vpop.permute.xlu2 %5035 }
0x1004   :  { %v2649_v11 = vpop.xlane.xlu2 %2648 }
0x1005   :  { %v2656_v0 = vsub.f32 %v6610_v55, %v2649_v11 }
0x1007   :  { %v2659_v29 = vmul.f32 1.442695, %v2656_v0 }
0x1011   :  { %v2652_v27 = vpop.xlane.xlu0 %2651 }
0x1012   :  { %v2657_v12 = vsub.f32 %v6622_v61, %v2652_v27 }
0x1014   :  { %v2661_v52 = vmul.f32 1.442695, %v2657_v12 }
0x1018   :  { %v6697_v49 = vpop.f32.mrf.mxu3 }
0x102a   :  { %v2655_v38 = vpop.xlane.xlu2 %2654 }
0x102b   :  { %v2658_v10 = vsub.f32 %v6634_v22, %v2655_v38  ;;  %v2854_v24 = vpop.xlane.xlu1 %2853 }
0x102c   :  { %v2861_v13 = vsub.f32 %v6636_v47, %v2854_v24 }
0x102d   :  { %v2663_v6 = vmul.f32 1.442695, %v2658_v10  ;;  %v3700_v28 = vpop.f32.mrf.mxu3 }
0x102e   :  { %v6702_v19 = vmul.f32 0.35355338, %v3700_v28  ;;  %v2864_v23 = vmul.f32 1.442695, %v2861_v13 }
0x102f   :  { %5204 = vpow2.f32 %v2663_v6  ;;  %v3495_v30 = vpop.f32.mrf.mxu0 }
0x1030   :  { %5206 = vpow2.f32 %v2659_v29  ;;  %v6704_v16 = vmul.f32 0.35355338, %v3495_v30  ;;  %v3712_v55 = vsel %vm382_vm10, %v6702_v19, -inf  ;;  %v6755_v30 = vmul.f32 0.35355338, %v6697_v49 }
0x1031   :  { %3713 = vmax.xlane.f32.xlu0 %v3712_v55  ;;  %5208 = vpow2.f32 %v2864_v23 }
0x1032   :  { %v3507_v22 = vsel %vm382_vm10, %v6704_v16, -inf  ;;  %v3071_v34 = vpop.xlane.xlu2 %3070  ;;  %5210 = vpow2.f32 %v2661_v52 }
0x1033   :  { %3508 = vmax.xlane.f32.xlu1 %v3507_v22  ;;  %v3078_v55 = vsub.f32 %v6645_v45, %v3071_v34 }
0x1035   :  { %v6710_v42 = vpop.eup %5204  ;;  %v3081_v49 = vmul.f32 1.442695, %v3078_v55 }
0x1036   :  { %v6712_v46 = vpop.eup %5206  ;;  %v3703_v47 = vpop.f32.mrf.mxu3  ;;  %v2671_v20 = vsel %vm389_vm11, %v6710_v42, 0.0 }
0x1037   :  { %2672 = vadd.xlane.f32.xlu2 %v2671_v20  ;;  %v3498_v35 = vpop.f32.mrf.mxu0  ;;  %v2665_v48 = vsel %vm382_vm10, %v6712_v46, 0.0  ;;  %v6725_v50 = vpop.eup %5208  ;;  %v6727_v15 = vmul.f32 0.35355338, %v3703_v47 }
0x1038   :  { %v6717_v54 = vmul.f32 0.35355338, %v3498_v35  ;;  %v2870_v2 = vsel %vm382_vm10, %v6725_v50, 0.0  ;;  %v6741_v0 = vpop.eup %5210  ;;  %v3709_v35 = vsel %vm382_vm10, %v6755_v30, -inf }
0x1039   :  { %2666 = vadd.xlane.f32.xlu0 %v2665_v48  ;;  %v3715_v62 = vsel %vm389_vm11, %v6727_v15, -inf  ;;  %v2668_v29 = vsel %vm382_vm10, %v6741_v0, 0.0 }
0x103a   :  { %v6721_v57 = vpop.xlane.xlu0 %3073  ;;  %v3510_v9 = vsel %vm389_vm11, %v6717_v54, -inf }
0x103b   :  { %3511 = vmax.xlane.f32.xlu1 %v3510_v9  ;;  %v2860_v14 = vpop.xlane.xlu1 %2859  ;;  %v3079_v52 = vsub.f32 %v6652_v60, %v6721_v57 }
0x103e   :  { %v6731_v61 = vpop.f32.mrf.mxu3 }
0x103f   :  { %2871 = vadd.xlane.f32.xlu2 %v2870_v2  ;;  %v3914_v56 = vpop.f32.mrf.mxu0 }
0x1040   :  { %v6743_v38 = vmul.f32 0.35355338, %v3914_v56 }
0x1041   :  { %3716 = vmax.xlane.f32.xlu0 %v3715_v62 }
0x1042   :  { %v2857_v7 = vpop.xlane.xlu0 %2856  ;;  %v3077_v21 = vpop.xlane.xlu2 %3076  ;;  %v3926_v13 = vsel %vm382_vm10, %v6743_v38, -inf }
0x1043   :  { %v2862_v33 = vsub.f32 %v6660_v58, %v2857_v7  ;;  %3293 = vmax.xlane.f32.xlu1 %v3292_v43  ;;  %v3080_v11 = vsub.f32 %v6665_v5, %v3077_v21  ;;  %v2863_v5 = vsub.f32 %v6654_v59, %v2860_v14  ;;  %v3083_v21 = vmul.f32 1.442695, %v3079_v52 }
0x1045   :  { %v2866_v8 = vmul.f32 1.442695, %v2862_v33  ;;  %v3085_v24 = vmul.f32 1.442695, %v3080_v11  ;;  %v2868_v27 = vmul.f32 1.442695, %v2863_v5 }
0x1046   :  { %v4134_v10 = vpop.f32.mrf.mxu3 }
0x1047   :  { %5212 = vpow2.f32 %v2866_v8  ;;  %v6752_v28 = vmul.f32 0.35355338, %v4134_v10  ;;  %v3917_v22 = vpop.f32.mrf.mxu0 }
0x1048   :  { %5214 = vpow2.f32 %v3085_v24  ;;  %v6769_v34 = vmul.f32 0.35355338, %v3917_v22 }
0x1049   :  { %2669 = vadd.xlane.f32.xlu0 %v2668_v29  ;;  %v4146_v47 = vsel %vm382_vm10, %v6752_v28, -inf  ;;  %5216 = vpow2.f32 %v2868_v27  ;;  %v6797_v29 = vmul.f32 0.35355338, %v6731_v61 }
0x104a   :  { %v3506_v6 = vpop.xlane.xlu1 %3505  ;;  %5218 = vpow2.f32 %v3081_v49  ;;  %v3929_v62 = vsel %vm382_vm10, %v6769_v34, -inf }
0x104b   :  { %3927 = vmax.xlane.f32.xlu1 %v3926_v13  ;;  %v3513_v57 = vsub.f32 %v6673_v41, %v3506_v6  ;;  %v4143_v6 = vsel %vm382_vm10, %v6797_v29, -inf  ;;  %v3291_v61 = vpop.xlane.xlu0 %3290 }
0x104d   :  { %v6749_v58 = vpop.eup %5212  ;;  %v3516_v10 = vmul.f32 1.442695, %v3513_v57 }
0x104e   :  { %v2873_v23 = vsel %vm382_vm10, %v6749_v58, 0.0  ;;  %v4137_v20 = vpop.f32.mrf.mxu3  ;;  %v6764_v12 = vpop.eup %5214 }
0x104f   :  { %2874 = vadd.xlane.f32.xlu2 %v2873_v23  ;;  %v6766_v48 = vmul.f32 0.35355338, %v4137_v20  ;;  %v3093_v9 = vsel %vm389_vm11, %v6764_v12, 0.0  ;;  %v6779_v7 = vpop.eup %5216 }
0x1050   :  { %v6781_v43 = vpop.eup %5218  ;;  %v2876_v60 = vsel %vm389_vm11, %v6779_v7, 0.0 }
0x1051   :  { %4147 = vmax.xlane.f32.xlu0 %v4146_v47  ;;  %v4149_v14 = vsel %vm389_vm11, %v6766_v48, -inf  ;;  %v3087_v33 = vsel %vm382_vm10, %v6781_v43, 0.0  ;;  %v3296_v47 = vsub.f32 %v6675_v18, %v3291_v61 }
0x1052   :  { %v3288_v59 = vpop.xlane.xlu1 %3287 }
0x1053   :  { %3710 = vmax.xlane.f32.xlu1 %v3709_v35  ;;  %v3295_v45 = vsub.f32 %v6681_v31, %v3288_v59  ;;  %v3920_v31 = vpop.f32.mrf.mxu0  ;;  %v3300_v59 = vmul.f32 1.442695, %v3296_v47 }
0x1054   :  { %v6783_v56 = vmul.f32 0.35355338, %v3920_v31 }
0x1055   :  { %v3298_v2 = vmul.f32 1.442695, %v3295_v45 }
0x1056   :  { %v3932_v8 = vsel %vm389_vm11, %v6783_v56, -inf }
0x1057   :  { %3094 = vadd.xlane.f32.xlu2 %v3093_v9  ;;  %5220 = vpow2.f32 %v3298_v2 }
0x1058   :  { %5222 = vpow2.f32 %v3083_v21 }
0x1059   :  { %4150 = vmax.xlane.f32.xlu0 %v4149_v14  ;;  %5224 = vpow2.f32 %v3516_v10 }
0x105b   :  { %3930 = vmax.xlane.f32.xlu1 %v3929_v62 }
0x105d   :  { %v6792_v11 = vpop.eup %5220 }
0x105e   :  { %v6794_v24 = vpop.eup %5222  ;;  %v3304_v13 = vsel %vm382_vm10, %v6792_v11, 0.0 }
0x105f   :  { %2877 = vadd.xlane.f32.xlu2 %v2876_v60  ;;  %v3090_v41 = vsel %vm382_vm10, %v6794_v24, 0.0  ;;  %v6805_v5 = vpop.eup %5224 }
0x1060   :  { %v3522_v23 = vsel %vm382_vm10, %v6805_v5, 0.0 }
0x1061   :  { %3088 = vadd.xlane.f32.xlu0 %v3087_v33 }
0x1063   :  { %3933 = vmax.xlane.f32.xlu1 %v3932_v8 }
0x1067   :  { %3305 = vadd.xlane.f32.xlu2 %v3304_v13 }
0x1069   :  { %3091 = vadd.xlane.f32.xlu0 %v3090_v41 }
0x106b   :  { %4144 = vmax.xlane.f32.xlu1 %v4143_v6 }
0x1073   :  { %3523 = vadd.xlane.f32.xlu1 %v3522_v23 }
0x10a4   :  { %v3714_v55 = vpop.xlane.xlu0 %3713 }
0x10a6   :  { %v3509_v27 = vpop.xlane.xlu1 %3508 }
0x10a7   :  { %v3514_v22 = vsub.f32 %v6704_v16, %v3509_v27 }
0x10a9   :  { %v3518_v20 = vmul.f32 1.442695, %v3514_v22 }
0x10ab   :  { %5226 = vpow2.f32 %v3518_v20 }
0x10ac   :  { %v6811_v35 = vpop.xlane.xlu0 %2666  ;;  %5228 = vpow2.f32 %v3300_v59 }
0x10ae   :  { %v3512_v49 = vpop.xlane.xlu1 %3511 }
0x10af   :  { %v3515_v45 = vsub.f32 %v6717_v54, %v3512_v49 }
0x10b1   :  { %v6814_v9 = vpop.eup %5226  ;;  %v3520_v52 = vmul.f32 1.442695, %v3515_v45 }
0x10b2   :  { %v3525_v2 = vsel %vm382_vm10, %v6814_v9, 0.0  ;;  %v6818_v18 = vpop.eup %5228 }
0x10b3   :  { %5230 = vpow2.f32 %v3520_v52  ;;  %3526 = vadd.xlane.f32.xlu2 %v3525_v2  ;;  %v3307_v60 = vsel %vm382_vm10, %v6818_v18, 0.0 }
0x10b4   :  { %v3717_v16 = vpop.xlane.xlu0 %3716 }
0x10b5   :  { %v3720_v27 = vsub.f32 %v6727_v15, %v3717_v16 }
0x10b6   :  { %v3294_v14 = vpop.xlane.xlu1 %3293 }
0x10b7   :  { %v3297_v62 = vsub.f32 %v6729_v1, %v3294_v14  ;;  %v3725_v47 = vmul.f32 1.442695, %v3720_v27  ;;  %v6845_v14 = vpop.xlane.xlu2 %2672 }
0x10b9   :  { %v6821_v31 = vpop.eup %5230  ;;  %v3302_v21 = vmul.f32 1.442695, %v3297_v62 }
0x10ba   :  { %v3528_v54 = vsel %vm389_vm11, %v6821_v31, 0.0 }
0x10bb   :  { %5232 = vpow2.f32 %v3302_v21  ;;  %3529 = vadd.xlane.f32.xlu1 %v3528_v54  ;;  %3308 = vadd.xlane.f32.xlu2 %v3307_v60 }
0x10bc   :  { %v6827_v57 = vpop.xlane.xlu0 %2669 }
0x10bd   :  { %vm2694_vm15 = vweird.f32 %v6827_v57 }
0x10be   :  { %v3928_v33 = vpop.xlane.xlu1 %3927 }
0x10bf   :  { %v3935_v8 = vsub.f32 %v6743_v38, %v3928_v33 }
0x10c1   :  { %v6830_v10 = vpop.eup %5232  ;;  %v3938_v1 = vmul.f32 1.442695, %v3935_v8  ;;  %v6862_v8 = vpop.xlane.xlu2 %2871 }
0x10c2   :  { %v3310_v13 = vsel %vm389_vm11, %v6830_v10, 0.0 }
0x10c3   :  { %5234 = vpow2.f32 %v3938_v1  ;;  %3311 = vadd.xlane.f32.xlu2 %v3310_v13 }
0x10c4   :  { %v4148_v41 = vpop.xlane.xlu0 %4147 }
0x10c6   :  { %v3711_v6 = vpop.xlane.xlu1 %3710 }
0x10c7   :  { %v3718_v23 = vsub.f32 %v6755_v30, %v3711_v6  ;;  %v3719_v30 = vsub.f32 %v6702_v19, %v3714_v55 }
0x10c9   :  { %v6835_v61 = vpop.eup %5234  ;;  %v3721_v22 = vmul.f32 1.442695, %v3718_v23  ;;  %v3723_v62 = vmul.f32 1.442695, %v3719_v30  ;;  %v6870_v27 = vpop.xlane.xlu2 %2874 }
0x10ca   :  { %v3944_v38 = vsel %vm382_vm10, %v6835_v61, 0.0 }
0x10cb   :  { %5236 = vpow2.f32 %v3721_v22  ;;  %3945 = vadd.xlane.f32.xlu0 %v3944_v38 }
0x10cc   :  { %v4151_v20 = vpop.xlane.xlu0 %4150  ;;  %5238 = vpow2.f32 %v3725_v47 }
0x10cd   :  { %v4154_v59 = vsub.f32 %v6766_v48, %v4151_v20  ;;  %v4153_v20 = vsub.f32 %v6752_v28, %v4148_v41 }
0x10ce   :  { %v3931_v49 = vpop.xlane.xlu1 %3930 }
0x10cf   :  { %v3936_v45 = vsub.f32 %v6769_v34, %v3931_v49  ;;  %v4159_v52 = vmul.f32 1.442695, %v4154_v59  ;;  %v4157_v49 = vmul.f32 1.442695, %v4153_v20 }
0x10d1   :  { %v6842_v2 = vpop.eup %5236  ;;  %v3940_v15 = vmul.f32 1.442695, %v3936_v45  ;;  %5240 = vpow2.f32 %v4159_v52  ;;  %v6879_v45 = vpop.xlane.xlu2 %3094 }
0x10d2   :  { %v3727_v16 = vsel %vm382_vm10, %v6842_v2, 0.0  ;;  %v6849_v21 = vpop.eup %5238 }
0x10d3   :  { %5242 = vpow2.f32 %v3940_v15  ;;  %3728 = vadd.xlane.f32.xlu0 %v3727_v16  ;;  %v3733_v60 = vsel %vm389_vm11, %v6849_v21, 0.0 }
0x10d4   :  { %5244 = vpow2.f32 %v3723_v62  ;;  %v6888_v62 = vpop.xlane.xlu0 %3088 }
0x10d6   :  { %v3934_v48 = vpop.xlane.xlu1 %3933 }
0x10d7   :  { %v6851_v34 = vpop.eup %5240  ;;  %v3937_v19 = vsub.f32 %v6783_v56, %v3934_v48 }
0x10d8   :  { %v4167_v55 = vsel %vm389_vm11, %v6851_v34, 0.0 }
0x10d9   :  { %v6853_v54 = vpop.eup %5242  ;;  %4168 = vadd.xlane.f32.xlu1 %v4167_v55  ;;  %v3942_v1 = vmul.f32 1.442695, %v3937_v19  ;;  %v6892_v19 = vpop.xlane.xlu2 %2877 }
0x10da   :  { %v3947_v33 = vsel %vm382_vm10, %v6853_v54, 0.0  ;;  %v6864_v6 = vpop.eup %5244 }
0x10db   :  { %3734 = vadd.xlane.f32.xlu0 %v3733_v60  ;;  %3948 = vadd.xlane.f32.xlu2 %v3947_v33  ;;  %5246 = vpow2.f32 %v3942_v1  ;;  %v3730_v23 = vsel %vm382_vm10, %v6864_v6, 0.0 }
0x10dc   :  { %5248 = vrcp.f32 %v6811_v35  ;;  %v6911_v37 = vpop.xlane.xlu0 %3091 }
0x10de   :  { %v4145_v13 = vpop.xlane.xlu1 %4144 }
0x10df   :  { %v4152_v56 = vsub.f32 %v6797_v29, %v4145_v13  ;;  %v2685_v13 = vand.u32 2147483648, %v6811_v35 }
0x10e1   :  { %v4155_v22 = vmul.f32 1.442695, %v4152_v56  ;;  %v6872_v38 = vpop.eup %5246  ;;  %v2683_v56 = vand.u32 2147483647, %v6811_v35  ;;  %v6916_v39 = vpop.xlane.xlu2 %3305 }
0x10e2   :  { %v5249_v47 = vpop.eup %5248  ;;  %v3950_v59 = vsel %vm389_vm11, %v6872_v38, 0.0  ;;  %vm2679_vm11 = vweird.f32 %v6811_v35 }
0x10e3   :  { %3731 = vadd.xlane.f32.xlu2 %v3730_v23  ;;  %5250 = vpow2.f32 %v4155_v22  ;;  %v2675_v29 = vmul.f32 %v5249_v47, %v6811_v35  ;;  %vm2680_vm2 = vweird.f32 %v5249_v47  ;;  %vm2684_vm13 = vcmp.eq.f32.partialorder %v2683_v56, 8.507059e+37 }
0x10e4   :  { %5252 = vrcp.f32 %v6827_v57  ;;  %vm2681_vm12 = vmor %vm2679_vm11, %vm2680_vm2 }
0x10e5   :  { %v2676_v30 = vsub.f32 1.0, %v2675_v29  ;;  %5254 = vpow2.f32 %v4157_v49  ;;  %v2686_v49 = vor.u32 1.1754944e-38, %v2685_v13 }
0x10e6   :  { %5256 = vrcp.f32 %v6845_v14 }
0x10e7   :  { %5258 = vrcp.f32 %v6862_v8  ;;  %v2677_v41 = vmul.f32 %v5249_v47, %v2676_v30 }
0x10e8   :  { %5260 = vrcp.f32 %v6870_v27 }
0x10e9   :  { %v6881_v52 = vpop.eup %5250  ;;  %v2678_v60 = vadd.f32 %v5249_v47, %v2677_v41  ;;  %5262 = vrcp.f32 %v6888_v62 }
0x10ea   :  { %v5253_v15 = vpop.eup %5252  ;;  %v4161_v28 = vsel %vm382_vm10, %v6881_v52, 0.0  ;;  %5264 = vrcp.f32 %v6892_v19 }
0x10eb   :  { %3951 = vadd.xlane.f32.xlu2 %v3950_v59  ;;  %v2690_v16 = vmul.f32 %v5253_v15, %v6827_v57  ;;  %v6890_v48 = vpop.eup %5254  ;;  %v2682_v29 = vsel %vm2681_vm12, %v5249_v47, %v2678_v60  ;;  %vm2695_vm14 = vweird.f32 %v5253_v15  ;;  %v2698_v47 = vand.u32 2147483647, %v6827_v57 }
0x10ec   :  { %v6894_v55 = vpop.eup %5256  ;;  %v4164_v23 = vsel %vm382_vm10, %v6890_v48, 0.0  ;;  %v2687_v30 = vsel %vm2684_vm13, %v2686_v49, %v2682_v29  ;;  %vm2696_vm0 = vmor %vm2694_vm15, %vm2695_vm14  ;;  %5266 = vrcp.f32 %v6911_v37  ;;  %vm2709_vm12 = vweird.f32 %v6845_v14 }
0x10ed   :  { %v2691_v33 = vsub.f32 1.0, %v2690_v16  ;;  %v6896_v1 = vpop.eup %5258  ;;  %v2705_v22 = vmul.f32 %v6894_v55, %v6845_v14  ;;  %v2688_v60 = vmul.f32 %v6712_v46, %v2687_v30  ;;  %5268 = vrcp.f32 %v6916_v39 }
0x10ee   :  { %v2880_v20 = vmul.f32 %v6896_v1, %v6862_v8  ;;  %v2715_v46 = vand.u32 2147483648, %v6845_v14  ;;  %vm2699_vm1 = vcmp.eq.f32.partialorder %v2698_v47, 8.507059e+37  ;;  %vm2710_vm2 = vweird.f32 %v6894_v55 }
0x10ef   :  { %v2692_v59 = vmul.f32 %v5253_v15, %v2691_v33  ;;  %v2706_v35 = vsub.f32 1.0, %v2705_v22  ;;  %vm2885_vm11 = vweird.f32 %v6896_v1  ;;  %vm6944_vm13 = vmor %vm2709_vm12, %vm2710_vm2  ;;  %vm2884_vm14 = vweird.f32 %v6862_v8 }
0x10f0   :  { %v2881_v41 = vsub.f32 1.0, %v2880_v20  ;;  %5270 = vrcp.f32 %v6879_v45  ;;  %vm6952_vm15 = vmor %vm2884_vm14, %vm2885_vm11  ;;  %vm2899_vm12 = vweird.f32 %v6870_v27  ;;  %vm3101_vm14 = vweird.f32 %v6888_v62 }
0x10f1   :  { %v2693_v16 = vadd.f32 %v5253_v15, %v2692_v59  ;;  %v2707_v33 = vmul.f32 %v6894_v55, %v2706_v35 }
0x10f2   :  { %v2882_v56 = vmul.f32 %v6896_v1, %v2881_v41 }
0x10f3   :  { %4162 = vadd.xlane.f32.xlu2 %v4161_v28  ;;  %v6909_v28 = vpop.eup %5260  ;;  %v2708_v59 = vadd.f32 %v6894_v55, %v2707_v33 }
0x10f4   :  { %v6913_v17 = vpop.eup %5262  ;;  %v2895_v13 = vmul.f32 %v6909_v28, %v6870_v27  ;;  %v2883_v30 = vadd.f32 %v6896_v1, %v2882_v56  ;;  %vm2900_vm2 = vweird.f32 %v6909_v28 }
0x10f5   :  { %v3097_v22 = vmul.f32 %v6913_v17, %v6888_v62  ;;  %v6933_v35 = vpop.eup %5264  ;;  %vm3102_vm11 = vweird.f32 %v6913_v17 }
0x10f6   :  { %v2896_v29 = vsub.f32 1.0, %v2895_v13  ;;  %v6937_v40 = vpop.eup %5266  ;;  %v2716_v13 = vor.u32 1.1754944e-38, %v2715_v46 }
0x10f7   :  { %v3098_v41 = vsub.f32 1.0, %v3097_v22  ;;  %v2712_v22 = vsel %vm6944_vm13, %v6894_v55, %v2708_v59  ;;  %vm6980_vm13 = vmor %vm2899_vm12, %vm2900_vm2  ;;  %vm3117_vm12 = vweird.f32 %v6937_v40 }
0x10fb   :  { %4165 = vadd.xlane.f32.xlu2 %v4164_v23  ;;  %v2700_v23 = vand.u32 2147483648, %v6827_v57  ;;  %v2697_v57 = vsel %vm2696_vm0, %v5253_v15, %v2693_v16  ;;  %v2713_v15 = vand.u32 2147483647, %v6845_v14  ;;  %v2890_v16 = vand.u32 2147483648, %v6862_v8 }
0x10fc   :  { %v2897_v14 = vmul.f32 %v6909_v28, %v2896_v29 }
0x10fd   :  { %v2701_v20 = vor.u32 1.1754944e-38, %v2700_v23  ;;  %v6942_v23 = vpop.eup %5268  ;;  %vm2714_vm0 = vcmp.eq.f32.partialorder %v2713_v15, 8.507059e+37  ;;  %v2891_v46 = vor.u32 1.1754944e-38, %v2890_v16  ;;  %v3107_v15 = vand.u32 2147483648, %v6888_v62 }
0x10fe   :  { %v3314_v29 = vmul.f32 %v6942_v23, %v6916_v39  ;;  %v2717_v55 = vsel %vm2714_vm0, %v2716_v13, %v2712_v22  ;;  %v2898_v59 = vadd.f32 %v6909_v28, %v2897_v14  ;;  %v6973_v47 = vpop.eup %5270  ;;  %v3105_v14 = vand.u32 2147483647, %v6888_v62 }
0x10ff   :  { %v2702_v49 = vsel %vm2699_vm1, %v2701_v20, %v2697_v57  ;;  %v2910_v57 = vmul.f32 %v6933_v35, %v6892_v19  ;;  %v3112_v20 = vmul.f32 %v6937_v40, %v6911_v37  ;;  %v2718_v56 = vmul.f32 %v6710_v42, %v2717_v55 }
0x1100   :  { %v2703_v33 = vmul.f32 %v6741_v0, %v2702_v49  ;;  %v2887_v0 = vsel %vm6952_vm15, %v6896_v1, %v2883_v30  ;;  %v2905_v49 = vand.u32 2147483648, %v6870_v27  ;;  %v2903_v30 = vand.u32 2147483647, %v6870_v27  ;;  %vm6993_vm15 = vmor %vm3101_vm14, %vm3102_vm11 }
0x1101   :  { %v3113_v3 = vsub.f32 1.0, %v3112_v20  ;;  %v3315_v16 = vsub.f32 1.0, %v3314_v29  ;;  %v3127_v22 = vmul.f32 %v6973_v47, %v6879_v45  ;;  %v2902_v27 = vsel %vm6980_vm13, %v6909_v28, %v2898_v59 }
0x1102   :  { %vm2904_vm0 = vcmp.eq.f32.partialorder %v2903_v30, 8.507059e+37  ;;  %v3108_v62 = vor.u32 1.1754944e-38, %v3107_v15  ;;  %vm3106_vm2 = vcmp.eq.f32.partialorder %v3105_v14, 8.507059e+37  ;;  %vm2915_vm11 = vweird.f32 %v6933_v35 }
0x1103   :  { %v3128_v55 = vsub.f32 1.0, %v3127_v22  ;;  %vm3319_vm13 = vweird.f32 %v6942_v23  ;;  %v3324_v30 = vand.u32 2147483648, %v6916_v39 }
0x1104   :  { %2719 = vxpose.xlu0.b32.start [1/3] (short) (narrow) %v2688_v60, 24  ;;  %v2888_v60 = vand.u32 2147483647, %v6862_v8  ;;  %v3099_v8 = vmul.f32 %v6913_v17, %v3098_v41 }
0x1105   :  { %v3325_v14 = vor.u32 1.1754944e-38, %v3324_v30 }
0x1106   :  { %vm2889_vm1 = vcmp.eq.f32.partialorder %v2888_v60, 8.507059e+37  ;;  %v3100_v1 = vadd.f32 %v6913_v17, %v3099_v8  ;;  %v2906_v8 = vor.u32 1.1754944e-38, %v2905_v49  ;;  %v3322_v60 = vand.u32 2147483647, %v6916_v39 }
0x1107   :  { %v2892_v41 = vsel %vm2889_vm1, %v2891_v46, %v2887_v0  ;;  %v3316_v0 = vmul.f32 %v6942_v23, %v3315_v16  ;;  %vm2914_vm1 = vweird.f32 %v6892_v19  ;;  %v2918_v46 = vand.u32 2147483647, %v6892_v19 }
0x1108   :  { %v2893_v13 = vmul.f32 %v6725_v50, %v2892_v41  ;;  %v3114_v50 = vmul.f32 %v6937_v40, %v3113_v3  ;;  %v3104_v42 = vsel %vm6993_vm15, %v6913_v17, %v3100_v1  ;;  %v2907_v28 = vsel %vm2904_vm0, %v2906_v8, %v2902_v27  ;;  %vm7016_vm14 = vmor %vm2914_vm1, %vm2915_vm11 }
0x1109   :  { %v2920_v3 = vand.u32 2147483648, %v6892_v19  ;;  %v3109_v29 = vsel %vm3106_vm2, %v3108_v62, %v3104_v42  ;;  %v3317_v49 = vadd.f32 %v6942_v23, %v3316_v0  ;;  %v3122_v41 = vand.u32 2147483648, %v6911_v37 }
0x110a   :  { %v3115_v17 = vadd.f32 %v6937_v40, %v3114_v50  ;;  %vm3116_vm15 = vweird.f32 %v6911_v37  ;;  %v3110_v15 = vmul.f32 %v6781_v43, %v3109_v29  ;;  %v3120_v16 = vand.u32 2147483647, %v6911_v37 }
0x110b   :  { %vm3318_vm0 = vweird.f32 %v6916_v39  ;;  %vm7026_vm2 = vmor %vm3116_vm15, %vm3117_vm12  ;;  %v3129_v19 = vmul.f32 %v6973_v47, %v3128_v55  ;;  %v2921_v43 = vor.u32 1.1754944e-38, %v2920_v3  ;;  %vm2919_vm11 = vcmp.eq.f32.partialorder %v2918_v46, 8.507059e+37 }
0x110c   :  { %2720 = vxpose.xlu0.b32.cont [2/3] (short) (narrow) %v2703_v33, 24  ;;  %v2911_v33 = vsub.f32 1.0, %v2910_v57  ;;  %vm3320_vm1 = vmor %vm3318_vm0, %vm3319_vm13  ;;  %v3119_v37 = vsel %vm7026_vm2, %v6937_v40, %v3115_v17  ;;  %vm3121_vm12 = vcmp.eq.f32.partialorder %v3120_v16, 8.507059e+37  ;;  %vm3323_vm15 = vcmp.eq.f32.partialorder %v3322_v60, 8.507059e+37 }
0x110d   :  { %v3321_v39 = vsel %vm3320_vm1, %v6942_v23, %v3317_v49  ;;  %v3130_v8 = vadd.f32 %v6973_v47, %v3129_v19  ;;  %vm3132_vm13 = vweird.f32 %v6973_v47  ;;  %v3135_v23 = vand.u32 2147483647, %v6879_v45 }
0x110e   :  { %v2912_v20 = vmul.f32 %v6933_v35, %v2911_v33  ;;  %v2908_v33 = vmul.f32 %v6749_v58, %v2907_v28  ;;  %v3326_v57 = vsel %vm3323_vm15, %v3325_v14, %v3321_v39 }
0x110f   :  { %v3327_v50 = vmul.f32 %v6792_v11, %v3326_v57  ;;  %vm3136_vm2 = vcmp.eq.f32.partialorder %v3135_v23, 8.507059e+37 }
0x1110   :  { %v2913_v59 = vadd.f32 %v6933_v35, %v2912_v20 }
0x1113   :  { %2924 = vxpose.xlu1.b32.start [1/3] (short) (narrow) %v2893_v13, 24  ;;  %v2917_v13 = vsel %vm7016_vm14, %v6933_v35, %v2913_v59  ;;  %v3137_v35 = vand.u32 2147483648, %v6879_v45  ;;  %vm3131_vm14 = vweird.f32 %v6879_v45 }
0x1114   :  { %2721 = vxpose.xlu0.b32.end [3/3] (short) (narrow) %v2718_v56, 24  ;;  %v3123_v56 = vor.u32 1.1754944e-38, %v3122_v41  ;;  %v2922_v22 = vsel %vm2919_vm11, %v2921_v43, %v2917_v13  ;;  %vm3133_vm0 = vmor %vm3131_vm14, %vm3132_vm13 }
0x1115   :  { %v2923_v40 = vmul.f32 %v6779_v7, %v2922_v22  ;;  %v3134_v42 = vsel %vm3133_vm0, %v6973_v47, %v3130_v8  ;;  %v3138_v62 = vor.u32 1.1754944e-38, %v3137_v35 }
0x1116   :  { %v3124_v27 = vsel %vm3121_vm12, %v3123_v56, %v3119_v37 }
0x1117   :  { %v3125_v20 = vmul.f32 %v6794_v24, %v3124_v27  ;;  %v3139_v28 = vsel %vm3136_vm2, %v3138_v62, %v3134_v42  ;;  %v3524_v24 = vpop.xlane.xlu1 %3523 }
0x1118   :  { %v3140_v46 = vmul.f32 %v6764_v12, %v3139_v28  ;;  %v3540_v62 = vand.u32 2147483647, %v3524_v24 }
0x111b   :  { %2925 = vxpose.xlu1.b32.cont [2/3] (short) (narrow) %v2908_v33, 24 }
0x111c   :  { %3141 = vxpose.xlu0.b32.start [1/3] (short) (narrow) %v3110_v15, 24 }
0x1123   :  { %2926 = vxpose.xlu1.b32.end [3/3] (short) (narrow) %v2923_v40, 24 }
0x1124   :  { %3142 = vxpose.xlu0.b32.cont [2/3] (short) (narrow) %v3125_v20, 24  ;;  %3358 = vxpose.xlu2.b32.start [1/3] (short) (narrow) %v3327_v50, 24  ;;  %v3542_v50 = vand.u32 2147483648, %v3524_v24 }
0x1126   :  { %v7047_v0 = vpop.xlane.xlu2 %3526 }
0x112c   :  { %3143 = vxpose.xlu0.b32.end [3/3] (short) (narrow) %v3140_v46, 24 }
0x112e   :  { %v3309_v7 = vpop.xlane.xlu2 %3308  ;;  %v7051_v33 = vpop.xlane.xlu1 %3529 }
0x112f   :  { %5272 = vrcp.f32 %v3309_v7  ;;  %v3339_v17 = vand.u32 2147483648, %v3309_v7  ;;  %v3337_v49 = vand.u32 2147483647, %v3309_v7  ;;  %vm3333_vm11 = vweird.f32 %v3309_v7 }
0x1130   :  { %5274 = vrcp.f32 %v3524_v24 }
0x1131   :  { %v3340_v16 = vor.u32 1.1754944e-38, %v3339_v17  ;;  %vm3338_vm15 = vcmp.eq.f32.partialorder %v3337_v49, 8.507059e+37 }
0x1135   :  { %v5273_v45 = vpop.eup %5272 }
0x1136   :  { %v3312_v11 = vpop.xlane.xlu2 %3311  ;;  %v3329_v3 = vmul.f32 %v5273_v45, %v3309_v7  ;;  %v5275_v29 = vpop.eup %5274  ;;  %vm3334_vm1 = vweird.f32 %v5273_v45  ;;  %v3543_v7 = vor.u32 1.1754944e-38, %v3542_v50 }
0x1137   :  { %5276 = vrcp.f32 %v3312_v11  ;;  %v3532_v47 = vmul.f32 %v5275_v29, %v3524_v24  ;;  %vm3335_vm12 = vmor %vm3333_vm11, %vm3334_vm1  ;;  %v3354_v13 = vand.u32 2147483648, %v3312_v11  ;;  %v3352_v56 = vand.u32 2147483647, %v3312_v11 }
0x1138   :  { %v3330_v55 = vsub.f32 1.0, %v3329_v3  ;;  %5278 = vrcp.f32 %v7047_v0  ;;  %vm3348_vm14 = vweird.f32 %v3312_v11  ;;  %vm3537_vm1 = vweird.f32 %v5275_v29 }
0x1139   :  { %v3533_v15 = vsub.f32 1.0, %v3532_v47  ;;  %5280 = vrcp.f32 %v7051_v33  ;;  %v3355_v57 = vor.u32 1.1754944e-38, %v3354_v13  ;;  %vm3353_vm2 = vcmp.eq.f32.partialorder %v3352_v56, 8.507059e+37 }
0x113a   :  { %v3331_v59 = vmul.f32 %v5273_v45, %v3330_v55  ;;  %vm3536_vm11 = vweird.f32 %v3524_v24 }
0x113b   :  { %v3534_v14 = vmul.f32 %v5275_v29, %v3533_v15 }
0x113c   :  { %v3332_v12 = vadd.f32 %v5273_v45, %v3331_v59 }
0x113d   :  { %v5277_v41 = vpop.eup %5276  ;;  %v3535_v23 = vadd.f32 %v5275_v29, %v3534_v14 }
0x113e   :  { %v3344_v1 = vmul.f32 %v5277_v41, %v3312_v11  ;;  %v7053_v30 = vpop.xlane.xlu0 %3945  ;;  %v3336_v58 = vsel %vm3335_vm12, %v5273_v45, %v3332_v12  ;;  %v7055_v19 = vpop.eup %5278  ;;  %vm3349_vm13 = vweird.f32 %v5277_v41  ;;  %vm3538_vm12 = vmor %vm3536_vm11, %vm3537_vm1 }
0x113f   :  { %v3341_v37 = vsel %vm3338_vm15, %v3340_v16, %v3336_v58  ;;  %v3547_v22 = vmul.f32 %v7055_v19, %v7047_v0  ;;  %vm3350_vm0 = vmor %vm3348_vm14, %vm3349_vm13  ;;  %v7061_v40 = vpop.eup %5280  ;;  %v3539_v46 = vsel %vm3538_vm12, %v5275_v29, %v3535_v23  ;;  %vm3541_vm15 = vcmp.eq.f32.partialorder %v3540_v62, 8.507059e+37 }
0x1140   :  { %v3345_v60 = vsub.f32 1.0, %v3344_v1  ;;  %v3342_v39 = vmul.f32 %v6818_v18, %v3341_v37  ;;  %v3562_v28 = vmul.f32 %v7061_v40, %v7051_v33  ;;  %v3544_v59 = vsel %vm3541_vm15, %v3543_v7, %v3539_v46 }
0x1141   :  { %v3548_v18 = vsub.f32 1.0, %v3547_v22  ;;  %vm3552_vm13 = vweird.f32 %v7055_v19  ;;  %vm3551_vm14 = vweird.f32 %v7047_v0  ;;  %v3557_v29 = vand.u32 2147483648, %v7047_v0 }
0x1142   :  { %v3346_v43 = vmul.f32 %v5277_v41, %v3345_v60  ;;  %3359 = vxpose.xlu2.b32.cont [2/3] (short) (narrow) %v3342_v39, 24  ;;  %v3545_v49 = vmul.f32 %v6805_v5, %v3544_v59  ;;  %v3555_v1 = vand.u32 2147483647, %v7047_v0  ;;  %vm3567_vm15 = vweird.f32 %v7061_v40 }
0x1143   :  { %v3549_v45 = vmul.f32 %v7055_v19, %v3548_v18  ;;  %v3558_v5 = vor.u32 1.1754944e-38, %v3557_v29  ;;  %v3572_v22 = vand.u32 2147483648, %v7051_v33 }
0x1144   :  { %v3347_v27 = vadd.f32 %v5277_v41, %v3346_v43  ;;  %vm3556_vm12 = vcmp.eq.f32.partialorder %v3555_v1, 8.507059e+37 }
0x1145   :  { %v3550_v24 = vadd.f32 %v7055_v19, %v3549_v45  ;;  %v3573_v23 = vor.u32 1.1754944e-38, %v3572_v22 }
0x1146   :  { %v3729_v8 = vpop.xlane.xlu0 %3728  ;;  %v3351_v35 = vsel %vm3350_vm0, %v5277_v41, %v3347_v27 }
0x1147   :  { %5282 = vrcp.f32 %v3729_v8  ;;  %v3356_v20 = vsel %vm3353_vm2, %v3355_v57, %v3351_v35  ;;  %v3747_v12 = vand.u32 2147483648, %v3729_v8  ;;  %v3745_v16 = vand.u32 2147483647, %v3729_v8  ;;  %vm7079_vm2 = vmor %vm3551_vm14, %vm3552_vm13 }
0x1148   :  { %v3357_v42 = vmul.f32 %v6830_v10, %v3356_v20  ;;  %v3563_v10 = vsub.f32 1.0, %v3562_v28  ;;  %vm3741_vm1 = vweird.f32 %v3729_v8  ;;  %v3554_v13 = vsel %vm7079_vm2, %v7055_v19, %v3550_v24 }
0x1149   :  { %v3748_v37 = vor.u32 1.1754944e-38, %v3747_v12  ;;  %vm3746_vm13 = vcmp.eq.f32.partialorder %v3745_v16, 8.507059e+37  ;;  %v3559_v39 = vsel %vm3556_vm12, %v3558_v5, %v3554_v13  ;;  %vm3566_vm14 = vweird.f32 %v7051_v33 }
0x114a   :  { %3360 = vxpose.xlu2.b32.end [3/3] (short) (narrow) %v3357_v42, 24  ;;  %v3564_v15 = vmul.f32 %v7061_v40, %v3563_v10  ;;  %v3570_v57 = vand.u32 2147483647, %v7051_v33  ;;  %v3560_v35 = vmul.f32 %v6814_v9, %v3559_v39 }
0x114c   :  { %v3565_v14 = vadd.f32 %v7061_v40, %v3564_v15  ;;  %vm3571_vm2 = vcmp.eq.f32.partialorder %v3570_v57, 8.507059e+37 }
0x114d   :  { %v5283_v11 = vpop.eup %5282 }
0x114e   :  { %v3737_v3 = vmul.f32 %v5283_v11, %v3729_v8  ;;  %v7067_v55 = vpop.xlane.xlu0 %3734  ;;  %v7069_v47 = vpop.xlane.xlu2 %3948  ;;  %vm3742_vm0 = vweird.f32 %v5283_v11 }
0x114f   :  { %5284 = vrcp.f32 %v7067_v55  ;;  %vm3743_vm11 = vmor %vm3741_vm1, %vm3742_vm0  ;;  %v3777_v24 = vand.u32 2147483648, %v7067_v55 }
0x1150   :  { %v3738_v17 = vsub.f32 1.0, %v3737_v3  ;;  %vm3568_vm0 = vmor %vm3566_vm14, %vm3567_vm15  ;;  %v7098_v3 = vpop.xlane.xlu1 %4168  ;;  %vm3771_vm14 = vweird.f32 %v7067_v55 }
0x1151   :  { %v3569_v20 = vsel %vm3568_vm0, %v7061_v40, %v3565_v14  ;;  %v3778_v12 = vor.u32 1.1754944e-38, %v3777_v24 }
0x1152   :  { %v3739_v41 = vmul.f32 %v5283_v11, %v3738_v17  ;;  %3576 = vxpose.xlu2.b32.start [1/3] (short) (narrow) %v3545_v49, 24  ;;  %v3574_v28 = vsel %vm3571_vm2, %v3573_v23, %v3569_v20  ;;  %v3775_v49 = vand.u32 2147483647, %v7067_v55 }
0x1153   :  { %v3575_v33 = vmul.f32 %v6821_v31, %v3574_v28 }
0x1154   :  { %v3740_v58 = vadd.f32 %v5283_v11, %v3739_v41  ;;  %vm3776_vm2 = vcmp.eq.f32.partialorder %v3775_v49, 8.507059e+37 }
0x1155   :  { %v5285_v0 = vpop.eup %5284 }
0x1156   :  { %v3732_v43 = vpop.xlane.xlu2 %3731  ;;  %v3744_v56 = vsel %vm3743_vm11, %v5283_v11, %v3740_v58  ;;  %v3767_v8 = vmul.f32 %v5285_v0, %v7067_v55 }
0x1157   :  { %5286 = vrcp.f32 %v3732_v43  ;;  %v3749_v27 = vsel %vm3746_vm13, %v3748_v37, %v3744_v56  ;;  %v3762_v46 = vand.u32 2147483648, %v3732_v43  ;;  %v3760_v9 = vand.u32 2147483647, %v3732_v43 }
0x1158   :  { %v3750_v19 = vmul.f32 %v6842_v2, %v3749_v27  ;;  %v3768_v18 = vsub.f32 1.0, %v3767_v8  ;;  %vm3756_vm11 = vweird.f32 %v3732_v43  ;;  %vm3772_vm13 = vweird.f32 %v5285_v0 }
0x1159   :  { %v3763_v11 = vor.u32 1.1754944e-38, %v3762_v46  ;;  %vm3761_vm15 = vcmp.eq.f32.partialorder %v3760_v9, 8.507059e+37  ;;  %vm3773_vm0 = vmor %vm3771_vm14, %vm3772_vm13 }
0x115a   :  { %3781 = vxpose.xlu1.b32.start [1/3] (short) (narrow) %v3750_v19, 24  ;;  %3577 = vxpose.xlu2.b32.cont [2/3] (short) (narrow) %v3560_v35, 24  ;;  %v3769_v7 = vmul.f32 %v5285_v0, %v3768_v18 }
0x115c   :  { %v3770_v17 = vadd.f32 %v5285_v0, %v3769_v7 }
0x115d   :  { %v5287_v50 = vpop.eup %5286 }
0x115e   :  { %v3752_v42 = vmul.f32 %v5287_v50, %v3732_v43  ;;  %v7095_v62 = vpop.xlane.xlu2 %3951  ;;  %vm3757_vm1 = vweird.f32 %v5287_v50  ;;  %v3774_v41 = vsel %vm3773_vm0, %v5285_v0, %v3770_v17  ;;  %v5037_v17 = vunpack.i.l.bf16 %v6693_v51 }
0x115f   :  { %vm3758_vm12 = vmor %vm3756_vm11, %vm3757_vm1  ;;  %v3779_v15 = vsel %vm3776_vm2, %v3778_v12, %v3774_v41  ;;  %v3964_v12 = vand.u32 2147483648, %v7053_v30 }
0x1160   :  { %v3753_v2 = vsub.f32 1.0, %v3752_v42  ;;  %v3780_v5 = vmul.f32 %v6849_v21, %v3779_v15 }
0x1162   :  { %v3754_v45 = vmul.f32 %v5287_v50, %v3753_v2  ;;  %3578 = vxpose.xlu2.b32.end [3/3] (short) (narrow) %v3575_v33, 24  ;;  %v4211_v2 = vand.u32 2147483648, %v7098_v3  ;;  %v4209_v33 = vand.u32 2147483647, %v7098_v3 }
0x1164   :  { %v3755_v40 = vadd.f32 %v5287_v50, %v3754_v45  ;;  %v4212_v45 = vor.u32 1.1754944e-38, %v4211_v2 }
0x1166   :  { %v4163_v59 = vpop.xlane.xlu2 %4162  ;;  %v3759_v10 = vsel %vm3758_vm12, %v5287_v50, %v3755_v40 }
0x1167   :  { %5288 = vrcp.f32 %v4163_v59  ;;  %v3764_v31 = vsel %vm3761_vm15, %v3763_v11, %v3759_v10  ;;  %v4181_v37 = vand.u32 2147483648, %v4163_v59  ;;  %v4179_v43 = vand.u32 2147483647, %v4163_v59 }
0x1168   :  { %v3765_v29 = vmul.f32 %v6864_v6, %v3764_v31  ;;  %5290 = vrcp.f32 %v7098_v3  ;;  %vm4175_vm11 = vweird.f32 %v4163_v59 }
0x1169   :  { %v4182_v39 = vor.u32 1.1754944e-38, %v4181_v37  ;;  %vm4180_vm15 = vcmp.eq.f32.partialorder %v4179_v43, 8.507059e+37 }
0x116a   :  { %3782 = vxpose.xlu1.b32.cont [2/3] (short) (narrow) %v3765_v29, 24 }
0x116d   :  { %v5289_v1 = vpop.eup %5288 }
0x116e   :  { %v4171_v16 = vmul.f32 %v5289_v1, %v4163_v59  ;;  %v4166_v60 = vpop.xlane.xlu2 %4165  ;;  %v5291_v58 = vpop.eup %5290  ;;  %vm4176_vm1 = vweird.f32 %v5289_v1 }
0x116f   :  { %5292 = vrcp.f32 %v4166_v60  ;;  %v4201_v6 = vmul.f32 %v5291_v58, %v7098_v3  ;;  %vm4177_vm12 = vmor %vm4175_vm11, %vm4176_vm1  ;;  %v4196_v8 = vand.u32 2147483648, %v4166_v60  ;;  %v4194_v23 = vand.u32 2147483647, %v4166_v60 }
0x1170   :  { %v4172_v13 = vsub.f32 1.0, %v4171_v16  ;;  %vm4190_vm14 = vweird.f32 %v4166_v60  ;;  %vm4206_vm1 = vweird.f32 %v5291_v58  ;;  %vm4205_vm11 = vweird.f32 %v7098_v3 }
0x1171   :  { %v4202_v14 = vsub.f32 1.0, %v4201_v6  ;;  %v4197_v18 = vor.u32 1.1754944e-38, %v4196_v8  ;;  %vm4195_vm2 = vcmp.eq.f32.partialorder %v4194_v23, 8.507059e+37  ;;  %5294 = vrcp.f32 %v7053_v30 }
0x1172   :  { %v4173_v55 = vmul.f32 %v5289_v1, %v4172_v13  ;;  %3783 = vxpose.xlu1.b32.end [3/3] (short) (narrow) %v3780_v5, 24  ;;  %5296 = vrcp.f32 %v7069_v47  ;;  %v3965_v16 = vor.u32 1.1754944e-38, %v3964_v12  ;;  %v3979_v6 = vand.u32 2147483648, %v7069_v47 }
0x1173   :  { %v4203_v35 = vmul.f32 %v5291_v58, %v4202_v14  ;;  %5298 = vrcp.f32 %v7095_v62 }
0x1174   :  { %v4174_v56 = vadd.f32 %v5289_v1, %v4173_v55  ;;  %v3977_v55 = vand.u32 2147483647, %v7069_v47  ;;  %v3980_v14 = vor.u32 1.1754944e-38, %v3979_v6  ;;  %v4913_v6 = vld [vmem:[%s7397_s7 + $0x28] sm:$0xff] }
0x1175   :  { %v5293_v0 = vpop.eup %5292  ;;  %v4204_v28 = vadd.f32 %v5291_v58, %v4203_v35 }
0x1176   :  { %v4186_v22 = vmul.f32 %v5293_v0, %v4166_v60  ;;  %v4178_v27 = vsel %vm4177_vm12, %v5289_v1, %v4174_v56  ;;  %vm4191_vm13 = vweird.f32 %v5293_v0  ;;  %vm4207_vm12 = vmor %vm4205_vm11, %vm4206_vm1  ;;  %vm3973_vm11 = vweird.f32 %v7069_v47 }
0x1177   :  { %v4183_v19 = vsel %vm4180_vm15, %v4182_v39, %v4178_v27  ;;  %vm4192_vm0 = vmor %vm4190_vm14, %vm4191_vm13  ;;  %v4208_v7 = vsel %vm4207_vm12, %v5291_v58, %v4204_v28  ;;  %vm4210_vm15 = vcmp.eq.f32.partialorder %v4209_v33, 8.507059e+37  ;;  %v5295_v11 = vpop.eup %5294  ;;  %vm3958_vm14 = vweird.f32 %v7053_v30 }
0x1178   :  { %v4187_v57 = vsub.f32 1.0, %v4186_v22  ;;  %v4184_v21 = vmul.f32 %v6881_v52, %v4183_v19  ;;  %v4213_v9 = vsel %vm4210_vm15, %v4212_v45, %v4208_v7  ;;  %v5297_v10 = vpop.eup %5296  ;;  %vm3959_vm13 = vweird.f32 %v5295_v11 }
0x1179   :  { %v4214_v40 = vmul.f32 %v6851_v34, %v4213_v9  ;;  %v3969_v24 = vmul.f32 %v5297_v10, %v7069_v47  ;;  %v5299_v41 = vpop.eup %5298  ;;  %vm3974_vm1 = vweird.f32 %v5297_v10  ;;  %v5033_v56 = vunpack.i.h.bf16 %v6689_v4 }
0x117a   :  { %v4188_v20 = vmul.f32 %v5293_v0, %v4187_v57  ;;  %4215 = vxpose.xlu2.b32.start [1/3] (short) (narrow) %v4184_v21, 24  ;;  %v3984_v1 = vmul.f32 %v5299_v41, %v7095_v62  ;;  %vm3975_vm12 = vmor %vm3973_vm11, %vm3974_vm1  ;;  %vm3978_vm15 = vcmp.eq.f32.partialorder %v3977_v55, 8.507059e+37  ;;  %v3994_v57 = vand.u32 2147483648, %v7095_v62  ;;  %v4912_v55 = vld [vmem:[%s7397_s7 + $0x20] sm:$0xff] }
0x117b   :  { %v3970_v29 = vsub.f32 1.0, %v3969_v24  ;;  %vm7472_vm11 = vcmask 188544  }
0x117c   :  { %v4189_v50 = vadd.f32 %v5293_v0, %v4188_v20  ;;  %v3985_v13 = vsub.f32 1.0, %v3984_v1  ;;  %v3995_v21 = vor.u32 1.1754944e-38, %v3994_v57 }
0x117e   :  { %v4193_v42 = vsel %vm4192_vm0, %v5293_v0, %v4189_v50  ;;  %vm3960_vm0 = vmor %vm3958_vm14, %vm3959_vm13  ;;  %v3986_v0 = vmul.f32 %v5299_v41, %v3985_v13  ;;  %vm3989_vm13 = vweird.f32 %v5299_v41  ;;  %vm3988_vm14 = vweird.f32 %v7095_v62  ;;  %v4915_v13 = vld [vmem:[%s7397_s7 + $0x38] sm:$0xff] }
0x117f   :  { %v4198_v46 = vsel %vm4195_vm2, %v4197_v18, %v4193_v42  ;;  %v5042_v50 = vunpack.i.l.bf16 %v6695_v63  ;;  %v5043_v18 = vunpack.i.h.bf16 %v6695_v63  ;;  %4349 = vmatpush.msrb.mxu0 %v4915_v13 }
0x1180   :  { %v4199_v52 = vmul.f32 %v6890_v48, %v4198_v46  ;;  %v3954_v48 = vmul.f32 %v5295_v11, %v7053_v30  ;;  %v3987_v27 = vadd.f32 %v5299_v41, %v3986_v0 }
0x1182   :  { %4216 = vxpose.xlu2.b32.cont [2/3] (short) (narrow) %v4199_v52, 24  ;;  %v3955_v3 = vsub.f32 1.0, %v3954_v48 }
0x1184   :  { %v3956_v34 = vmul.f32 %v5295_v11, %v3955_v3 }
0x1186   :  { %v3957_v31 = vadd.f32 %v5295_v11, %v3956_v34 }
0x1188   :  { %v3961_v15 = vsel %vm3960_vm0, %v5295_v11, %v3957_v31  ;;  %vm3990_vm0 = vmor %vm3988_vm14, %vm3989_vm13 }
0x1189   :  { %vm7477_vm14 = vmmov %vm7472_vm11 }
0x118a   :  { %4217 = vxpose.xlu2.b32.end [3/3] (short) (narrow) %v4214_v40, 24 }
0x119a   :  { %4034 = vrot.lane.b32.xlu0 %v6519_v25, %s7450_s28  ;;  %v5038_v25 = vunpack.i.h.bf16 %v6693_v51  ;;  %v3971_v51 = vmul.f32 %v5297_v10, %v3970_v29 }
0x119c   :  { %v3972_v58 = vadd.f32 %v5297_v10, %v3971_v51 }
0x119e   :  { %v3976_v39 = vsel %vm3975_vm12, %v5297_v10, %v3972_v58  ;;  %vm7473_vm12 = vcmask 254144  }
0x119f   :  { %v3981_v22 = vsel %vm3978_vm15, %v3980_v14, %v3976_v39 }
0x11a8   :  { %v2735_v59 = vpop.trf.xlu0 }
0x11a9   :  { %4839 = vmatmul.msk.f32.vlgmr.msrb.gmra.mxu1 %vm382_vm10, %v2735_v59 }
0x11aa   :  { %4878 = vmatpush.msk.msrb.mxu1 %vm505_vm9, %v6687_v32  ;;  %v3962_v32 = vand.u32 2147483647, %v7053_v30  ;;  %v5032_v30 = vunpack.i.l.bf16 %v6689_v4  ;;  %v3982_v4 = vmul.f32 %v6853_v54, %v3981_v22 }
0x11ac   :  { %3641 = vmatpush.msrb.mxu1 %v5037_v17  ;;  %vm3963_vm2 = vcmp.eq.f32.partialorder %v3962_v32, 8.507059e+37 }
0x11ad   :  { %v3966_v60 = vsel %vm3963_vm2, %v3965_v16, %v3961_v15 }
0x11ae   :  { %3642 = vmatpush.msrb.mxu1 %v5038_v25  ;;  %v3967_v43 = vmul.f32 %v6835_v61, %v3966_v60  ;;  %v3991_v61 = vsel %vm3990_vm0, %v5299_v41, %v3987_v27  ;;  %vm7478_vm0 = vmmov %vm7473_vm12 }
0x11b0   :  { %v2736_v49 = vpop.trf.xlu0 }
0x11b1   :  { %4840 = vmatmul.msk.f32.gmra.mxu1 %vm382_vm10, %v2736_v49 }
0x11b7   :  { %v2940_v5 = vpop.trf.xlu1 }
0x11b8   :  { %v2737_v37 = vpop.trf.xlu0  ;;  %4849 = vmatmul.msk.f32.vlgmr.msrb.gmra.mxu2 %vm382_vm10, %v2940_v5 }
0x11b9   :  { %4841 = vmatmul.msk.f32.gmra.mxu1 %vm382_vm10, %v2737_v37  ;;  %4888 = vmatpush.msk.msrb.mxu2 %vm505_vm9, %v6685_v26  ;;  %v3992_v26 = vand.u32 2147483647, %v7095_v62  ;;  %v4914_v37 = vld [vmem:[%s7397_s7 + $0x30] sm:$0xff] }
0x11ba   :  { %4350 = vmatpush.msrb.mxu0 %v4914_v37  ;;  %v4926_v37 = vld [vmem:[%s7401_s11 + $0x30] sm:$0xff] }
0x11bb   :  { %3846 = vmatpush.msrb.mxu2 %v5032_v30  ;;  %vm3993_vm2 = vcmp.eq.f32.partialorder %v3992_v26, 8.507059e+37 }
0x11bc   :  { %3998 = vxpose.xlu0.b32.start [1/3] (short) (narrow) %v3967_v43, 24  ;;  %v3996_v8 = vsel %vm3993_vm2, %v3995_v21, %v3991_v61  ;;  %4351 = vmatpush.msrb.mxu0 %v4913_v6  ;;  %v4925_v6 = vld [vmem:[%s7401_s11 + $0x28] sm:$0xff] }
0x11bd   :  { %3847 = vmatpush.msrb.mxu2 %v5033_v56  ;;  %v3997_v23 = vmul.f32 %v6872_v38, %v3996_v8 }
0x11be   :  { %4352 = vmatpush.msrb.mxu0 %v4912_v55 }
0x11bf   :  { %v2941_v47 = vpop.trf.xlu1 }
0x11c0   :  { %v3157_v19 = vpop.trf.xlu0  ;;  %4850 = vmatmul.msk.f32.gmra.mxu2 %vm382_vm10, %v2941_v47 }
0x11c1   :  { %4859 = vmatmul.msk.f32.vlgmr.msra.gmra.mxu1 %vm382_vm10, %v3157_v19 }
0x11c4   :  { %3999 = vxpose.xlu0.b32.cont [2/3] (short) (narrow) %v3982_v4, 24 }
0x11c7   :  { %v2942_v20 = vpop.trf.xlu1 }
0x11c8   :  { %v3158_v35 = vpop.trf.xlu0  ;;  %4851 = vmatmul.msk.f32.gmra.mxu2 %vm382_vm10, %v2942_v20  ;;  %v7222_v20 = vld [vmem:[%s7398_s8 + $0x1] ss:$0 sm:$0xff] }
0x11c9   :  { %4860 = vmatmul.msk.f32.gmra.mxu1 %vm382_vm10, %v3158_v35 }
0x11cc   :  { %5045 = vrot.lane.b32.xlu1 %v6589_v53, %s7450_s28  ;;  %4000 = vxpose.xlu0.b32.end [3/3] (short) (narrow) %v3997_v23, 24 }
0x11d0   :  { %v3159_v62 = vpop.trf.xlu0 }
0x11d1   :  { %4861 = vmatmul.msk.f32.gmra.mxu1 %vm382_vm10, %v3159_v62 }
0x11d3   :  { %v3374_v54 = vpop.trf.xlu2 }
0x11d4   :  { %4869 = vmatmul.msk.f32.vlgmr.msra.gmra.mxu2 %vm382_vm10, %v3374_v54 }
0x11d5   :  { %4908 = vmatpush.msk.msra.mxu2 %vm505_vm9, %v6691_v36 }
0x11d7   :  { %4280 = vmatpush.msra.mxu2 %v5042_v50 }
0x11d9   :  { %4281 = vmatpush.msra.mxu2 %v5043_v18 }
0x11db   :  { %v3375_v38 = vpop.trf.xlu2 }
0x11dc   :  { %4870 = vmatmul.msk.f32.gmra.mxu2 %vm382_vm10, %v3375_v38 }
0x11e3   :  { %v3376_v53 = vpop.trf.xlu2 }
0x11e4   :  { %4871 = vmatmul.msk.f32.gmra.mxu2 %vm382_vm10, %v3376_v53 }
0x11eb   :  { %v3592_v46 = vpop.trf.xlu2 }
0x11ec   :  { %4879 = vmatmul.msk.f32.vlgmr.msrb.gmra.mxu1 %vm382_vm10, %v3592_v46 }
0x11f3   :  { %v3593_v33 = vpop.trf.xlu2 }
0x11f4   :  { %4880 = vmatmul.msk.f32.gmra.mxu1 %vm382_vm10, %v3593_v33 }
0x11fb   :  { %v3594_v45 = vpop.trf.xlu2 }
0x11fc   :  { %4881 = vmatmul.msk.f32.gmra.mxu1 %vm382_vm10, %v3594_v45 }
0x1206   :  { %v3797_v42 = vpop.trf.xlu1 }
0x1207   :  { %4889 = vmatmul.msk.f32.vlgmr.msrb.gmra.mxu2 %vm382_vm10, %v3797_v42 }
0x120c   :  { %v4035_v28 = vpop.permute.xlu0 %4034 }
0x120d   :  { %4898 = vmatpush.msk.msra.mxu1 %vm505_vm9, %v4035_v28  ;;  %v7474_v28 = vld [vmem:[#allocation8_spill] sm:$0xff] }
0x120e   :  { %v3798_v2 = vpop.trf.xlu1 }
0x120f   :  { %4890 = vmatmul.msk.f32.gmra.mxu2 %vm382_vm10, %v3798_v2 }
0x1213   :  { %v4231_v59 = vpop.trf.xlu2 }
0x1216   :  { %v3799_v36 = vpop.trf.xlu1 }
0x1217   :  { %4891 = vmatmul.msk.f32.gmra.mxu2 %vm382_vm10, %v3799_v36 }
0x121b   :  { %v4232_v25 = vpop.trf.xlu2 }
0x121f   :  { %4909 = vmatmul.msk.f32.vlgmr.msra.gmra.mxu2 %vm382_vm10, %v4231_v59 }
0x1223   :  { %v4233_v24 = vpop.trf.xlu2 }
0x1226   :  { %v2787_v63 = vpop.f32.mrf.mxu1 }
0x1227   :  { %2796 = vst.msk [vmem:[#allocation3] sm:$0xff] %vm340_vm8, %v2787_v63  ;;  %4910 = vmatmul.msk.f32.gmra.mxu2 %vm382_vm10, %v4232_v25 }
0x122e   :  { %v2790_v52 = vpop.f32.mrf.mxu1 }
0x122f   :  { %2797 = vst.msk [vmem:[#allocation3 + $0x8] sm:$0xff] %vm340_vm8, %v2790_v52  ;;  %4911 = vmatmul.msk.f32.gmra.mxu2 %vm382_vm10, %v4233_v24 }
0x1236   :  { %v2793_v7 = vpop.f32.mrf.mxu1 }
0x1237   :  { %2798 = vst.msk [vmem:[#allocation3 + $0x10] sm:$0x1] %vm536_vm4, %v2793_v7 }
0x123b   :  { %v2992_v9 = vpop.f32.mrf.mxu2 }
0x123c   :  { %3004 = vrot.lane.b32.xlu2 %v2992_v9, %s7465_s20 }
0x123e   :  { %v5046_v40 = vpop.permute.xlu1 %5045  ;;  %v3209_v11 = vpop.f32.mrf.mxu1 }
0x123f   :  { %v5047_v48 = vunpack.i.l.bf16 %v5046_v40  ;;  %3221 = vrot.lane.b32.xlu1 %v3209_v11, %s7466_s21  ;;  %v5048_v3 = vunpack.i.h.bf16 %v5046_v40 }
0x1241   :  { %4063 = vmatpush.msra.mxu1 %v5047_v48 }
0x1243   :  { %4064 = vmatpush.msra.mxu1 %v5048_v3  ;;  %v2995_v10 = vpop.f32.mrf.mxu2  ;;  %v7479_v3 = vld [vmem:[#allocation7_spill] sm:$0xff] }
0x1246   :  { %v3212_v17 = vpop.f32.mrf.mxu1 }
0x1247   :  { %3223 = vrot.lane.b32.xlu1 %v3212_v17, %s7466_s21 }
0x124b   :  { %v2998_v34 = vpop.f32.mrf.mxu2 }
0x124e   :  { %v3215_v1 = vpop.f32.mrf.mxu1 }
0x124f   :  { %3006 = vrot.lane.b32.xlu1 %v2995_v10, %s7465_s20 }
0x1257   :  { %v3426_v31 = vpop.f32.mrf.mxu2 }
0x1258   :  { %3438 = vrot.lane.b32.xlu1 %v3426_v31, %s7467_s23 }
0x125f   :  { %v3429_v49 = vpop.f32.mrf.mxu2 }
0x1260   :  { %v4014_v29 = vpop.trf.xlu0  ;;  %3440 = vrot.lane.b32.xlu0 %v3429_v49, %s7467_s23  ;;  %3008 = vrot.lane.b32.xlu1 %v2998_v34, %s7465_s20 }
0x1261   :  { %4899 = vmatmul.msk.f32.vlgmr.msra.gmra.mxu1 %vm382_vm10, %v4014_v29 }
0x1267   :  { %v3432_v32 = vpop.f32.mrf.mxu2 }
0x1268   :  { %v4015_v41 = vpop.trf.xlu0  ;;  %3225 = vrot.lane.b32.xlu1 %v3215_v1, %s7466_s21 }
0x1269   :  { %4900 = vmatmul.msk.f32.gmra.mxu1 %vm382_vm10, %v4015_v41  ;;  %v3644_v60 = vpop.f32.mrf.mxu1 }
0x126a   :  { %3653 = vst.msk [vmem:[#allocation3 + $0x11] sm:$0xff] %vm340_vm8, %v3644_v60  ;;  %v7481_v60 = vld [vmem:[#allocation10_spill] sm:$0xff] }
0x1270   :  { %v4016_v12 = vpop.trf.xlu0 }
0x1271   :  { %4901 = vmatmul.msk.f32.gmra.mxu1 %vm382_vm10, %v4016_v12  ;;  %v3647_v5 = vpop.f32.mrf.mxu1 }
0x1272   :  { %3654 = vst.msk [vmem:[#allocation3 + $0x19] sm:$0xff] %vm340_vm8, %v3647_v5  ;;  %vm7468_vm8 = vcmask 261312   ;;  %v4927_v5 = vld [vmem:[%s7401_s11 + $0x38] sm:$0xff] }
0x1273   :  { %vm7469_vm10 = vmmov %vm7468_vm8  ;;  %4541 = vmatpush.msrb.mxu1 %v4927_v5 }
0x1274   :  { %vm7475_vm15 = vmmov %vm7468_vm8 }
0x1275   :  { %vm7476_vm13 = vmmov %vm7468_vm8  ;;  %4542 = vmatpush.msrb.mxu1 %v4926_v37 }
0x1277   :  { %4543 = vmatpush.msrb.mxu1 %v4925_v6 }
0x1279   :  { %v3650_v43 = vpop.f32.mrf.mxu1 }
0x127a   :  { %3655 = vst.msk [vmem:[#allocation3 + $0x21] sm:$0x1] %vm536_vm4, %v3650_v43  ;;  %vm7470_vm4 = vcmask 122944  }
0x127b   :  { %vm7471_vm1 = vmmov %vm7470_vm4 }
0x128a   :  { %v3849_v51 = vpop.f32.mrf.mxu2 }
0x1292   :  { %v3852_v15 = vpop.f32.mrf.mxu2 }
0x1296   :  { %v3005_v16 = vpop.permute.xlu2 %3004 }
0x1297   :  { %3013 = vst.msk [vmem:[#allocation3] sm:$0xff] %vm752_vm6, %v3005_v16 }
0x129a   :  { %v3855_v58 = vpop.f32.mrf.mxu2 }
0x129b   :  { %3865 = vrot.lane.b32.xlu2 %v3855_v58, %s7465_s20 }
0x12a2   :  { %v4283_v47 = vpop.f32.mrf.mxu2 }
0x12aa   :  { %v4286_v57 = vpop.f32.mrf.mxu2 }
0x12b1   :  { %v3222_v30 = vpop.permute.xlu1 %3221 }
0x12b2   :  { %3230 = vst.msk [vmem:[#allocation3] sm:$0xff] %vm971_vm7, %v3222_v30  ;;  %v4289_v4 = vpop.f32.mrf.mxu2  ;;  %v4924_v30 = vld [vmem:[%s7401_s11 + $0x20] sm:$0xff] }
0x12b3   :  { %4299 = vrot.lane.b32.xlu2 %v4289_v4, %s7467_s23  ;;  %4544 = vmatpush.msrb.mxu1 %v4924_v30 }
0x12b9   :  { %v3224_v56 = vpop.permute.xlu1 %3223 }
0x12c1   :  { %v3007_v0 = vpop.permute.xlu1 %3006 }
0x12c2   :  { %3014 = vst.msk [vmem:[#allocation3 + $0x8] sm:$0xff] %vm752_vm6, %v3007_v0 }
0x12c3   :  { %3231 = vst.msk [vmem:[#allocation3 + $0x8] sm:$0xff] %vm971_vm7, %v3224_v56 }
0x12ca   :  { %v3439_v39 = vpop.permute.xlu1 %3438 }
0x12cb   :  { %3447 = vst.msk [vmem:[#allocation3] sm:$0xff] %vm7468_vm8, %v3439_v39 }
0x12d2   :  { %v3441_v14 = vpop.permute.xlu0 %3440  ;;  %v4307_v22 = vld [vmem:[#allocation3] sm:$0xff]  ;;  %v3009_v26 = vpop.permute.xlu1 %3008 }
0x12d3   :  { %3448 = vst.msk [vmem:[#allocation3 + $0x8] sm:$0xff] %vm7469_vm10, %v3441_v14  ;;  %4917 = vmatmul.msk.f32.vlgmr.msrb.gmra.mxu0 %vm127_vm3, %v4307_v22 }
0x12d4   :  { %3015 = vst.msk [vmem:[#allocation3 + $0x10] sm:$0x1] %vm7470_vm4, %v3009_v26 }
0x12da   :  { %v4308_v27 = vld [vmem:[#allocation3 + $0x8] sm:$0xff]  ;;  %v3226_v8 = vpop.permute.xlu1 %3225 }
0x12db   :  { %4918 = vmatmul.msk.f32.gmra.mxu0 %vm127_vm3, %v4308_v27  ;;  %3232 = vst.msk [vmem:[#allocation3 + $0x10] sm:$0x1] %vm7472_vm11, %v3226_v8 }
0x12de   :  { %v4066_v19 = vpop.f32.mrf.mxu1 }
0x12df   :  { %4078 = vrot.lane.b32.xlu1 %v4066_v19, %s7466_s21 }
0x12e6   :  { %v4069_v61 = vpop.f32.mrf.mxu1 }
0x12e7   :  { %3442 = vrot.lane.b32.xlu1 %v3432_v32, %s7467_s23  ;;  %v7480_v32 = vld [vmem:[#allocation9_spill] sm:$0xff] }
0x12ee   :  { %v4072_v35 = vpop.f32.mrf.mxu1 }
0x12ef   :  { %3861 = vrot.lane.b32.xlu1 %v3849_v51, %s7465_s20 }
0x12f5   :  { %v3866_v21 = vpop.permute.xlu2 %3865 }
0x12f6   :  { %3872 = vst.msk [vmem:[#allocation3 + $0x21] sm:$0x1] %vm7471_vm1, %v3866_v21  ;;  %v7276_v21 = vld [vmem:[%s7399_s9 + $0x1] ss:$0 sm:$0xff] }
0x12f7   :  { %4295 = vrot.lane.b32.xlu1 %v4283_v47, %s7467_s23 }
0x12ff   :  { %3863 = vrot.lane.b32.xlu1 %v3852_v15, %s7465_s20 }
0x1307   :  { %4080 = vrot.lane.b32.xlu1 %v4069_v61, %s7466_s21 }
0x130d   :  { %v4300_v45 = vpop.permute.xlu2 %4299 }
0x130f   :  { %4297 = vrot.lane.b32.xlu1 %v4286_v57, %s7467_s23 }
0x1317   :  { %4082 = vrot.lane.b32.xlu1 %v4072_v35, %s7466_s21 }
0x1350   :  { %v4354_v62 = vpop.f32.mrf.mxu0 }
0x1351   :  { %v4079_v23 = vpop.permute.xlu1 %4078  ;;  %v4355_v54 = vadd.f32 %v7222_v20, %v4354_v62 }
0x1353   :  { %v7226_v50 = vadd.f32 %v4355_v54, %v6355_v44 }
0x1355   :  { %v4378_v18 = vsel %vm127_vm3, %v7226_v50, 0.0 }
0x1356   :  { %4379 = vadd.xlane.f32.xlu1 %v4378_v18 }
0x1358   :  { %v4357_v53 = vpop.f32.mrf.mxu0 }
0x1359   :  { %v3443_v38 = vpop.permute.xlu1 %3442  ;;  %v4358_v42 = vadd.f32 %v7222_v20, %v4357_v53 }
0x135a   :  { %3449 = vst.msk [vmem:[#allocation3 + $0x10] sm:$0x1] %vm7473_vm12, %v3443_v38 }
0x135b   :  { %v4370_v2 = vadd.f32 %v4358_v42, %v7474_v28 }
0x135d   :  { %v4381_v36 = vsel %vm127_vm3, %v4370_v2, 0.0 }
0x135e   :  { %4382 = vadd.xlane.f32.xlu2 %v4381_v36 }
0x1361   :  { %v3862_v63 = vpop.permute.xlu1 %3861 }
0x1362   :  { %3870 = vst.msk [vmem:[#allocation3 + $0x11] sm:$0xff] %vm752_vm6, %v3862_v63 }
0x1363   :  { %4087 = vst.msk [vmem:[#allocation3 + $0x11] sm:$0xff] %vm971_vm7, %v4079_v23  ;;  %v7281_v23 = vld [vmem:[%s7400_s10 + $0x1] ss:$0 sm:$0xff]  ;;  %s5366_s10 = smov [#allocation4]  }
0x1364   :  { %s4705_s23 = sshll.u32 %s5366_s10, 4  ;;  %s4706_s23 = int_to_ptr.vmem [resolvable:$true] %s4705_s23 }
0x1369   :  { %v4296_v44 = vpop.permute.xlu1 %4295 }
0x136a   :  { %4304 = vst.msk [vmem:[#allocation3 + $0x11] sm:$0xff] %vm7475_vm15, %v4296_v44  ;;  %vm7483_vm15 = vcmask 523264  }
0x1371   :  { %v3864_v46 = vpop.permute.xlu1 %3863  ;;  %v4309_v52 = vld [vmem:[#allocation3 + $0x10] sm:$0xff] }
0x1372   :  { %3871 = vst.msk [vmem:[#allocation3 + $0x19] sm:$0xff] %vm752_vm6, %v3864_v46  ;;  %4919 = vmatmul.msk.f32.gmra.mxu0 %vm127_vm3, %v4309_v52 }
0x1379   :  { %v4081_v33 = vpop.permute.xlu1 %4080 }
0x137a   :  { %4088 = vst.msk [vmem:[#allocation3 + $0x19] sm:$0xff] %vm971_vm7, %v4081_v33 }
0x1381   :  { %v4298_v7 = vpop.permute.xlu1 %4297 }
0x1382   :  { %4305 = vst.msk [vmem:[#allocation3 + $0x19] sm:$0xff] %vm7476_vm13, %v4298_v7 }
0x1389   :  { %v4083_v9 = vpop.permute.xlu1 %4082  ;;  %v4310_v40 = vld [vmem:[#allocation3 + $0x18] sm:$0xff] }
0x138a   :  { %4089 = vst.msk [vmem:[#allocation3 + $0x21] sm:$0x1] %vm7477_vm14, %v4083_v9  ;;  %4920 = vmatmul.msk.f32.gmra.mxu0 %vm127_vm3, %v4310_v40  ;;  %v7482_v40 = vld [vmem:[#allocation11_spill] sm:$0xff] }
0x138b   :  { %4306 = vst.msk [vmem:[#allocation3 + $0x21] sm:$0x1] %vm7478_vm0, %v4300_v45 }
0x1392   :  { %v4311_v11 = vld [vmem:[#allocation3 + $0x20] sm:$0x3] }
0x1393   :  { %4921 = vmatmul.msk.f32.gmra.mxu0 %vm127_vm3, %v4311_v11 }
0x13c9   :  { %v4380_v48 = vpop.xlane.xlu1 %4379 }
0x13ca   :  { %v4393_v59 = vmul.f32 %v4380_v48, %v7479_v3 }
0x13cc   :  { %v4398_v10 = vsub.f32 %v7226_v50, %v4393_v59 }
0x13ce   :  { %v4403_v17 = vmul.f32 %v4398_v10, %v4398_v10 }
0x13d0   :  { %v4408_v25 = vsel %vm127_vm3, %v4403_v17, 0.0 }
0x13d1   :  { %4409 = vadd.xlane.f32.xlu1 %v4408_v25  ;;  %v4383_v34 = vpop.xlane.xlu2 %4382 }
0x13d2   :  { %v4394_v24 = vmul.f32 %v4383_v34, %v7479_v3 }
0x13d4   :  { %v4399_v31 = vsub.f32 %v4370_v2, %v4394_v24  ;;  %v4940_v24 = vld [vmem:[%s7403_s13 + $0x70] sm:$0xff] }
0x13d6   :  { %v4404_v29 = vmul.f32 %v4399_v31, %v4399_v31 }
0x13d8   :  { %v4411_v49 = vsel %vm127_vm3, %v4404_v29, 0.0  ;;  %v4938_v29 = vld [vmem:[%s7403_s13 + $0x60] sm:$0xff] }
0x13d9   :  { %4412 = vadd.xlane.f32.xlu2 %v4411_v49  ;;  %v4937_v49 = vld [vmem:[%s7403_s13 + $0x58] sm:$0xff] }
0x13ef   :  { %v4360_v41 = vpop.f32.mrf.mxu0 }
0x13f0   :  { %v4361_v12 = vadd.f32 %v7222_v20, %v4360_v41  ;;  %v4936_v41 = vld [vmem:[%s7403_s13 + $0x50] sm:$0xff] }
0x13f2   :  { %v7252_v51 = vadd.f32 %v4361_v12, %v7480_v32  ;;  %v4935_v12 = vld [vmem:[%s7403_s13 + $0x48] sm:$0xff]  ;;  %v4934_v32 = vld [vmem:[%s7403_s13 + $0x40] sm:$0xff] }
0x13f4   :  { %v4384_v1 = vsel %vm127_vm3, %v7252_v51, 0.0 }
0x13f5   :  { %4385 = vadd.xlane.f32.xlu0 %v4384_v1  ;;  %v7332_v1 = vld [vmem:[%s7402_s12 + $0x1] ss:$0 sm:$0xff] }
0x1407   :  { %v4363_v15 = vpop.f32.mrf.mxu0 }
0x1408   :  { %v4364_v16 = vadd.f32 %v7222_v20, %v4363_v15 }
0x140a   :  { %v4372_v58 = vadd.f32 %v4364_v16, %v7481_v60 }
0x140c   :  { %v4387_v13 = vsel %vm127_vm3, %v4372_v58, 0.0 }
0x140d   :  { %4388 = vadd.xlane.f32.xlu2 %v4387_v13 }
0x1410   :  { %v4366_v33 = vpop.f32.mrf.mxu0 }
0x1411   :  { %v4367_v45 = vadd.f32 %v7222_v20, %v4366_v33  ;;  %v4941_v20 = vld [vmem:[%s7403_s13 + $0x78] sm:$0xff] }
0x1412   :  { %4643 = vmatpush.msra.mxu3 %v4941_v20 }
0x1413   :  { %v4373_v11 = vadd.f32 %v4367_v45, %v7482_v40 }
0x1414   :  { %4644 = vmatpush.msra.mxu3 %v4940_v24 }
0x1415   :  { %v4390_v48 = vsel %vm154_vm5, %v4373_v11, 0.0 }
0x1444   :  { %v4410_v55 = vpop.xlane.xlu1 %4409 }
0x1445   :  { %v4423_v43 = vmul.f32 %v4410_v55, %v7479_v3 }
0x1447   :  { %v4428_v56 = vadd.f32 1e-05, %v4423_v43 }
0x1449   :  { %5300 = vrsqrt.f32 %v4428_v56  ;;  %vm4439_vm7 = vweird.f32 %v4428_v56 }
0x144c   :  { %v4413_v0 = vpop.xlane.xlu2 %4412 }
0x144d   :  { %v4424_v39 = vmul.f32 %v4413_v0, %v7479_v3 }
0x144f   :  { %v5301_v14 = vpop.eup %5300  ;;  %v4429_v22 = vadd.f32 1e-05, %v4424_v39 }
0x1450   :  { %v4434_v27 = vmul.f32 %v5301_v14, %v4428_v56  ;;  %vm4440_vm6 = vweird.f32 %v5301_v14 }
0x1451   :  { %5302 = vrsqrt.f32 %v4429_v22  ;;  %vm4441_vm2 = vmor %vm4439_vm7, %vm4440_vm6  ;;  %vm4449_vm10 = vweird.f32 %v4429_v22 }
0x1452   :  { %v4435_v19 = vmul.f32 %v5301_v14, %v4434_v27 }
0x1454   :  { %v4436_v47 = vmul.f32 0.5, %v4435_v19 }
0x1456   :  { %v4437_v57 = vsub.f32 1.5, %v4436_v47 }
0x1457   :  { %v5303_v26 = vpop.eup %5302 }
0x1458   :  { %v4438_v4 = vmul.f32 %v5301_v14, %v4437_v57  ;;  %v4444_v61 = vmul.f32 %v5303_v26, %v4429_v22  ;;  %vm4450_vm8 = vweird.f32 %v5303_v26 }
0x1459   :  { %vm4451_vm4 = vmor %vm4449_vm10, %vm4450_vm8 }
0x145a   :  { %v4442_v8 = vsel %vm4441_vm2, %v5301_v14, %v4438_v4  ;;  %v4445_v35 = vmul.f32 %v5303_v26, %v4444_v61 }
0x145b   :  { %v4483_v62 = vmul.f32 %v4442_v8, %v4398_v10 }
0x145c   :  { %v4446_v54 = vmul.f32 0.5, %v4445_v35 }
0x145d   :  { %v4491_v18 = vmul.f32 %v7276_v21, %v4483_v62 }
0x145e   :  { %v4447_v38 = vsub.f32 1.5, %v4446_v54 }
0x145f   :  { %v4499_v53 = vadd.f32 %v7281_v23, %v4491_v18 }
0x1460   :  { %v4448_v42 = vmul.f32 %v5303_v26, %v4447_v38 }
0x1461   :  { %4929 = vmatmul.msk.f32.vlgmr.msrb.gmra.mxu1 %vm127_vm3, %v4499_v53 }
0x1462   :  { %v4452_v28 = vsel %vm4451_vm4, %v5303_v26, %v4448_v42 }
0x1463   :  { %v4484_v2 = vmul.f32 %v4452_v28, %v4399_v31  ;;  %v4939_v31 = vld [vmem:[%s7403_s13 + $0x68] sm:$0xff] }
0x1464   :  { %4645 = vmatpush.msra.mxu3 %v4939_v31 }
0x1465   :  { %v4492_v36 = vmul.f32 %v7276_v21, %v4484_v2 }
0x1466   :  { %4646 = vmatpush.msra.mxu3 %v4938_v29 }
0x1467   :  { %v4500_v46 = vadd.f32 %v7281_v23, %v4492_v36 }
0x1468   :  { %v4386_v63 = vpop.xlane.xlu0 %4385  ;;  %4647 = vmatpush.msra.mxu3 %v4937_v49 }
0x1469   :  { %v4395_v44 = vmul.f32 %v4386_v63, %v7479_v3  ;;  %4930 = vmatmul.msk.f32.gmra.mxu1 %vm127_vm3, %v4500_v46 }
0x146a   :  { %4648 = vmatpush.msra.mxu3 %v4936_v41 }
0x146b   :  { %v7290_v52 = vsub.f32 %v7252_v51, %v4395_v44 }
0x146c   :  { %4649 = vmatpush.msra.mxu3 %v4935_v12 }
0x146d   :  { %v4405_v7 = vmul.f32 %v7290_v52, %v7290_v52 }
0x146e   :  { %4650 = vmatpush.msra.mxu3 %v4934_v32 }
0x146f   :  { %v4414_v9 = vsel %vm127_vm3, %v4405_v7, 0.0 }
0x1470   :  { %4415 = vadd.xlane.f32.xlu1 %v4414_v9 }
0x1478   :  { %4391 = vadd.xlane.f32.xlu1 %v4390_v48 }
0x1480   :  { %v4389_v59 = vpop.xlane.xlu2 %4388 }
0x1481   :  { %v4396_v10 = vmul.f32 %v4389_v59, %v7479_v3 }
0x1483   :  { %v7300_v17 = vsub.f32 %v4372_v58, %v4396_v10 }
0x1485   :  { %v4406_v25 = vmul.f32 %v7300_v17, %v7300_v17 }
0x1487   :  { %v4417_v34 = vsel %vm127_vm3, %v4406_v25, 0.0 }
0x1488   :  { %4418 = vadd.xlane.f32.xlu2 %v4417_v34 }
0x14de   :  { %v4546_v15 = vpop.f32.mrf.mxu1 }
0x14df   :  { %v4547_v16 = vadd.f32 %v7332_v1, %v4546_v15 }
0x14e1   :  { %v4566_v60 = vmul.f32 0.044715, %v4547_v16  ;;  %v4561_v18 = vmul.f32 0.5, %v4547_v16 }
0x14e3   :  { %v4416_v58 = vpop.xlane.xlu1 %4415  ;;  %v4571_v5 = vmul.f32 %v4566_v60, %v4547_v16 }
0x14e4   :  { %v4425_v13 = vmul.f32 %v4416_v58, %v7479_v3 }
0x14e5   :  { %v4576_v6 = vmul.f32 %v4571_v5, %v4547_v16 }
0x14e6   :  { %v4430_v37 = vadd.f32 1e-05, %v4425_v13  ;;  %v4549_v30 = vpop.f32.mrf.mxu1 }
0x14e7   :  { %v4581_v55 = vadd.f32 %v4576_v6, %v4547_v16  ;;  %v4550_v43 = vadd.f32 %v7332_v1, %v4549_v30 }
0x14e8   :  { %5304 = vrsqrt.f32 %v4430_v37  ;;  %vm4459_vm11 = vweird.f32 %v4430_v37 }
0x14e9   :  { %v4586_v56 = vmul.f32 0.7978846, %v4581_v55  ;;  %v4567_v0 = vmul.f32 0.044715, %v4550_v43  ;;  %v4562_v33 = vmul.f32 0.5, %v4550_v43 }
0x14eb   :  { %v4392_v39 = vpop.xlane.xlu1 %4391  ;;  %5306 = vtanh.f32 %v4586_v56  ;;  %v4572_v22 = vmul.f32 %v4567_v0, %v4550_v43 }
0x14ec   :  { %v4397_v14 = vmul.f32 %v4392_v39, %v7479_v3 }
0x14ed   :  { %v4577_v57 = vmul.f32 %v4572_v22, %v4550_v43 }
0x14ee   :  { %v5305_v27 = vpop.eup %5304  ;;  %v7338_v19 = vsub.f32 %v4373_v11, %v4397_v14 }
0x14ef   :  { %v4454_v47 = vmul.f32 %v5305_v27, %v4430_v37  ;;  %v4582_v61 = vadd.f32 %v4577_v57, %v4550_v43  ;;  %vm4460_vm1 = vweird.f32 %v5305_v27 }
0x14f0   :  { %v4407_v26 = vmul.f32 %v7338_v19, %v7338_v19  ;;  %vm4461_vm12 = vmor %vm4459_vm11, %vm4460_vm1  ;;  %vm4698_vm1 = vcmask 74752  }
0x14f1   :  { %v4455_v4 = vmul.f32 %v5305_v27, %v4454_v47  ;;  %v5307_v35 = vpop.eup %5306  ;;  %v4587_v54 = vmul.f32 0.7978846, %v4582_v61 }
0x14f2   :  { %v4420_v8 = vsel %vm154_vm5, %v4407_v26, 0.0  ;;  %v4596_v38 = vadd.f32 1.0, %v5307_v35  ;;  %vm7484_vm5 = vmmov %vm7483_vm15 }
0x14f3   :  { %v4456_v62 = vmul.f32 0.5, %v4455_v4  ;;  %4421 = vadd.xlane.f32.xlu1 %v4420_v8  ;;  %5308 = vtanh.f32 %v4587_v54  ;;  %vm7485_vm8 = vmmov %vm7484_vm5 }
0x14f4   :  { %v4601_v42 = vmul.f32 %v4596_v38, %v4561_v18  ;;  %vm7486_vm10 = vmmov %vm7484_vm5 }
0x14f5   :  { %v4457_v53 = vsub.f32 1.5, %v4456_v62  ;;  %vm7487_vm4 = vmmov %vm7484_vm5 }
0x14f6   :  { %4943 = vmatmul.msk.f32.vlgmr.msra.gmra.mxu3 %vm7483_vm15, %v4601_v42  ;;  %v4669_v42 = vld [vmem:[%s7405_s15 + $0x10] sm:$0xff] }
0x14f7   :  { %v4458_v28 = vmul.f32 %v5305_v27, %v4457_v53  ;;  %v4670_v53 = vld [vmem:[%s7405_s15 + $0x18] sm:$0xff] }
0x14f8   :  { %4690 = vmatpush.msrb.mxu2 %v4670_v53 }
0x14f9   :  { %v4462_v2 = vsel %vm4461_vm12, %v5305_v27, %v4458_v28  ;;  %v5309_v63 = vpop.eup %5308  ;;  %v4668_v28 = vld [vmem:[%s7405_s15 + $0x8] sm:$0xff] }
0x14fa   :  { %v4485_v36 = vmul.f32 %v4462_v2, %v7290_v52  ;;  %v4597_v7 = vadd.f32 1.0, %v5309_v63  ;;  %4691 = vmatpush.msrb.mxu2 %v4669_v42  ;;  %v4667_v2 = vld [vmem:[%s7405_s15] sm:$0xff] }
0x14fb   :  { %v4419_v44 = vpop.xlane.xlu2 %4418 }
0x14fc   :  { %v4426_v46 = vmul.f32 %v4419_v44, %v7479_v3  ;;  %v4493_v45 = vmul.f32 %v7276_v21, %v4485_v36  ;;  %v4602_v40 = vmul.f32 %v4597_v7, %v4562_v33  ;;  %4692 = vmatpush.msrb.mxu2 %v4668_v28 }
0x14fe   :  { %v4431_v9 = vadd.f32 1e-05, %v4426_v46  ;;  %v4501_v11 = vadd.f32 %v7281_v23, %v4493_v45  ;;  %4944 = vmatmul.msk.f32.gmra.mxu3 %vm7484_vm5, %v4602_v40  ;;  %4693 = vmatpush.msrb.mxu2 %v4667_v2  ;;  %v5064_v40 = vld [vmem:[%s7404_s14 + $0x1] ss:$0 sm:$0xff] }
0x1500   :  { %5310 = vrsqrt.f32 %v4431_v9  ;;  %4931 = vmatmul.msk.f32.gmra.mxu1 %vm127_vm3, %v4501_v11  ;;  %vm4469_vm14 = vweird.f32 %v4431_v9 }
0x1506   :  { %v5311_v48 = vpop.eup %5310 }
0x1507   :  { %v4464_v59 = vmul.f32 %v5311_v48, %v4431_v9  ;;  %vm4470_vm13 = vweird.f32 %v5311_v48 }
0x1508   :  { %vm4471_vm0 = vmor %vm4469_vm14, %vm4470_vm13 }
0x1509   :  { %v4465_v52 = vmul.f32 %v5311_v48, %v4464_v59 }
0x150b   :  { %v4466_v10 = vmul.f32 0.5, %v4465_v52 }
0x150d   :  { %v4467_v25 = vsub.f32 1.5, %v4466_v10 }
0x150f   :  { %v4468_v34 = vmul.f32 %v5311_v48, %v4467_v25 }
0x1511   :  { %v4472_v20 = vsel %vm4471_vm0, %v5311_v48, %v4468_v34 }
0x1512   :  { %v4486_v24 = vmul.f32 %v4472_v20, %v7300_v17 }
0x1514   :  { %v4494_v31 = vmul.f32 %v7276_v21, %v4486_v24 }
0x1516   :  { %v4502_v29 = vadd.f32 %v7281_v23, %v4494_v31 }
0x1518   :  { %4932 = vmatmul.msk.f32.gmra.mxu1 %vm127_vm3, %v4502_v29  ;;  %v5065_v29 = vld [vmem:[%s7406_s16] ss:$0 sm:$0xff] }
0x1566   :  { %v4422_v49 = vpop.xlane.xlu1 %4421 }
0x1567   :  { %v4427_v41 = vmul.f32 %v4422_v49, %v7479_v3 }
0x1569   :  { %v4432_v12 = vadd.f32 1e-05, %v4427_v41 }
0x156b   :  { %5312 = vrsqrt.f32 %v4432_v12  ;;  %vm4479_vm7 = vweird.f32 %v4432_v12 }
0x1571   :  { %v5313_v32 = vpop.eup %5312 }
0x1572   :  { %v4474_v15 = vmul.f32 %v5313_v32, %v4432_v12  ;;  %vm4480_vm6 = vweird.f32 %v5313_v32 }
0x1573   :  { %vm4481_vm2 = vmor %vm4479_vm7, %vm4480_vm6 }
0x1574   :  { %v4475_v16 = vmul.f32 %v5313_v32, %v4474_v15 }
0x1576   :  { %v4476_v60 = vmul.f32 0.5, %v4475_v16 }
0x1578   :  { %v4477_v58 = vsub.f32 1.5, %v4476_v60 }
0x1579   :  { %v4652_v17 = vpop.f32.mrf.mxu3 }
0x157a   :  { %v4478_v13 = vmul.f32 %v5313_v32, %v4477_v58  ;;  %v4653_v52 = vadd.f32 %v5064_v40, %v4652_v17 }
0x157c   :  { %v4482_v5 = vsel %vm4481_vm2, %v5313_v32, %v4478_v13 }
0x157d   :  { %v4487_v37 = vmul.f32 %v4482_v5, %v7338_v19  ;;  %v4552_v6 = vpop.f32.mrf.mxu1 }
0x157e   :  { %v4553_v30 = vadd.f32 %v7332_v1, %v4552_v6 }
0x157f   :  { %v4495_v3 = vmul.f32 %v7276_v21, %v4487_v37 }
0x1580   :  { %v4568_v55 = vmul.f32 0.044715, %v4553_v30  ;;  %v4563_v47 = vmul.f32 0.5, %v4553_v30 }
0x1581   :  { %v4503_v43 = vadd.f32 %v7281_v23, %v4495_v3  ;;  %v4655_v0 = vpop.f32.mrf.mxu3 }
0x1582   :  { %v4573_v56 = vmul.f32 %v4568_v55, %v4553_v30 }
0x1583   :  { %4933 = vmatmul.msk.f32.gmra.mxu1 %vm127_vm3, %v4503_v43 }
0x1584   :  { %v4578_v39 = vmul.f32 %v4573_v56, %v4553_v30 }
0x1586   :  { %v4583_v14 = vadd.f32 %v4578_v39, %v4553_v30 }
0x1588   :  { %v4588_v22 = vmul.f32 0.7978846, %v4583_v14 }
0x158a   :  { %5314 = vtanh.f32 %v4588_v22 }
0x1590   :  { %v5315_v27 = vpop.eup %5314 }
0x1591   :  { %v4598_v57 = vadd.f32 1.0, %v5315_v27 }
0x1593   :  { %v4603_v19 = vmul.f32 %v4598_v57, %v4563_v47 }
0x1595   :  { %v4555_v26 = vpop.f32.mrf.mxu1  ;;  %4945 = vmatmul.msk.f32.gmra.mxu3 %vm7485_vm8, %v4603_v19 }
0x1596   :  { %v4556_v21 = vadd.f32 %v7332_v1, %v4555_v26 }
0x1598   :  { %v4569_v4 = vmul.f32 0.044715, %v4556_v21  ;;  %v4564_v54 = vmul.f32 0.5, %v4556_v21 }
0x159a   :  { %v4574_v61 = vmul.f32 %v4569_v4, %v4556_v21 }
0x159c   :  { %v4579_v23 = vmul.f32 %v4574_v61, %v4556_v21 }
0x159e   :  { %v4584_v8 = vadd.f32 %v4579_v23, %v4556_v21 }
0x15a0   :  { %v4589_v35 = vmul.f32 0.7978846, %v4584_v8 }
0x15a2   :  { %5316 = vtanh.f32 %v4589_v35 }
0x15a8   :  { %v5317_v62 = vpop.eup %5316 }
0x15a9   :  { %v4599_v18 = vadd.f32 1.0, %v5317_v62 }
0x15ab   :  { %v4604_v38 = vmul.f32 %v4599_v18, %v4564_v54 }
0x15ad   :  { %4946 = vmatmul.msk.f32.gmra.mxu3 %vm7486_vm10, %v4604_v38 }
0x1600   :  { %v4558_v36 = vpop.f32.mrf.mxu1 }
0x1601   :  { %v4559_v63 = vadd.f32 %v7332_v1, %v4558_v36  ;;  %v4664_v1 = vadd.f32 %v4653_v52, %v7226_v50 }
0x1603   :  { %v4570_v44 = vmul.f32 0.044715, %v4559_v63  ;;  %v4565_v11 = vmul.f32 0.5, %v4559_v63 }
0x1605   :  { %v4575_v46 = vmul.f32 %v4570_v44, %v4559_v63 }
0x1607   :  { %v4580_v33 = vmul.f32 %v4575_v46, %v4559_v63 }
0x1609   :  { %v4585_v7 = vadd.f32 %v4580_v33, %v4559_v63 }
0x160b   :  { %v4590_v45 = vmul.f32 0.7978846, %v4585_v7 }
0x160d   :  { %5318 = vtanh.f32 %v4590_v45 }
0x1613   :  { %v5319_v9 = vpop.eup %5318 }
0x1614   :  { %v4600_v48 = vadd.f32 1.0, %v5319_v9 }
0x1616   :  { %v4605_v59 = vmul.f32 %v4600_v48, %v4565_v11 }
0x1618   :  { %v4657_v10 = vpop.f32.mrf.mxu3  ;;  %4947 = vmatmul.msk.f32.gmra.mxu3 %vm7487_vm4, %v4605_v59 }
0x1619   :  { %v4658_v25 = vadd.f32 %v5064_v40, %v4657_v10 }
0x161b   :  { %v4665_v34 = vadd.f32 %v4658_v25, %v7252_v51 }
0x161d   :  { %v4666_v20 = vsel %vm505_vm9, %v4664_v1, %v4665_v34 }
0x161e   :  { %4948 = vmatmul.msk.f32.vlgmr.msrb.gmra.mxu2 %vm127_vm3, %v4666_v20 }
0x1630   :  { %v4660_v24 = vpop.f32.mrf.mxu3 }
0x169b   :  { %v4662_v31 = vpop.f32.mrf.mxu3 }
0x16a1   :  { %v4695_v49 = vpop.f32.mrf.mxu2 }
0x16a2   :  { %v4696_v50 = vadd.f32 %v5065_v29, %v4695_v49 }
0x16a4   :  { %4699 = vst.msk [vmem:[#allocation4] sm:$0x3] %vm4698_vm1, %v4696_v50 }
0x16a5   :  { %4710 = dma.vmem_to_hbm [thread:$0]  %s4706_s23, 32, %s4708_s29, [#allocation5]  }
0x16a6   :  { %5349 = dma.done.wait [#allocation5], 32  }
0x16a7   :  { %5350 = vsyncadd [#allocation5], 4294967264 }
0x16a8   :  { %4715 = vsyncpa [#allocation5], 1 }

</bundles_post_ra>
